<compile_context>
chip_gen: v5e
topology: v5e:2x2
jax: 0.10.0
libtpu: 0.0.40
codegen_flags: <defaults>
</compile_context>

<pallas_src>
import math

import jax
import jax.numpy as jnp
from jax.experimental import pallas as pl
from jax.experimental.pallas import tpu as pltpu

jax.config.update("jax_default_matmul_precision", "highest")


# ----------------------------------------------------------------------------------
# Kernels (all grid-less; whole arrays resident in VMEM).
# ----------------------------------------------------------------------------------

def _layer_norm(z, gamma, beta, eps=1e-5):
    mu = jnp.mean(z, axis=-1, keepdims=True)
    c = z - mu
    var = jnp.mean(c * c, axis=-1, keepdims=True)
    return c * jax.lax.rsqrt(var + eps) * gamma + beta


def _embed_kernel(tok_ref, emb_ref, pos_ref, out_ref):
    # tok: (N,1) i32, emb: (V,H), pos: (N,H) pre-tiled P, out: (N,H)
    n = out_ref.shape[0]
    v, h = emb_ref.shape
    one_hot = (jax.lax.broadcasted_iota(jnp.int32, (n, v), 1)
               == tok_ref[...]).astype(jnp.float32)
    emb = jnp.dot(one_hot, emb_ref[...], preferred_element_type=jnp.float32)
    out_ref[...] = emb * jnp.float32(math.sqrt(h)) + pos_ref[...]


def _stacked_proj_kernel(x_ref, w_ref, out_ref):
    # x: (M,H), w: (K,H,H) stacked weights, out: (K,M,H)
    x = x_ref[...]
    for i in range(w_ref.shape[0]):
        out_ref[i] = jnp.dot(x, w_ref[i], preferred_element_type=jnp.float32)


def _attn_core(q_ref, k_ref, v_ref, vl_ref, out_ref):
    # q: (G,Tq,d), k/v: (G,Tk,d), vl: (G,1) i32 or None, out: (G,Tq,d)
    g, tq, d = q_ref.shape
    tk = k_ref.shape[1]
    q = q_ref[...]
    k = k_ref[...]
    v = v_ref[...]
    s = jnp.einsum("gqd,gkd->gqk", q, k, preferred_element_type=jnp.float32)
    s = s * jnp.float32(1.0 / math.sqrt(d))
    if vl_ref is not None:
        col = jax.lax.broadcasted_iota(jnp.int32, (g, tq, tk), 2)
        s = jnp.where(col >= vl_ref[...][:, :, None], jnp.float32(-1000000.0), s)
    m = jnp.max(s, axis=-1, keepdims=True)
    e = jnp.exp(s - m)
    attn = e / jnp.sum(e, axis=-1, keepdims=True)
    out_ref[...] = jnp.einsum("gqk,gkd->gqd", attn, v,
                              preferred_element_type=jnp.float32)


def _self_attn_core_kernel(q_ref, k_ref, v_ref, out_ref):
    _attn_core(q_ref, k_ref, v_ref, None, out_ref)


def _cross_attn_core_kernel(q_ref, k_ref, v_ref, vl_ref, out_ref):
    _attn_core(q_ref, k_ref, v_ref, vl_ref, out_ref)


def _post_self_kernel(o_ref, x_ref, wo_ref, g1_ref, b1_ref, wq_ref, y_ref, q_ref):
    # y = LayerNorm(o @ Wo + x);  q = y @ Wq_cross  (fused AddNorm1 + cross-q proj)
    o = jnp.dot(o_ref[...], wo_ref[...], preferred_element_type=jnp.float32)
    y = _layer_norm(o + x_ref[...], g1_ref[...], b1_ref[...])
    y_ref[...] = y
    q_ref[...] = jnp.dot(y, wq_ref[...], preferred_element_type=jnp.float32)


def _post_cross_ffn_kernel(o_ref, y2_ref, wo_ref, g2_ref, b2_ref,
                           w1_ref, b1_ref, w2_ref, b2f_ref, g3_ref, b3_ref, out_ref):
    # AddNorm2 + PositionWiseFFN + AddNorm3, fused.
    o = jnp.dot(o_ref[...], wo_ref[...], preferred_element_type=jnp.float32)
    y4 = _layer_norm(o + y2_ref[...], g2_ref[...], b2_ref[...])
    h = jnp.maximum(
        jnp.dot(y4, w1_ref[...], preferred_element_type=jnp.float32) + b1_ref[...], 0.0)
    y5 = jnp.dot(h, w2_ref[...], preferred_element_type=jnp.float32) + b2f_ref[...]
    out_ref[...] = _layer_norm(y5 + y4, g3_ref[...], b3_ref[...])


def _logits_kernel(x_ref, w_ref, b_ref, out_ref):
    # (N,H) @ (H,V) + (1,V) -> (N,128): lane-dense store.
    out_ref[...] = jnp.dot(x_ref[...], w_ref[...],
                           preferred_element_type=jnp.float32) + b_ref[...]


# ----------------------------------------------------------------------------------
# pallas_call helper: grid-less, whole-array VMEM residency.
# ----------------------------------------------------------------------------------

def _vmem():
    return pl.BlockSpec(memory_space=pltpu.MemorySpace.VMEM)


def _pcall(kernel, out_shape, *args):
    if isinstance(out_shape, (tuple, list)):
        out_specs = tuple(_vmem() for _ in out_shape)
        out_shape = tuple(out_shape)
    else:
        out_specs = _vmem()
    return pl.pallas_call(
        kernel,
        out_shape=out_shape,
        in_specs=[_vmem() for _ in args],
        out_specs=out_specs,
    )(*args)


# ----------------------------------------------------------------------------------
# Wrapper: full TransformerDecoder forward.
# ----------------------------------------------------------------------------------

def _positional_encoding(num_steps, num_hiddens):
    pos = jnp.arange(num_steps, dtype=jnp.float32)[:, None]
    freq = jnp.power(jnp.float32(10000.0),
                     jnp.arange(0, num_hiddens, 2, dtype=jnp.float32) / num_hiddens)
    pv = pos / freq
    p = jnp.zeros((num_steps, num_hiddens), jnp.float32)
    p = p.at[:, 0::2].set(jnp.sin(pv))
    p = p.at[:, 1::2].set(jnp.cos(pv))   # num_hiddens is even
    return p


def transformer_decoder_forward(tokens, enc_out, enc_valid_lens, params, *,
                                num_heads, num_layers):
    B, S = tokens.shape
    _, Se, H = enc_out.shape
    V = params["emb"].shape[0]
    d = H // num_heads
    N, Ne, G = B * S, B * Se, B * num_heads
    f32 = jnp.float32
    sds = jax.ShapeDtypeStruct

    tok = tokens.reshape(N, 1).astype(jnp.int32)
    pos = jnp.tile(_positional_encoding(S, H), (B, 1))                 # (N, H)
    enc_flat = enc_out.reshape(Ne, H).astype(f32)
    # repeat_interleave(num_heads) of the encoder valid lens, one per head group
    vl_g = jnp.repeat(enc_valid_lens.astype(jnp.int32), num_heads).reshape(G, 1)

    # embedding * sqrt(H) + position encoding (dropout = identity at eval)
    x = _pcall(_embed_kernel, sds((N, H), f32), tok, params["emb"], pos)

    # encoder-side K/V projections for every layer's cross-attention, in one call
    kv_enc = _pcall(_stacked_proj_kernel, sds((2 * num_layers, Ne, H), f32),
                    enc_flat, params["w_kv_enc"])

    for l in range(num_layers):
        p = params["layers"][l]

        # ---- multi-head self attention (unmasked at inference) --------------------
        qkv = _pcall(_stacked_proj_kernel, sds((3, N, H), f32), x, p["w_qkv_self"])
        # exact replication of the module's head split: (B,S,H).reshape(B*heads, S, d)
        oh = _pcall(_self_attn_core_kernel, sds((G, S, d), f32),
                    qkv[0].reshape(G, S, d),
                    qkv[1].reshape(G, S, d),
                    qkv[2].reshape(G, S, d))
        y2, q2 = _pcall(_post_self_kernel, (sds((N, H), f32), sds((N, H), f32)),
                        oh.reshape(N, H), x, p["w_o_self"],
                        p["ln1_g"], p["ln1_b"], p["w_q_cross"])

        # ---- encoder/decoder cross attention (masked by encoder valid lens) -------
        o2h = _pcall(_cross_attn_core_kernel, sds((G, S, d), f32),
                     q2.reshape(G, S, d),
                     kv_enc[2 * l].reshape(G, Se, d),
                     kv_enc[2 * l + 1].reshape(G, Se, d),
                     vl_g)

        # ---- AddNorm2 + position-wise FFN + AddNorm3 -------------------------------
        x = _pcall(_post_cross_ffn_kernel, sds((N, H), f32),
                   o2h.reshape(N, H), y2, p["w_o_cross"], p["ln2_g"], p["ln2_b"],
                   p["ffn_w1"], p["ffn_b1"], p["ffn_w2"], p["ffn_b2"],
                   p["ln3_g"], p["ln3_b"])

    logits = _pcall(_logits_kernel, sds((N, V), f32), x, params["w_out"], params["b_out"])
    return logits.reshape(B, S, V)


# ----------------------------------------------------------------------------------
# Parameters (nn.Linear-style init, weights stored as (in_features, out_features)).
# ----------------------------------------------------------------------------------

def init_params(key, vocab_size, num_hiddens, num_heads, num_layers, ffn_hiddens):
    del num_heads  # head count does not change parameter shapes
    keys = list(jax.random.split(key, 4 + 12 * num_layers))
    ctr = [0]

    def nxt():
        k = keys[ctr[0]]
        ctr[0] += 1
        return k

    def linear(fan_in, fan_out, bias):
        bound = 1.0 / math.sqrt(fan_in)
        w = jax.random.uniform(nxt(), (fan_in, fan_out), jnp.float32, -bound, bound)
        if not bias:
            return w
        b = jax.random.uniform(nxt(), (1, fan_out), jnp.float32, -bound, bound)
        return w, b

    emb = jax.random.normal(nxt(), (vocab_size, num_hiddens), jnp.float32)

    ones = jnp.ones((1, num_hiddens), jnp.float32)
    zeros = jnp.zeros((1, num_hiddens), jnp.float32)

    layers = []
    for _ in range(num_layers):
        wq1 = linear(num_hiddens, num_hiddens, False)
        wk1 = linear(num_hiddens, num_hiddens, False)
        wv1 = linear(num_hiddens, num_hiddens, False)
        wo1 = linear(num_hiddens, num_hiddens, False)
        wq2 = linear(num_hiddens, num_hiddens, False)
        wk2 = linear(num_hiddens, num_hiddens, False)
        wv2 = linear(num_hiddens, num_hiddens, False)
        wo2 = linear(num_hiddens, num_hiddens, False)
        w1, b1 = linear(num_hiddens, ffn_hiddens, True)
        w2, b2 = linear(ffn_hiddens, num_hiddens, True)
        layers.append(dict(
            w_qkv_self=jnp.stack([wq1, wk1, wv1]), w_o_self=wo1,
            w_q_cross=wq2, w_k_cross=wk2, w_v_cross=wv2, w_o_cross=wo2,
            ln1_g=ones, ln1_b=zeros, ln2_g=ones, ln2_b=zeros, ln3_g=ones, ln3_b=zeros,
            ffn_w1=w1, ffn_b1=b1, ffn_w2=w2, ffn_b2=b2,
        ))

    w_out, b_out = linear(num_hiddens, vocab_size, True)
    w_kv_enc = jnp.stack(
        [m for lyr in layers for m in (lyr["w_k_cross"], lyr["w_v_cross"])])
    return dict(emb=emb, w_out=w_out, b_out=b_out, w_kv_enc=w_kv_enc, layers=layers)


# ----------------------------------------------------------------------------------
# Pure-JAX reference (mirrors the PyTorch module, eval mode).
# ----------------------------------------------------------------------------------

def reference_forward(tokens, enc_out, enc_valid_lens, params, *, num_heads, num_layers):
    emb = params["emb"][tokens]                                  # (B, S, H)
    B, S, H = emb.shape
    x = emb * math.sqrt(H) + _positional_encoding(S, H)[None]

    def mha(q_in, k_in, v_in, vlens, wq, wk, wv, wo):
        nq, nk = q_in.shape[1], k_in.shape[1]
        dd = H // num_heads
        q = (q_in @ wq).reshape(-1, nq, dd)
        k = (k_in @ wk).reshape(-1, nk, dd)
        v = (v_in @ wv).reshape(-1, nk, dd)
        s = jnp.einsum("gqd,gkd->gqk", q, k) / math.sqrt(dd)
        if vlens is not None:
            vl = jnp.repeat(vlens, num_heads)
            col = jnp.arange(nk)[None, None, :]
            s = jnp.where(col >= vl[:, None, None], jnp.float32(-1000000.0), s)
        a = jax.nn.softmax(s, axis=-1)
        o = jnp.einsum("gqk,gkd->gqd", a, v).reshape(B, nq, H)
        return o @ wo

    def ln(z, g, b):
        mu = jnp.mean(z, axis=-1, keepdims=True)
        var = jnp.mean((z - mu) ** 2, axis=-1, keepdims=True)
        return (z - mu) / jnp.sqrt(var + 1e-5) * g + b

    for l in range(num_layers):
        p = params["layers"][l]
        wq1, wk1, wv1 = p["w_qkv_self"][0], p["w_qkv_self"][1], p["w_qkv_self"][2]
        y = mha(x, x, x, None, wq1, wk1, wv1, p["w_o_self"])
        y2 = ln(y + x, p["ln1_g"], p["ln1_b"])
        y3 = mha(y2, enc_out, enc_out, enc_valid_lens,
                 p["w_q_cross"], p["w_k_cross"], p["w_v_cross"], p["w_o_cross"])
        y4 = ln(y3 + y2, p["ln2_g"], p["ln2_b"])
        y5 = jnp.maximum(y4 @ p["ffn_w1"] + p["ffn_b1"], 0.0) @ p["ffn_w2"] + p["ffn_b2"]
        x = ln(y5 + y4, p["ln3_g"], p["ln3_b"])
    return x @ params["w_out"] + params["b_out"]


# ----------------------------------------------------------------------------------
# Demo / self-check
# ----------------------------------------------------------------------------------

if __name__ == "__main__":
    B, S, Se = 2, 8, 8
    num_hiddens, num_heads, num_layers = 32, 4, 2
    ffn_hiddens, vocab_size = 64, 128          # vocab = 128 -> lane-dense output store

    root = jax.random.PRNGKey(0)
    k_tok, k_enc, k_par = jax.random.split(root, 3)
    tokens = jax.random.randint(k_tok, (B, S), 0, vocab_size, dtype=jnp.int32)
    enc_out = jax.random.normal(k_enc, (B, Se, num_hiddens), jnp.float32)
    enc_valid_lens = jnp.array([5, 8], dtype=jnp.int32)

    params = init_params(k_par, vocab_size, num_hiddens, num_heads, num_layers,
                         ffn_hiddens)

    @jax.jit
    def fwd(tok, enc, vlens, prm):
        return transformer_decoder_forward(tok, enc, vlens, prm,
                                           num_heads=num_heads, num_layers=num_layers)

    logits = jax.block_until_ready(fwd(tokens, enc_out, enc_valid_lens, params))

    ref = reference_forward(tokens, enc_out, enc_valid_lens, params,
                            num_heads=num_heads, num_layers=num_layers)

    assert logits.shape == (B, S, vocab_size)
    assert jnp.allclose(logits, ref, atol=1e-2, rtol=1e-2), \
        "mismatch vs pure-JAX reference"
    print("KERNEL_OK")
</pallas_src>

<mosaic_0001>
module attributes {stable_mosaic.version = 11 : i64} {
  func.func @_embed_kernel(%arg0: memref<16x1xi32, #tpu.memory_space<vmem>>, %arg1: memref<128x32xf32, #tpu.memory_space<vmem>>, %arg2: memref<16x32xf32, #tpu.memory_space<vmem>>, %arg3: memref<16x32xf32, #tpu.memory_space<vmem>>) attributes {dimension_semantics = [], scalar_prefetch = 0 : i64, scratch_operands = 0 : i64, tpu.core_type = #tpu.core_type<tc>} {
    %0 = tpu.iota {dimensions = array<i32: 1>} : vector<16x128xi32>
    %c0 = arith.constant 0 : index
    %c0_0 = arith.constant 0 : index
    %1 = vector.load %arg0[%c0, %c0_0] : memref<16x1xi32, #tpu.memory_space<vmem>>, vector<16x1xi32>
    %2 = vector.broadcast %1 : vector<16x1xi32> to vector<16x128xi32>
    %3 = arith.cmpi eq, %0, %2 : vector<16x128xi32>
    %4 = arith.extui %3 : vector<16x128xi1> to vector<16x128xi32>
    %5 = arith.sitofp %4 : vector<16x128xi32> to vector<16x128xf32>
    %c0_1 = arith.constant 0 : index
    %c0_2 = arith.constant 0 : index
    %6 = vector.load %arg1[%c0_1, %c0_2] : memref<128x32xf32, #tpu.memory_space<vmem>>, vector<128x32xf32>
    %cst = arith.constant dense<0.000000e+00> : vector<16x32xf32>
    %7 = tpu.matmul %5, %6, %cst {dimension_numbers = #tpu.dot_dimension_numbers<[1], [0], [0], [1], [0, 0, 1, 1], [], []>, precision = #tpu.contract_precision<fp32>} : vector<16x128xf32>, vector<128x32xf32>, vector<16x32xf32> -> vector<16x32xf32>
    %cst_3 = arith.constant 5.65685415 : f32
    %8 = vector.broadcast %cst_3 : f32 to vector<16x32xf32>
    %9 = arith.mulf %7, %8 : vector<16x32xf32>
    %c0_4 = arith.constant 0 : index
    %c0_5 = arith.constant 0 : index
    %10 = vector.load %arg2[%c0_4, %c0_5] : memref<16x32xf32, #tpu.memory_space<vmem>>, vector<16x32xf32>
    %11 = arith.addf %9, %10 : vector<16x32xf32>
    %c0_6 = arith.constant 0 : index
    %c0_7 = arith.constant 0 : index
    %12 = vector.load %arg3[%c0_6, %c0_7] : memref<16x32xf32, #tpu.memory_space<vmem>>, vector<16x32xf32>
    tpu.vector_store %arg3[%c0_6, %c0_7], %11 {strides = array<i32>} : memref<16x32xf32, #tpu.memory_space<vmem>>, vector<16x32xf32>,
    return
  }
}

module attributes {stable_mosaic.version = 11 : i64} {
  func.func @_stacked_proj_kernel(%arg0: memref<16x32xf32, #tpu.memory_space<vmem>>, %arg1: memref<3x32x32xf32, #tpu.memory_space<vmem>>, %arg2: memref<3x16x32xf32, #tpu.memory_space<vmem>>) attributes {dimension_semantics = [], scalar_prefetch = 0 : i64, scratch_operands = 0 : i64, tpu.core_type = #tpu.core_type<tc>} {
    %c0 = arith.constant 0 : index
    %c0_0 = arith.constant 0 : index
    %0 = vector.load %arg0[%c0, %c0_0] : memref<16x32xf32, #tpu.memory_space<vmem>>, vector<16x32xf32>
    %c0_1 = arith.constant 0 : index
    %c0_2 = arith.constant 0 : index
    %c0_3 = arith.constant 0 : index
    %1 = vector.load %arg1[%c0_1, %c0_2, %c0_3] : memref<3x32x32xf32, #tpu.memory_space<vmem>>, vector<1x32x32xf32>
    %2 = vector.shape_cast %1 : vector<1x32x32xf32> to vector<32x32xf32>
    %cst = arith.constant dense<0.000000e+00> : vector<16x32xf32>
    %3 = tpu.matmul %0, %2, %cst {dimension_numbers = #tpu.dot_dimension_numbers<[1], [0], [0], [1], [0, 0, 1, 1], [], []>, precision = #tpu.contract_precision<fp32>} : vector<16x32xf32>, vector<32x32xf32>, vector<16x32xf32> -> vector<16x32xf32>
    %c0_4 = arith.constant 0 : index
    %c0_5 = arith.constant 0 : index
    %c0_6 = arith.constant 0 : index
    %4 = vector.load %arg2[%c0_4, %c0_5, %c0_6] : memref<3x16x32xf32, #tpu.memory_space<vmem>>, vector<1x16x32xf32>
    %5 = vector.shape_cast %4 : vector<1x16x32xf32> to vector<16x32xf32>
    %6 = vector.shape_cast %3 : vector<16x32xf32> to vector<1x16x32xf32>
    tpu.vector_store %arg2[%c0_4, %c0_5, %c0_6], %6 {strides = array<i32>} : memref<3x16x32xf32, #tpu.memory_space<vmem>>, vector<1x16x32xf32>,
    %c1 = arith.constant 1 : index
    %c0_7 = arith.constant 0 : index
    %c0_8 = arith.constant 0 : index
    %7 = vector.load %arg1[%c1, %c0_7, %c0_8] : memref<3x32x32xf32, #tpu.memory_space<vmem>>, vector<1x32x32xf32>
    %8 = vector.shape_cast %7 : vector<1x32x32xf32> to vector<32x32xf32>
    %cst_9 = arith.constant dense<0.000000e+00> : vector<16x32xf32>
    %9 = tpu.matmul %0, %8, %cst_9 {dimension_numbers = #tpu.dot_dimension_numbers<[1], [0], [0], [1], [0, 0, 1, 1], [], []>, precision = #tpu.contract_precision<fp32>} : vector<16x32xf32>, vector<32x32xf32>, vector<16x32xf32> -> vector<16x32xf32>
    %c1_10 = arith.constant 1 : index
    %c0_11 = arith.constant 0 : index
    %c0_12 = arith.constant 0 : index
    %10 = vector.load %arg2[%c1_10, %c0_11, %c0_12] : memref<3x16x32xf32, #tpu.memory_space<vmem>>, vector<1x16x32xf32>
    %11 = vector.shape_cast %10 : vector<1x16x32xf32> to vector<16x32xf32>
    %12 = vector.shape_cast %9 : vector<16x32xf32> to vector<1x16x32xf32>
    tpu.vector_store %arg2[%c1_10, %c0_11, %c0_12], %12 {strides = array<i32>} : memref<3x16x32xf32, #tpu.memory_space<vmem>>, vector<1x16x32xf32>,
    %c2 = arith.constant 2 : index
    %c0_13 = arith.constant 0 : index
    %c0_14 = arith.constant 0 : index
    %13 = vector.load %arg1[%c2, %c0_13, %c0_14] : memref<3x32x32xf32, #tpu.memory_space<vmem>>, vector<1x32x32xf32>
    %14 = vector.shape_cast %13 : vector<1x32x32xf32> to vector<32x32xf32>
    %cst_15 = arith.constant dense<0.000000e+00> : vector<16x32xf32>
    %15 = tpu.matmul %0, %14, %cst_15 {dimension_numbers = #tpu.dot_dimension_numbers<[1], [0], [0], [1], [0, 0, 1, 1], [], []>, precision = #tpu.contract_precision<fp32>} : vector<16x32xf32>, vector<32x32xf32>, vector<16x32xf32> -> vector<16x32xf32>
    %c2_16 = arith.constant 2 : index
    %c0_17 = arith.constant 0 : index
    %c0_18 = arith.constant 0 : index
    %16 = vector.load %arg2[%c2_16, %c0_17, %c0_18] : memref<3x16x32xf32, #tpu.memory_space<vmem>>, vector<1x16x32xf32>
    %17 = vector.shape_cast %16 : vector<1x16x32xf32> to vector<16x32xf32>
    %18 = vector.shape_cast %15 : vector<16x32xf32> to vector<1x16x32xf32>
    tpu.vector_store %arg2[%c2_16, %c0_17, %c0_18], %18 {strides = array<i32>} : memref<3x16x32xf32, #tpu.memory_space<vmem>>, vector<1x16x32xf32>,
    return
  }
}

module attributes {stable_mosaic.version = 11 : i64} {
  func.func @_self_attn_core_kernel(%arg0: memref<8x8x8xf32, #tpu.memory_space<vmem>>, %arg1: memref<8x8x8xf32, #tpu.memory_space<vmem>>, %arg2: memref<8x8x8xf32, #tpu.memory_space<vmem>>, %arg3: memref<8x8x8xf32, #tpu.memory_space<vmem>>) attributes {dimension_semantics = [], scalar_prefetch = 0 : i64, scratch_operands = 0 : i64, tpu.core_type = #tpu.core_type<tc>} {
    %c0 = arith.constant 0 : index
    %c0_0 = arith.constant 0 : index
    %c0_1 = arith.constant 0 : index
    %0 = vector.load %arg0[%c0, %c0_0, %c0_1] : memref<8x8x8xf32, #tpu.memory_space<vmem>>, vector<8x8x8xf32>
    %c0_2 = arith.constant 0 : index
    %c0_3 = arith.constant 0 : index
    %c0_4 = arith.constant 0 : index
    %1 = vector.load %arg1[%c0_2, %c0_3, %c0_4] : memref<8x8x8xf32, #tpu.memory_space<vmem>>, vector<8x8x8xf32>
    %c0_5 = arith.constant 0 : index
    %c0_6 = arith.constant 0 : index
    %c0_7 = arith.constant 0 : index
    %2 = vector.load %arg2[%c0_5, %c0_6, %c0_7] : memref<8x8x8xf32, #tpu.memory_space<vmem>>, vector<8x8x8xf32>
    "tpu.trace_start"() <{level = 10 : i32, message = "gqd,gkd->gqk"}> : () -> ()
    %cst = arith.constant dense<0.000000e+00> : vector<8x8x8xf32>
    %3 = tpu.matmul %0, %1, %cst {dimension_numbers = #tpu.dot_dimension_numbers<[2], [2], [1], [1], [0, 0, 0, 1, 1, 1], [0], [0]>, precision = #tpu.contract_precision<fp32>} : vector<8x8x8xf32>, vector<8x8x8xf32>, vector<8x8x8xf32> -> vector<8x8x8xf32>
    "tpu.trace_stop"() : () -> ()
    %cst_8 = arith.constant 0.353553385 : f32
    %4 = vector.broadcast %cst_8 : f32 to vector<8x8x8xf32>
    %5 = arith.mulf %3, %4 : vector<8x8x8xf32>
    %cst_9 = arith.constant dense<0xFF800000> : vector<8x8xf32>
    %6 = vector.multi_reduction <maximumf>, %5, %cst_9 [2] : vector<8x8x8xf32> to vector<8x8xf32>
    %7 = vector.shape_cast %6 : vector<8x8xf32> to vector<8x8x1xf32>
    %8 = vector.broadcast %7 : vector<8x8x1xf32> to vector<8x8x8xf32>
    %9 = arith.subf %5, %8 : vector<8x8x8xf32>
    %10 = math.exp %9 : vector<8x8x8xf32>
    %cst_10 = arith.constant dense<0.000000e+00> : vector<8x8xf32>
    %11 = vector.multi_reduction <add>, %10, %cst_10 [2] : vector<8x8x8xf32> to vector<8x8xf32>
    %12 = vector.shape_cast %11 : vector<8x8xf32> to vector<8x8x1xf32>
    %13 = vector.broadcast %12 : vector<8x8x1xf32> to vector<8x8x8xf32>
    %14 = arith.divf %10, %13 : vector<8x8x8xf32>
    "tpu.trace_start"() <{level = 10 : i32, message = "gqk,gkd->gqd"}> : () -> ()
    %cst_11 = arith.constant dense<0.000000e+00> : vector<8x8x8xf32>
    %15 = tpu.matmul %14, %2, %cst_11 {dimension_numbers = #tpu.dot_dimension_numbers<[2], [1], [1], [2], [0, 0, 0, 1, 1, 2], [0], [0]>, precision = #tpu.contract_precision<fp32>} : vector<8x8x8xf32>, vector<8x8x8xf32>, vector<8x8x8xf32> -> vector<8x8x8xf32>
    "tpu.trace_stop"() : () -> ()
    %c0_12 = arith.constant 0 : index
    %c0_13 = arith.constant 0 : index
    %c0_14 = arith.constant 0 : index
    %16 = vector.load %arg3[%c0_12, %c0_13, %c0_14] : memref<8x8x8xf32, #tpu.memory_space<vmem>>, vector<8x8x8xf32>
    tpu.vector_store %arg3[%c0_12, %c0_13, %c0_14], %15 {strides = array<i32>} : memref<8x8x8xf32, #tpu.memory_space<vmem>>, vector<8x8x8xf32>,
    return
  }
}

module attributes {stable_mosaic.version = 11 : i64} {
  func.func @_post_self_kernel(%arg0: memref<16x32xf32, #tpu.memory_space<vmem>>, %arg1: memref<16x32xf32, #tpu.memory_space<vmem>>, %arg2: memref<32x32xf32, #tpu.memory_space<vmem>>, %arg3: memref<1x32xf32, #tpu.memory_space<vmem>>, %arg4: memref<1x32xf32, #tpu.memory_space<vmem>>, %arg5: memref<32x32xf32, #tpu.memory_space<vmem>>, %arg6: memref<16x32xf32, #tpu.memory_space<vmem>>, %arg7: memref<16x32xf32, #tpu.memory_space<vmem>>) attributes {dimension_semantics = [], scalar_prefetch = 0 : i64, scratch_operands = 0 : i64, tpu.core_type = #tpu.core_type<tc>} {
    %c0 = arith.constant 0 : index
    %c0_0 = arith.constant 0 : index
    %0 = vector.load %arg0[%c0, %c0_0] : memref<16x32xf32, #tpu.memory_space<vmem>>, vector<16x32xf32>
    %c0_1 = arith.constant 0 : index
    %c0_2 = arith.constant 0 : index
    %1 = vector.load %arg2[%c0_1, %c0_2] : memref<32x32xf32, #tpu.memory_space<vmem>>, vector<32x32xf32>
    %cst = arith.constant dense<0.000000e+00> : vector<16x32xf32>
    %2 = tpu.matmul %0, %1, %cst {dimension_numbers = #tpu.dot_dimension_numbers<[1], [0], [0], [1], [0, 0, 1, 1], [], []>, precision = #tpu.contract_precision<fp32>} : vector<16x32xf32>, vector<32x32xf32>, vector<16x32xf32> -> vector<16x32xf32>
    %c0_3 = arith.constant 0 : index
    %c0_4 = arith.constant 0 : index
    %3 = vector.load %arg1[%c0_3, %c0_4] : memref<16x32xf32, #tpu.memory_space<vmem>>, vector<16x32xf32>
    %4 = arith.addf %2, %3 : vector<16x32xf32>
    %c0_5 = arith.constant 0 : index
    %c0_6 = arith.constant 0 : index
    %5 = vector.load %arg3[%c0_5, %c0_6] : memref<1x32xf32, #tpu.memory_space<vmem>>, vector<1x32xf32>
    %c0_7 = arith.constant 0 : index
    %c0_8 = arith.constant 0 : index
    %6 = vector.load %arg4[%c0_7, %c0_8] : memref<1x32xf32, #tpu.memory_space<vmem>>, vector<1x32xf32>
    %cst_9 = arith.constant dense<0.000000e+00> : vector<16xf32>
    %7 = vector.multi_reduction <add>, %4, %cst_9 [1] : vector<16x32xf32> to vector<16xf32>
    %8 = vector.shape_cast %7 : vector<16xf32> to vector<16x1xf32>
    %cst_10 = arith.constant 3.200000e+01 : f32
    %9 = vector.broadcast %cst_10 : f32 to vector<16x1xf32>
    %10 = arith.divf %8, %9 : vector<16x1xf32>
    %11 = vector.broadcast %10 : vector<16x1xf32> to vector<16x32xf32>
    %12 = arith.subf %4, %11 : vector<16x32xf32>
    %13 = arith.mulf %12, %12 : vector<16x32xf32>
    %cst_11 = arith.constant dense<0.000000e+00> : vector<16xf32>
    %14 = vector.multi_reduction <add>, %13, %cst_11 [1] : vector<16x32xf32> to vector<16xf32>
    %15 = vector.shape_cast %14 : vector<16xf32> to vector<16x1xf32>
    %cst_12 = arith.constant 3.200000e+01 : f32
    %16 = vector.broadcast %cst_12 : f32 to vector<16x1xf32>
    %17 = arith.divf %15, %16 : vector<16x1xf32>
    %cst_13 = arith.constant 9.99999974E-6 : f32
    %18 = vector.broadcast %cst_13 : f32 to vector<16x1xf32>
    %19 = arith.addf %17, %18 : vector<16x1xf32>
    %20 = math.rsqrt %19 : vector<16x1xf32>
    %21 = vector.broadcast %20 : vector<16x1xf32> to vector<16x32xf32>
    %22 = arith.mulf %12, %21 : vector<16x32xf32>
    %23 = vector.broadcast %5 : vector<1x32xf32> to vector<16x32xf32>
    %24 = arith.mulf %22, %23 : vector<16x32xf32>
    %25 = vector.broadcast %6 : vector<1x32xf32> to vector<16x32xf32>
    %26 = arith.addf %24, %25 : vector<16x32xf32>
    %c0_14 = arith.constant 0 : index
    %c0_15 = arith.constant 0 : index
    %27 = vector.load %arg6[%c0_14, %c0_15] : memref<16x32xf32, #tpu.memory_space<vmem>>, vector<16x32xf32>
    tpu.vector_store %arg6[%c0_14, %c0_15], %26 {strides = array<i32>} : memref<16x32xf32, #tpu.memory_space<vmem>>, vector<16x32xf32>,
    %c0_16 = arith.constant 0 : index
    %c0_17 = arith.constant 0 : index
    %28 = vector.load %arg5[%c0_16, %c0_17] : memref<32x32xf32, #tpu.memory_space<vmem>>, vector<32x32xf32>
    %cst_18 = arith.constant dense<0.000000e+00> : vector<16x32xf32>
    %29 = tpu.matmul %26, %28, %cst_18 {dimension_numbers = #tpu.dot_dimension_numbers<[1], [0], [0], [1], [0, 0, 1, 1], [], []>, precision = #tpu.contract_precision<fp32>} : vector<16x32xf32>, vector<32x32xf32>, vector<16x32xf32> -> vector<16x32xf32>
    %c0_19 = arith.constant 0 : index
    %c0_20 = arith.constant 0 : index
    %30 = vector.load %arg7[%c0_19, %c0_20] : memref<16x32xf32, #tpu.memory_space<vmem>>, vector<16x32xf32>
    tpu.vector_store %arg7[%c0_19, %c0_20], %29 {strides = array<i32>} : memref<16x32xf32, #tpu.memory_space<vmem>>, vector<16x32xf32>,
    return
  }
}

module attributes {stable_mosaic.version = 11 : i64} {
  func.func @_stacked_proj_kernel(%arg0: memref<16x32xf32, #tpu.memory_space<vmem>>, %arg1: memref<4x32x32xf32, #tpu.memory_space<vmem>>, %arg2: memref<4x16x32xf32, #tpu.memory_space<vmem>>) attributes {dimension_semantics = [], scalar_prefetch = 0 : i64, scratch_operands = 0 : i64, tpu.core_type = #tpu.core_type<tc>} {
    %c0 = arith.constant 0 : index
    %c0_0 = arith.constant 0 : index
    %0 = vector.load %arg0[%c0, %c0_0] : memref<16x32xf32, #tpu.memory_space<vmem>>, vector<16x32xf32>
    %c0_1 = arith.constant 0 : index
    %c0_2 = arith.constant 0 : index
    %c0_3 = arith.constant 0 : index
    %1 = vector.load %arg1[%c0_1, %c0_2, %c0_3] : memref<4x32x32xf32, #tpu.memory_space<vmem>>, vector<1x32x32xf32>
    %2 = vector.shape_cast %1 : vector<1x32x32xf32> to vector<32x32xf32>
    %cst = arith.constant dense<0.000000e+00> : vector<16x32xf32>
    %3 = tpu.matmul %0, %2, %cst {dimension_numbers = #tpu.dot_dimension_numbers<[1], [0], [0], [1], [0, 0, 1, 1], [], []>, precision = #tpu.contract_precision<fp32>} : vector<16x32xf32>, vector<32x32xf32>, vector<16x32xf32> -> vector<16x32xf32>
    %c0_4 = arith.constant 0 : index
    %c0_5 = arith.constant 0 : index
    %c0_6 = arith.constant 0 : index
    %4 = vector.load %arg2[%c0_4, %c0_5, %c0_6] : memref<4x16x32xf32, #tpu.memory_space<vmem>>, vector<1x16x32xf32>
    %5 = vector.shape_cast %4 : vector<1x16x32xf32> to vector<16x32xf32>
    %6 = vector.shape_cast %3 : vector<16x32xf32> to vector<1x16x32xf32>
    tpu.vector_store %arg2[%c0_4, %c0_5, %c0_6], %6 {strides = array<i32>} : memref<4x16x32xf32, #tpu.memory_space<vmem>>, vector<1x16x32xf32>,
    %c1 = arith.constant 1 : index
    %c0_7 = arith.constant 0 : index
    %c0_8 = arith.constant 0 : index
    %7 = vector.load %arg1[%c1, %c0_7, %c0_8] : memref<4x32x32xf32, #tpu.memory_space<vmem>>, vector<1x32x32xf32>
    %8 = vector.shape_cast %7 : vector<1x32x32xf32> to vector<32x32xf32>
    %cst_9 = arith.constant dense<0.000000e+00> : vector<16x32xf32>
    %9 = tpu.matmul %0, %8, %cst_9 {dimension_numbers = #tpu.dot_dimension_numbers<[1], [0], [0], [1], [0, 0, 1, 1], [], []>, precision = #tpu.contract_precision<fp32>} : vector<16x32xf32>, vector<32x32xf32>, vector<16x32xf32> -> vector<16x32xf32>
    %c1_10 = arith.constant 1 : index
    %c0_11 = arith.constant 0 : index
    %c0_12 = arith.constant 0 : index
    %10 = vector.load %arg2[%c1_10, %c0_11, %c0_12] : memref<4x16x32xf32, #tpu.memory_space<vmem>>, vector<1x16x32xf32>
    %11 = vector.shape_cast %10 : vector<1x16x32xf32> to vector<16x32xf32>
    %12 = vector.shape_cast %9 : vector<16x32xf32> to vector<1x16x32xf32>
    tpu.vector_store %arg2[%c1_10, %c0_11, %c0_12], %12 {strides = array<i32>} : memref<4x16x32xf32, #tpu.memory_space<vmem>>, vector<1x16x32xf32>,
    %c2 = arith.constant 2 : index
    %c0_13 = arith.constant 0 : index
    %c0_14 = arith.constant 0 : index
    %13 = vector.load %arg1[%c2, %c0_13, %c0_14] : memref<4x32x32xf32, #tpu.memory_space<vmem>>, vector<1x32x32xf32>
    %14 = vector.shape_cast %13 : vector<1x32x32xf32> to vector<32x32xf32>
    %cst_15 = arith.constant dense<0.000000e+00> : vector<16x32xf32>
    %15 = tpu.matmul %0, %14, %cst_15 {dimension_numbers = #tpu.dot_dimension_numbers<[1], [0], [0], [1], [0, 0, 1, 1], [], []>, precision = #tpu.contract_precision<fp32>} : vector<16x32xf32>, vector<32x32xf32>, vector<16x32xf32> -> vector<16x32xf32>
    %c2_16 = arith.constant 2 : index
    %c0_17 = arith.constant 0 : index
    %c0_18 = arith.constant 0 : index
    %16 = vector.load %arg2[%c2_16, %c0_17, %c0_18] : memref<4x16x32xf32, #tpu.memory_space<vmem>>, vector<1x16x32xf32>
    %17 = vector.shape_cast %16 : vector<1x16x32xf32> to vector<16x32xf32>
    %18 = vector.shape_cast %15 : vector<16x32xf32> to vector<1x16x32xf32>
    tpu.vector_store %arg2[%c2_16, %c0_17, %c0_18], %18 {strides = array<i32>} : memref<4x16x32xf32, #tpu.memory_space<vmem>>, vector<1x16x32xf32>,
    %c3 = arith.constant 3 : index
    %c0_19 = arith.constant 0 : index
    %c0_20 = arith.constant 0 : index
    %19 = vector.load %arg1[%c3, %c0_19, %c0_20] : memref<4x32x32xf32, #tpu.memory_space<vmem>>, vector<1x32x32xf32>
    %20 = vector.shape_cast %19 : vector<1x32x32xf32> to vector<32x32xf32>
    %cst_21 = arith.constant dense<0.000000e+00> : vector<16x32xf32>
    %21 = tpu.matmul %0, %20, %cst_21 {dimension_numbers = #tpu.dot_dimension_numbers<[1], [0], [0], [1], [0, 0, 1, 1], [], []>, precision = #tpu.contract_precision<fp32>} : vector<16x32xf32>, vector<32x32xf32>, vector<16x32xf32> -> vector<16x32xf32>
    %c3_22 = arith.constant 3 : index
    %c0_23 = arith.constant 0 : index
    %c0_24 = arith.constant 0 : index
    %22 = vector.load %arg2[%c3_22, %c0_23, %c0_24] : memref<4x16x32xf32, #tpu.memory_space<vmem>>, vector<1x16x32xf32>
    %23 = vector.shape_cast %22 : vector<1x16x32xf32> to vector<16x32xf32>
    %24 = vector.shape_cast %21 : vector<16x32xf32> to vector<1x16x32xf32>
    tpu.vector_store %arg2[%c3_22, %c0_23, %c0_24], %24 {strides = array<i32>} : memref<4x16x32xf32, #tpu.memory_space<vmem>>, vector<1x16x32xf32>,
    return
  }
}

module attributes {stable_mosaic.version = 11 : i64} {
  func.func @_cross_attn_core_kernel(%arg0: memref<8x8x8xf32, #tpu.memory_space<vmem>>, %arg1: memref<8x8x8xf32, #tpu.memory_space<vmem>>, %arg2: memref<8x8x8xf32, #tpu.memory_space<vmem>>, %arg3: memref<8x1xi32, #tpu.memory_space<vmem>>, %arg4: memref<8x8x8xf32, #tpu.memory_space<vmem>>) attributes {dimension_semantics = [], scalar_prefetch = 0 : i64, scratch_operands = 0 : i64, tpu.core_type = #tpu.core_type<tc>} {
    %c0 = arith.constant 0 : index
    %c0_0 = arith.constant 0 : index
    %c0_1 = arith.constant 0 : index
    %0 = vector.load %arg0[%c0, %c0_0, %c0_1] : memref<8x8x8xf32, #tpu.memory_space<vmem>>, vector<8x8x8xf32>
    %c0_2 = arith.constant 0 : index
    %c0_3 = arith.constant 0 : index
    %c0_4 = arith.constant 0 : index
    %1 = vector.load %arg1[%c0_2, %c0_3, %c0_4] : memref<8x8x8xf32, #tpu.memory_space<vmem>>, vector<8x8x8xf32>
    %c0_5 = arith.constant 0 : index
    %c0_6 = arith.constant 0 : index
    %c0_7 = arith.constant 0 : index
    %2 = vector.load %arg2[%c0_5, %c0_6, %c0_7] : memref<8x8x8xf32, #tpu.memory_space<vmem>>, vector<8x8x8xf32>
    "tpu.trace_start"() <{level = 10 : i32, message = "gqd,gkd->gqk"}> : () -> ()
    %cst = arith.constant dense<0.000000e+00> : vector<8x8x8xf32>
    %3 = tpu.matmul %0, %1, %cst {dimension_numbers = #tpu.dot_dimension_numbers<[2], [2], [1], [1], [0, 0, 0, 1, 1, 1], [0], [0]>, precision = #tpu.contract_precision<fp32>} : vector<8x8x8xf32>, vector<8x8x8xf32>, vector<8x8x8xf32> -> vector<8x8x8xf32>
    "tpu.trace_stop"() : () -> ()
    %cst_8 = arith.constant 0.353553385 : f32
    %4 = vector.broadcast %cst_8 : f32 to vector<8x8x8xf32>
    %5 = arith.mulf %3, %4 : vector<8x8x8xf32>
    %6 = tpu.iota {dimensions = array<i32: 2>} : vector<8x8x8xi32>
    %c0_9 = arith.constant 0 : index
    %c0_10 = arith.constant 0 : index
    %7 = vector.load %arg3[%c0_9, %c0_10] : memref<8x1xi32, #tpu.memory_space<vmem>>, vector<8x1xi32>
    %8 = vector.shape_cast %7 : vector<8x1xi32> to vector<8x1x1xi32>
    %9 = vector.broadcast %8 : vector<8x1x1xi32> to vector<8x8x8xi32>
    %10 = arith.cmpi sge, %6, %9 : vector<8x8x8xi32>
    %cst_11 = arith.constant -1.000000e+06 : f32
    %11 = vector.broadcast %cst_11 : f32 to vector<8x8x8xf32>
    %12 = arith.select %10, %11, %5 : vector<8x8x8xi1>, vector<8x8x8xf32>
    %cst_12 = arith.constant dense<0xFF800000> : vector<8x8xf32>
    %13 = vector.multi_reduction <maximumf>, %12, %cst_12 [2] : vector<8x8x8xf32> to vector<8x8xf32>
    %14 = vector.shape_cast %13 : vector<8x8xf32> to vector<8x8x1xf32>
    %15 = vector.broadcast %14 : vector<8x8x1xf32> to vector<8x8x8xf32>
    %16 = arith.subf %12, %15 : vector<8x8x8xf32>
    %17 = math.exp %16 : vector<8x8x8xf32>
    %cst_13 = arith.constant dense<0.000000e+00> : vector<8x8xf32>
    %18 = vector.multi_reduction <add>, %17, %cst_13 [2] : vector<8x8x8xf32> to vector<8x8xf32>
    %19 = vector.shape_cast %18 : vector<8x8xf32> to vector<8x8x1xf32>
    %20 = vector.broadcast %19 : vector<8x8x1xf32> to vector<8x8x8xf32>
    %21 = arith.divf %17, %20 : vector<8x8x8xf32>
    "tpu.trace_start"() <{level = 10 : i32, message = "gqk,gkd->gqd"}> : () -> ()
    %cst_14 = arith.constant dense<0.000000e+00> : vector<8x8x8xf32>
    %22 = tpu.matmul %21, %2, %cst_14 {dimension_numbers = #tpu.dot_dimension_numbers<[2], [1], [1], [2], [0, 0, 0, 1, 1, 2], [0], [0]>, precision = #tpu.contract_precision<fp32>} : vector<8x8x8xf32>, vector<8x8x8xf32>, vector<8x8x8xf32> -> vector<8x8x8xf32>
    "tpu.trace_stop"() : () -> ()
    %c0_15 = arith.constant 0 : index
    %c0_16 = arith.constant 0 : index
    %c0_17 = arith.constant 0 : index
    %23 = vector.load %arg4[%c0_15, %c0_16, %c0_17] : memref<8x8x8xf32, #tpu.memory_space<vmem>>, vector<8x8x8xf32>
    tpu.vector_store %arg4[%c0_15, %c0_16, %c0_17], %22 {strides = array<i32>} : memref<8x8x8xf32, #tpu.memory_space<vmem>>, vector<8x8x8xf32>,
    return
  }
}

module attributes {stable_mosaic.version = 11 : i64} {
  func.func @_post_cross_ffn_kernel(%arg0: memref<16x32xf32, #tpu.memory_space<vmem>>, %arg1: memref<16x32xf32, #tpu.memory_space<vmem>>, %arg2: memref<32x32xf32, #tpu.memory_space<vmem>>, %arg3: memref<1x32xf32, #tpu.memory_space<vmem>>, %arg4: memref<1x32xf32, #tpu.memory_space<vmem>>, %arg5: memref<32x64xf32, #tpu.memory_space<vmem>>, %arg6: memref<1x64xf32, #tpu.memory_space<vmem>>, %arg7: memref<64x32xf32, #tpu.memory_space<vmem>>, %arg8: memref<1x32xf32, #tpu.memory_space<vmem>>, %arg9: memref<1x32xf32, #tpu.memory_space<vmem>>, %arg10: memref<1x32xf32, #tpu.memory_space<vmem>>, %arg11: memref<16x32xf32, #tpu.memory_space<vmem>>) attributes {dimension_semantics = [], scalar_prefetch = 0 : i64, scratch_operands = 0 : i64, tpu.core_type = #tpu.core_type<tc>} {
    %c0 = arith.constant 0 : index
    %c0_0 = arith.constant 0 : index
    %0 = vector.load %arg0[%c0, %c0_0] : memref<16x32xf32, #tpu.memory_space<vmem>>, vector<16x32xf32>
    %c0_1 = arith.constant 0 : index
    %c0_2 = arith.constant 0 : index
    %1 = vector.load %arg2[%c0_1, %c0_2] : memref<32x32xf32, #tpu.memory_space<vmem>>, vector<32x32xf32>
    %cst = arith.constant dense<0.000000e+00> : vector<16x32xf32>
    %2 = tpu.matmul %0, %1, %cst {dimension_numbers = #tpu.dot_dimension_numbers<[1], [0], [0], [1], [0, 0, 1, 1], [], []>, precision = #tpu.contract_precision<fp32>} : vector<16x32xf32>, vector<32x32xf32>, vector<16x32xf32> -> vector<16x32xf32>
    %c0_3 = arith.constant 0 : index
    %c0_4 = arith.constant 0 : index
    %3 = vector.load %arg1[%c0_3, %c0_4] : memref<16x32xf32, #tpu.memory_space<vmem>>, vector<16x32xf32>
    %4 = arith.addf %2, %3 : vector<16x32xf32>
    %c0_5 = arith.constant 0 : index
    %c0_6 = arith.constant 0 : index
    %5 = vector.load %arg3[%c0_5, %c0_6] : memref<1x32xf32, #tpu.memory_space<vmem>>, vector<1x32xf32>
    %c0_7 = arith.constant 0 : index
    %c0_8 = arith.constant 0 : index
    %6 = vector.load %arg4[%c0_7, %c0_8] : memref<1x32xf32, #tpu.memory_space<vmem>>, vector<1x32xf32>
    %cst_9 = arith.constant dense<0.000000e+00> : vector<16xf32>
    %7 = vector.multi_reduction <add>, %4, %cst_9 [1] : vector<16x32xf32> to vector<16xf32>
    %8 = vector.shape_cast %7 : vector<16xf32> to vector<16x1xf32>
    %cst_10 = arith.constant 3.200000e+01 : f32
    %9 = vector.broadcast %cst_10 : f32 to vector<16x1xf32>
    %10 = arith.divf %8, %9 : vector<16x1xf32>
    %11 = vector.broadcast %10 : vector<16x1xf32> to vector<16x32xf32>
    %12 = arith.subf %4, %11 : vector<16x32xf32>
    %13 = arith.mulf %12, %12 : vector<16x32xf32>
    %cst_11 = arith.constant dense<0.000000e+00> : vector<16xf32>
    %14 = vector.multi_reduction <add>, %13, %cst_11 [1] : vector<16x32xf32> to vector<16xf32>
    %15 = vector.shape_cast %14 : vector<16xf32> to vector<16x1xf32>
    %cst_12 = arith.constant 3.200000e+01 : f32
    %16 = vector.broadcast %cst_12 : f32 to vector<16x1xf32>
    %17 = arith.divf %15, %16 : vector<16x1xf32>
    %cst_13 = arith.constant 9.99999974E-6 : f32
    %18 = vector.broadcast %cst_13 : f32 to vector<16x1xf32>
    %19 = arith.addf %17, %18 : vector<16x1xf32>
    %20 = math.rsqrt %19 : vector<16x1xf32>
    %21 = vector.broadcast %20 : vector<16x1xf32> to vector<16x32xf32>
    %22 = arith.mulf %12, %21 : vector<16x32xf32>
    %23 = vector.broadcast %5 : vector<1x32xf32> to vector<16x32xf32>
    %24 = arith.mulf %22, %23 : vector<16x32xf32>
    %25 = vector.broadcast %6 : vector<1x32xf32> to vector<16x32xf32>
    %26 = arith.addf %24, %25 : vector<16x32xf32>
    %c0_14 = arith.constant 0 : index
    %c0_15 = arith.constant 0 : index
    %27 = vector.load %arg5[%c0_14, %c0_15] : memref<32x64xf32, #tpu.memory_space<vmem>>, vector<32x64xf32>
    %cst_16 = arith.constant dense<0.000000e+00> : vector<16x64xf32>
    %28 = tpu.matmul %26, %27, %cst_16 {dimension_numbers = #tpu.dot_dimension_numbers<[1], [0], [0], [1], [0, 0, 1, 1], [], []>, precision = #tpu.contract_precision<fp32>} : vector<16x32xf32>, vector<32x64xf32>, vector<16x64xf32> -> vector<16x64xf32>
    %c0_17 = arith.constant 0 : index
    %c0_18 = arith.constant 0 : index
    %29 = vector.load %arg6[%c0_17, %c0_18] : memref<1x64xf32, #tpu.memory_space<vmem>>, vector<1x64xf32>
    %30 = vector.broadcast %29 : vector<1x64xf32> to vector<16x64xf32>
    %31 = arith.addf %28, %30 : vector<16x64xf32>
    %cst_19 = arith.constant 0.000000e+00 : f32
    %32 = vector.broadcast %cst_19 : f32 to vector<16x64xf32>
    %33 = arith.maximumf %31, %32 : vector<16x64xf32>
    %c0_20 = arith.constant 0 : index
    %c0_21 = arith.constant 0 : index
    %34 = vector.load %arg7[%c0_20, %c0_21] : memref<64x32xf32, #tpu.memory_space<vmem>>, vector<64x32xf32>
    %cst_22 = arith.constant dense<0.000000e+00> : vector<16x32xf32>
    %35 = tpu.matmul %33, %34, %cst_22 {dimension_numbers = #tpu.dot_dimension_numbers<[1], [0], [0], [1], [0, 0, 1, 1], [], []>, precision = #tpu.contract_precision<fp32>} : vector<16x64xf32>, vector<64x32xf32>, vector<16x32xf32> -> vector<16x32xf32>
    %c0_23 = arith.constant 0 : index
    %c0_24 = arith.constant 0 : index
    %36 = vector.load %arg8[%c0_23, %c0_24] : memref<1x32xf32, #tpu.memory_space<vmem>>, vector<1x32xf32>
    %37 = vector.broadcast %36 : vector<1x32xf32> to vector<16x32xf32>
    %38 = arith.addf %35, %37 : vector<16x32xf32>
    %39 = arith.addf %38, %26 : vector<16x32xf32>
    %c0_25 = arith.constant 0 : index
    %c0_26 = arith.constant 0 : index
    %40 = vector.load %arg9[%c0_25, %c0_26] : memref<1x32xf32, #tpu.memory_space<vmem>>, vector<1x32xf32>
    %c0_27 = arith.constant 0 : index
    %c0_28 = arith.constant 0 : index
    %41 = vector.load %arg10[%c0_27, %c0_28] : memref<1x32xf32, #tpu.memory_space<vmem>>, vector<1x32xf32>
    %cst_29 = arith.constant dense<0.000000e+00> : vector<16xf32>
    %42 = vector.multi_reduction <add>, %39, %cst_29 [1] : vector<16x32xf32> to vector<16xf32>
    %43 = vector.shape_cast %42 : vector<16xf32> to vector<16x1xf32>
    %cst_30 = arith.constant 3.200000e+01 : f32
    %44 = vector.broadcast %cst_30 : f32 to vector<16x1xf32>
    %45 = arith.divf %43, %44 : vector<16x1xf32>
    %46 = vector.broadcast %45 : vector<16x1xf32> to vector<16x32xf32>
    %47 = arith.subf %39, %46 : vector<16x32xf32>
    %48 = arith.mulf %47, %47 : vector<16x32xf32>
    %cst_31 = arith.constant dense<0.000000e+00> : vector<16xf32>
    %49 = vector.multi_reduction <add>, %48, %cst_31 [1] : vector<16x32xf32> to vector<16xf32>
    %50 = vector.shape_cast %49 : vector<16xf32> to vector<16x1xf32>
    %cst_32 = arith.constant 3.200000e+01 : f32
    %51 = vector.broadcast %cst_32 : f32 to vector<16x1xf32>
    %52 = arith.divf %50, %51 : vector<16x1xf32>
    %cst_33 = arith.constant 9.99999974E-6 : f32
    %53 = vector.broadcast %cst_33 : f32 to vector<16x1xf32>
    %54 = arith.addf %52, %53 : vector<16x1xf32>
    %55 = math.rsqrt %54 : vector<16x1xf32>
    %56 = vector.broadcast %55 : vector<16x1xf32> to vector<16x32xf32>
    %57 = arith.mulf %47, %56 : vector<16x32xf32>
    %58 = vector.broadcast %40 : vector<1x32xf32> to vector<16x32xf32>
    %59 = arith.mulf %57, %58 : vector<16x32xf32>
    %60 = vector.broadcast %41 : vector<1x32xf32> to vector<16x32xf32>
    %61 = arith.addf %59, %60 : vector<16x32xf32>
    %c0_34 = arith.constant 0 : index
    %c0_35 = arith.constant 0 : index
    %62 = vector.load %arg11[%c0_34, %c0_35] : memref<16x32xf32, #tpu.memory_space<vmem>>, vector<16x32xf32>
    tpu.vector_store %arg11[%c0_34, %c0_35], %61 {strides = array<i32>} : memref<16x32xf32, #tpu.memory_space<vmem>>, vector<16x32xf32>,
    return
  }
}

module attributes {stable_mosaic.version = 11 : i64} {
  func.func @_logits_kernel(%arg0: memref<16x32xf32, #tpu.memory_space<vmem>>, %arg1: memref<32x128xf32, #tpu.memory_space<vmem>>, %arg2: memref<1x128xf32, #tpu.memory_space<vmem>>, %arg3: memref<16x128xf32, #tpu.memory_space<vmem>>) attributes {dimension_semantics = [], scalar_prefetch = 0 : i64, scratch_operands = 0 : i64, tpu.core_type = #tpu.core_type<tc>} {
    %c0 = arith.constant 0 : index
    %c0_0 = arith.constant 0 : index
    %0 = vector.load %arg0[%c0, %c0_0] : memref<16x32xf32, #tpu.memory_space<vmem>>, vector<16x32xf32>
    %c0_1 = arith.constant 0 : index
    %c0_2 = arith.constant 0 : index
    %1 = vector.load %arg1[%c0_1, %c0_2] : memref<32x128xf32, #tpu.memory_space<vmem>>, vector<32x128xf32>
    %cst = arith.constant dense<0.000000e+00> : vector<16x128xf32>
    %2 = tpu.matmul %0, %1, %cst {dimension_numbers = #tpu.dot_dimension_numbers<[1], [0], [0], [1], [0, 0, 1, 1], [], []>, precision = #tpu.contract_precision<fp32>} : vector<16x32xf32>, vector<32x128xf32>, vector<16x128xf32> -> vector<16x128xf32>
    %c0_3 = arith.constant 0 : index
    %c0_4 = arith.constant 0 : index
    %3 = vector.load %arg2[%c0_3, %c0_4] : memref<1x128xf32, #tpu.memory_space<vmem>>, vector<1x128xf32>
    %4 = vector.broadcast %3 : vector<1x128xf32> to vector<16x128xf32>
    %5 = arith.addf %2, %4 : vector<16x128xf32>
    %c0_5 = arith.constant 0 : index
    %c0_6 = arith.constant 0 : index
    %6 = vector.load %arg3[%c0_5, %c0_6] : memref<16x128xf32, #tpu.memory_space<vmem>>, vector<16x128xf32>
    tpu.vector_store %arg3[%c0_5, %c0_6], %5 {strides = array<i32>} : memref<16x128xf32, #tpu.memory_space<vmem>>, vector<16x128xf32>,
    return
  }
}

</mosaic_0001>

<bundles_post_ra>
// kernel: squeeze.10
= control target key start
LH: loop header
LB: loop body
LE: loop exit
PB: predicated region body
PF: predicated region fallthrough
CT: control target
= control target key end

     0   :  { %vm3_vm0 = vcmask 64512   ;;  %s63_s8 = smov 112   ;;  %s64_s9 = smov 120   ;;  %s114_s0 = inlined_call_operand.vmem [shape: f32[1,16,32], index: 0, kind: input, shape index: {}]   ;;  %s115_s1 = inlined_call_operand.vmem [shape: f32[8,8,8], index: 1, kind: output, shape index: {}]  }
   0x1   :  { %v23_v0 = vld [vmem:[%s114_s0] sm:$0xff]   ;;  %v55_v1 = vld [vmem:[%s114_s0 + $0x8] sm:$0xff]   ;;  %s65_s13 = smov 104  }
   0x2   :  { %24 = vrot.lane.b32.xlu1 %v23_v0, %s63_s8  ;;  %11 = vrot.lane.b32.xlu0 %v23_v0, %s64_s9  ;;  %4 = vst.msk [vmem:[%s115_s1] ss:$4 sm:$0xff] %vm3_vm0, %v23_v0  }
   0x3   :  { %37 = vrot.lane.b32.xlu2 %v23_v0, %s65_s13  ;;  %50 = vst.msk [vmem:[%s115_s1 + $0x20] ss:$4 sm:$0xff] %vm3_vm0, %v55_v1  }
   0xa   :  { %31 = vrot.lane.b32.xlu1 %v55_v1, %s63_s8  ;;  %18 = vrot.lane.b32.xlu0 %v55_v1, %s64_s9 }
   0xb   :  { %44 = vrot.lane.b32.xlu2 %v55_v1, %s65_s13 }
  0x5d   :  { %v38_v2 = vpop.permute.xlu2 %37  }
  0x5e   :  { %57 = vst.msk [vmem:[%s115_s1 + $0x3] ss:$4 sm:$0xff] %vm3_vm0, %v38_v2  }
  0x65   :  { %v45_v3 = vpop.permute.xlu2 %44  }
  0x66   :  { %59 = vst.msk [vmem:[%s115_s1 + $0x23] ss:$4 sm:$0xff] %vm3_vm0, %v45_v3  }
  0x74   :  { %v25_v4 = vpop.permute.xlu1 %24   ;;  %v12_v5 = vpop.permute.xlu0 %11  }
  0x75   :  { %54 = vst.msk [vmem:[%s115_s1 + $0x2] ss:$4 sm:$0xff] %vm3_vm0, %v25_v4  }
  0x76   :  { %51 = vst.msk [vmem:[%s115_s1 + $0x1] ss:$4 sm:$0xff] %vm3_vm0, %v12_v5  }
  0x7c   :  { %v32_v6 = vpop.permute.xlu1 %31   ;;  %v19_v7 = vpop.permute.xlu0 %18  }
  0x7d   :  { %56 = vst.msk [vmem:[%s115_s1 + $0x22] ss:$4 sm:$0xff] %vm3_vm0, %v32_v6  }
  0x7e   :  { %53 = vst.msk [vmem:[%s115_s1 + $0x21] ss:$4 sm:$0xff] %vm3_vm0, %v19_v7  }

// kernel: fwd.15
= control target key start
LH: loop header
LB: loop body
LE: loop exit
PB: predicated region body
PF: predicated region fallthrough
CT: control target
= control target key end

     0   :  { %vm17_vm0 = vcmask 261120   ;;  %s989_s1 = inlined_call_operand.vmem [shape: f32[3,32,32], index: 1, kind: input, shape index: {}]   ;;  %s990_s0 = inlined_call_operand.vmem [shape: f32[16,32], index: 0, kind: input, shape index: {}]   ;;  %s991_s2 = inlined_call_operand.vmem [shape: f32[3,16,32], index: 2, kind: output, shape index: {}]  }
   0x1   :  { %v16_v0 = vld [vmem:[%s989_s1 + $0x18] sm:$0xff]  ;;  %v15_v1 = vld [vmem:[%s989_s1 + $0x10] sm:$0xff]  ;;  %v14_v2 = vld [vmem:[%s989_s1 + $0x8] sm:$0xff] }
   0x2   :  { %v738_v3 = vand.u32 4294901760, %v16_v0  ;;  %v740_v4 = vand.u32 4294901760, %v15_v1  ;;  %v742_v5 = vand.u32 4294901760, %v14_v2  ;;  %v13_v6 = vld [vmem:[%s989_s1] sm:$0xff]  ;;  %v12_v7 = vld [vmem:[%s990_s0 + $0x8] sm:$0xff]  ;;  %v697_v16 = vld [vmem:[%s989_s1 + $0x38] sm:$0xff] }
   0x3   :  { %v11_v8 = vld [vmem:[%s990_s0] sm:$0xff]  ;;  %v753_v9 = vand.u32 4294901760, %v13_v6  ;;  %v22_v10 = vsel %vm17_vm0, %v12_v7, 0  ;;  %v696_v23 = vld [vmem:[%s989_s1 + $0x30] sm:$0xff]  ;;  %v787_v26 = vand.u32 4294901760, %v697_v16  ;;  %v695_v33 = vld [vmem:[%s989_s1 + $0x28] sm:$0xff] }
   0x4   :  { %v19_v11 = vsel %vm17_vm0, %v11_v8, 0  ;;  %706 = vmatpush.msra.mxu2 %v738_v3  ;;  %v74_v12 = vsub.f32 %v16_v0, %v738_v3  ;;  %v759_v13 = vand.u32 4294901760, %v22_v10  ;;  %v80_v14 = vsub.f32 %v15_v1, %v740_v4  ;;  %37 = vmatpush.msra.mxu0 %v738_v3  ;;  %v694_v39 = vld [vmem:[%s989_s1 + $0x20] sm:$0xff]  ;;  %v703_v52 = vld [vmem:[%s989_s1 + $0x58] sm:$0xff]  ;;  %v702_v58 = vld [vmem:[%s989_s1 + $0x50] sm:$0xff] }
   0x5   :  { %v763_v15 = vsub.f32 %v14_v2, %v742_v5  ;;  %v770_v17 = vsub.f32 %v13_v6, %v753_v9  ;;  %v772_v18 = vand.u32 4294901760, %v19_v11  ;;  %v800_v32 = vand.u32 4294901760, %v696_v23  ;;  %v701_v61 = vld [vmem:[%s989_s1 + $0x48] sm:$0xff]  ;;  %v700_v2 = vld [vmem:[%s989_s1 + $0x40] sm:$0xff] }
   0x6   :  { %707 = vmatpush.msra.mxu2 %v740_v4  ;;  %v75_v19 = vand.u32 4294901760, %v74_v12  ;;  %v776_v20 = vsub.f32 %v22_v10, %v759_v13  ;;  %v81_v21 = vand.u32 4294901760, %v80_v14  ;;  %39 = vmatpush.msra.mxu0 %v740_v4  ;;  %v820_v42 = vsub.f32 %v697_v16, %v787_v26 }
   0x7   :  { %v87_v22 = vand.u32 4294901760, %v763_v15  ;;  %v93_v24 = vand.u32 4294901760, %v770_v17  ;;  %v785_v25 = vsub.f32 %v19_v11, %v772_v18  ;;  %v822_v43 = vand.u32 4294901760, %v695_v33 }
   0x8   :  { %708 = vmatpush.msra.mxu2 %v742_v5  ;;  %v76_v27 = vsub.f32 %v74_v12, %v75_v19  ;;  %v791_v28 = vand.u32 4294901760, %v776_v20  ;;  %v82_v29 = vsub.f32 %v80_v14, %v81_v21  ;;  %41 = vmatpush.msra.mxu0 %v742_v5  ;;  %v828_v46 = vsub.f32 %v696_v23, %v800_v32 }
   0x9   :  { %v88_v30 = vsub.f32 %v763_v15, %v87_v22  ;;  %v798_v31 = vand.u32 4294901760, %v785_v25  ;;  %v94_v37 = vsub.f32 %v770_v17, %v93_v24  ;;  %v830_v47 = vand.u32 4294901760, %v694_v39 }
   0xa   :  { %709 = vmatpush.msra.mxu2 %v753_v9  ;;  %v77_v34 = vand.u32 4294901760, %v76_v27  ;;  %v55_v35 = vsub.f32 %v776_v20, %v791_v28  ;;  %v83_v36 = vand.u32 4294901760, %v82_v29  ;;  %43 = vmatpush.msra.mxu0 %v753_v9  ;;  %v298_v48 = vand.u32 4294901760, %v820_v42 }
   0xb   :  { %v47_v38 = vsub.f32 %v785_v25, %v798_v31  ;;  %v89_v41 = vand.u32 4294901760, %v88_v30  ;;  %v95_v45 = vand.u32 4294901760, %v94_v37  ;;  %v836_v49 = vsub.f32 %v695_v33, %v822_v43 }
   0xc   :  { %120 = vmatpush.msrb.mxu2 %v74_v12  ;;  %189 = vmatpush.msrb.mxu0 %v75_v19  ;;  %v817_v40 = vand.u32 4294901760, %v55_v35  ;;  %v304_v50 = vand.u32 4294901760, %v828_v46  ;;  %v842_v51 = vsub.f32 %v694_v39, %v830_v47  ;;  %v299_v53 = vsub.f32 %v820_v42, %v298_v48 }
   0xd   :  { %710 = vmatpush.msra.mxu3 %v77_v34  ;;  %78 = vmatpush.msra.mxu1 %v77_v34  ;;  %v824_v44 = vand.u32 4294901760, %v47_v38  ;;  %v310_v54 = vand.u32 4294901760, %v836_v49  ;;  %v854_v55 = vand.u32 4294901760, %v703_v52  ;;  %v882_v63 = vand.u32 4294901760, %v702_v58 }
   0xe   :  { %123 = vmatpush.msrb.mxu2 %v80_v14  ;;  %193 = vmatpush.msrb.mxu0 %v81_v21  ;;  %v305_v56 = vsub.f32 %v828_v46, %v304_v50  ;;  %v316_v57 = vand.u32 4294901760, %v842_v51  ;;  %v300_v59 = vand.u32 4294901760, %v299_v53  ;;  %v901_v7 = vand.u32 4294901760, %v700_v2 }
   0xf   :  { %57 = vmatmul.f32.vlgmr.msra.gmra.mxu2 %v817_v40  ;;  %711 = vmatpush.msra.mxu3 %v83_v36  ;;  %v311_v60 = vsub.f32 %v836_v49, %v310_v54  ;;  %v880_v62 = vsub.f32 %v703_v52, %v854_v55  ;;  %v899_v6 = vsub.f32 %v702_v58, %v882_v63 }
  0x10   :  { %126 = vmatpush.msrb.mxu2 %v763_v15  ;;  %84 = vmatpush.msra.mxu1 %v83_v36  ;;  %v306_v0 = vand.u32 4294901760, %v305_v56  ;;  %v317_v1 = vsub.f32 %v842_v51, %v316_v57  ;;  %v539_v12 = vsub.f32 %v700_v2, %v901_v7 }
  0x11   :  { %712 = vmatpush.msra.mxu3 %v89_v41  ;;  %49 = vmatmul.f32.vlgmr.msra.gmra.mxu0 %v824_v44  ;;  %v528_v11 = vand.u32 4294901760, %v899_v6 }
  0x12   :  { %129 = vmatpush.msrb.mxu2 %v770_v17  ;;  %90 = vmatpush.msra.mxu1 %v89_v41  ;;  %v318_v8 = vand.u32 4294901760, %v317_v1  ;;  %v540_v17 = vand.u32 4294901760, %v539_v12 }
  0x13   :  { %713 = vmatpush.msra.mxu3 %v95_v45  ;;  %197 = vmatpush.msrb.mxu0 %v87_v22  ;;  %v529_v16 = vsub.f32 %v899_v6, %v528_v11 }
  0x14   :  { %260 = vmatpush.msra.mxu2 %v787_v26  ;;  %102 = vmatmul.f32.vlgmr.msra.gmra.mxu3 %v759_v13  ;;  %v541_v22 = vsub.f32 %v539_v12, %v540_v17 }
  0x15   :  { %96 = vmatpush.msra.mxu1 %v95_v45  ;;  %154 = vmatpush.msrb.mxu3 %v738_v3  ;;  %v530_v21 = vand.u32 4294901760, %v529_v16 }
  0x16   :  { %98 = vmatmul.f32.vlgmr.msra.gmra.mxu1 %v772_v18  ;;  %262 = vmatpush.msra.mxu2 %v800_v32 }
  0x17   :  { %224 = vmatpush.msrb.mxu1 %v738_v3  ;;  %132 = vmatmul.f32.vlgmr.msrb.gmra.mxu2 %v785_v25  ;;  %v892_v3 = vand.u32 4294901760, %v701_v61 }
  0x18   :  { %156 = vmatpush.msrb.mxu3 %v740_v4  ;;  %264 = vmatpush.msra.mxu2 %v822_v43 }
  0x19   :  { %226 = vmatpush.msrb.mxu1 %v740_v4  ;;  %201 = vmatpush.msrb.mxu0 %v93_v24  ;;  %v312_v4 = vand.u32 4294901760, %v311_v60  ;;  %v542_v24 = vand.u32 4294901760, %v541_v22 }
  0x1a   :  { %158 = vmatpush.msrb.mxu3 %v742_v5  ;;  %203 = vmatmul.f32.vlgmr.msrb.gmra.mxu0 %v772_v18 }
  0x1b   :  { %228 = vmatpush.msrb.mxu1 %v742_v5  ;;  %343 = vmatpush.msra.mxu0 %v820_v42  ;;  %v522_v5 = vand.u32 4294901760, %v880_v62 }
  0x1c   :  { %160 = vmatpush.msrb.mxu3 %v753_v9  ;;  %266 = vmatpush.msra.mxu2 %v830_v47 }
  0x1d   :  { %164 = vmatmul.f32.vlgmr.msrb.gmra.mxu3 %v798_v31  ;;  %230 = vmatpush.msrb.mxu1 %v753_v9  ;;  %v533_v9 = vsub.f32 %v701_v61, %v892_v3  ;;  %v523_v10 = vsub.f32 %v880_v62, %v522_v5 }
  0x1e   :  { %301 = vmatpush.msra.mxu3 %v300_v59  ;;  %232 = vmatmul.f32.vlgmr.msrb.gmra.mxu1 %v772_v18 }
  0x1f   :  { %137 = vmatmul.f32.gmra.mxu2 %v776_v20  ;;  %377 = vmatpush.msra.mxu1 %v787_v26  ;;  %v534_v14 = vand.u32 4294901760, %v533_v9  ;;  %v524_v15 = vand.u32 4294901760, %v523_v10 }
  0x20   :  { %307 = vmatpush.msra.mxu3 %v306_v0  ;;  %346 = vmatpush.msra.mxu0 %v828_v46 }
  0x21   :  { %412 = vmatpush.msrb.mxu2 %v298_v48  ;;  %379 = vmatpush.msra.mxu1 %v800_v32  ;;  %v535_v19 = vsub.f32 %v533_v9, %v534_v14 }
  0x22   :  { %313 = vmatpush.msra.mxu3 %v312_v4  ;;  %349 = vmatpush.msra.mxu0 %v836_v49 }
  0x23   :  { %207 = vmatmul.f32.gmra.mxu0 %v759_v13  ;;  %381 = vmatpush.msra.mxu1 %v822_v43  ;;  %v536_v23 = vand.u32 4294901760, %v535_v19 }
  0x24   :  { %319 = vmatpush.msra.mxu3 %v318_v8  ;;  %416 = vmatpush.msrb.mxu2 %v304_v50 }
  0x25   :  { %170 = vmatmul.f32.gmra.mxu3 %v791_v28  ;;  %352 = vmatpush.msra.mxu0 %v842_v51 }
  0x26   :  { %236 = vmatmul.f32.gmra.mxu1 %v759_v13  ;;  %447 = vmatpush.msrb.mxu3 %v787_v26 }
  0x27   :  { %272 = vmatmul.f32.vlgmr.msra.gmra.mxu2 %v824_v44  ;;  %383 = vmatpush.msra.mxu1 %v830_v47 }
  0x28   :  { %449 = vmatpush.msrb.mxu3 %v800_v32  ;;  %420 = vmatpush.msrb.mxu2 %v310_v54 }
  0x29   :  { %484 = vmatpush.msrb.mxu0 %v854_v55  ;;  %525 = vmatpush.msrb.mxu1 %v524_v15 }
  0x2a   :  { %451 = vmatpush.msrb.mxu3 %v822_v43  ;;  %424 = vmatpush.msrb.mxu2 %v316_v57 }
  0x2b   :  { %355 = vmatmul.f32.vlgmr.msra.gmra.mxu0 %v785_v25  ;;  %531 = vmatpush.msrb.mxu1 %v530_v21 }
  0x2c   :  { %453 = vmatpush.msrb.mxu3 %v830_v47  ;;  %486 = vmatpush.msrb.mxu0 %v882_v63 }
  0x2d   :  { %321 = vmatmul.f32.vlgmr.msra.gmra.mxu3 %v772_v18  ;;  %567 = vmatpush.msra.mxu2 %v880_v62 }
  0x2e   :  { %387 = vmatmul.f32.vlgmr.msra.gmra.mxu1 %v798_v31  ;;  %488 = vmatpush.msrb.mxu0 %v892_v3 }
  0x2f   :  { %280 = vmatmul.f32.gmra.mxu2 %v817_v40  ;;  %601 = vmatpush.msra.mxu3 %v854_v55 }
  0x30   :  { %537 = vmatpush.msrb.mxu1 %v536_v23  ;;  %570 = vmatpush.msra.mxu2 %v899_v6 }
  0x31   :  { %490 = vmatpush.msrb.mxu0 %v901_v7  ;;  %603 = vmatpush.msra.mxu3 %v882_v63 }
  0x32   :  { %543 = vmatpush.msrb.mxu1 %v542_v24  ;;  %573 = vmatpush.msra.mxu2 %v533_v9 }
  0x33   :  { %360 = vmatmul.f32.gmra.mxu0 %v776_v20  ;;  %605 = vmatpush.msra.mxu3 %v892_v3 }
  0x34   :  { %636 = vmatpush.msra.mxu0 %v522_v5  ;;  %576 = vmatpush.msra.mxu2 %v539_v12 }
  0x35   :  { %325 = vmatmul.f32.gmra.mxu3 %v759_v13  ;;  %671 = vmatpush.msra.mxu1 %v854_v55 }
  0x36   :  { %393 = vmatmul.f32.gmra.mxu1 %v791_v28  ;;  %607 = vmatpush.msra.mxu3 %v901_v7 }
  0x37   :  { %426 = vmatmul.f32.vlgmr.msrb.gmra.mxu2 %v772_v18  ;;  %640 = vmatpush.msra.mxu0 %v528_v11 }
  0x38   :  { %673 = vmatpush.msra.mxu1 %v882_v63 }
  0x39   :  { %644 = vmatpush.msra.mxu0 %v534_v14 }
  0x3a   :  { %675 = vmatpush.msra.mxu1 %v892_v3 }
  0x3b   :  { %496 = vmatmul.f32.vlgmr.msrb.gmra.mxu0 %v824_v44 }
  0x3c   :  { %648 = vmatpush.msra.mxu0 %v540_v17  ;;  %677 = vmatpush.msra.mxu1 %v901_v7 }
  0x3d   :  { %455 = vmatmul.f32.vlgmr.msrb.gmra.mxu3 %v772_v18 }
  0x3e   :  { %545 = vmatmul.f32.vlgmr.msrb.gmra.mxu1 %v772_v18 }
  0x3f   :  { %430 = vmatmul.f32.gmra.mxu2 %v759_v13 }
  0x43   :  { %504 = vmatmul.f32.gmra.mxu0 %v817_v40 }
  0x45   :  { %459 = vmatmul.f32.gmra.mxu3 %v759_v13 }
  0x46   :  { %549 = vmatmul.f32.gmra.mxu1 %v759_v13 }
  0x47   :  { %579 = vmatmul.f32.vlgmr.msra.gmra.mxu2 %v785_v25 }
  0x4b   :  { %650 = vmatmul.f32.vlgmr.msra.gmra.mxu0 %v772_v18 }
  0x4d   :  { %611 = vmatmul.f32.vlgmr.msra.gmra.mxu3 %v798_v31 }
  0x4e   :  { %679 = vmatmul.f32.vlgmr.msra.gmra.mxu1 %v772_v18 }
  0x4f   :  { %584 = vmatmul.f32.gmra.mxu2 %v776_v20 }
  0x53   :  { %654 = vmatmul.f32.gmra.mxu0 %v759_v13 }
  0x55   :  { %617 = vmatmul.f32.gmra.mxu3 %v791_v28 }
  0x56   :  { %683 = vmatmul.f32.gmra.mxu1 %v759_v13 }
  0x8e   :  { %v50_v26 = vpop.f32.mrf.mxu0 }
  0x92   :  { %v58_v27 = vpop.f32.mrf.mxu2 }
  0x93   :  { %v99_v29 = vpop.f32.mrf.mxu1 }
  0x94   :  { %v100_v25 = vadd.f32 %v99_v29, %v50_v26 }
  0x97   :  { %v103_v30 = vpop.f32.mrf.mxu3  ;;  %v204_v32 = vpop.f32.mrf.mxu0 }
  0x98   :  { %v104_v39 = vadd.f32 %v103_v30, %v58_v27 }
  0x9a   :  { %v133_v33 = vpop.f32.mrf.mxu2 }
  0x9b   :  { %v233_v34 = vpop.f32.mrf.mxu1  ;;  %v134_v35 = vadd.f32 %v133_v33, %v100_v25 }
  0xa0   :  { %v165_v31 = vpop.f32.mrf.mxu3  ;;  %v208_v18 = vpop.f32.mrf.mxu0 }
  0xa1   :  { %v166_v36 = vadd.f32 %v165_v31, %v134_v35 }
  0xa2   :  { %v138_v37 = vpop.f32.mrf.mxu2 }
  0xa3   :  { %v205_v20 = vadd.f32 %v204_v32, %v166_v36  ;;  %v237_v38 = vpop.f32.mrf.mxu1  ;;  %v139_v28 = vadd.f32 %v138_v37, %v104_v39 }
  0xa5   :  { %v234_v40 = vadd.f32 %v233_v34, %v205_v20 }
  0xa7   :  { %240 = vst.msk [vmem:[%s991_s2] sm:$0xff] %vm17_vm0, %v234_v40 }
  0xa8   :  { %v171_v13 = vpop.f32.mrf.mxu3  ;;  %v356_v42 = vpop.f32.mrf.mxu0 }
  0xa9   :  { %v172_v41 = vadd.f32 %v171_v13, %v139_v28 }
  0xaa   :  { %v273_v44 = vpop.f32.mrf.mxu2 }
  0xab   :  { %v209_v43 = vadd.f32 %v208_v18, %v172_v41  ;;  %v388_v45 = vpop.f32.mrf.mxu1 }
  0xad   :  { %v238_v46 = vadd.f32 %v237_v38, %v209_v43 }
  0xaf   :  { %241 = vst.msk [vmem:[%s991_s2 + $0x8] sm:$0xff] %vm17_vm0, %v238_v46 }
  0xb0   :  { %v322_v47 = vpop.f32.mrf.mxu3  ;;  %v361_v48 = vpop.f32.mrf.mxu0 }
  0xb1   :  { %v323_v51 = vadd.f32 %v322_v47, %v273_v44 }
  0xb2   :  { %v281_v49 = vpop.f32.mrf.mxu2 }
  0xb3   :  { %v394_v50 = vpop.f32.mrf.mxu1  ;;  %v357_v53 = vadd.f32 %v356_v42, %v323_v51 }
  0xb5   :  { %v389_v56 = vadd.f32 %v388_v45, %v357_v53 }
  0xb8   :  { %v326_v52 = vpop.f32.mrf.mxu3  ;;  %v497_v54 = vpop.f32.mrf.mxu0 }
  0xb9   :  { %v327_v57 = vadd.f32 %v326_v52, %v281_v49 }
  0xba   :  { %v427_v55 = vpop.f32.mrf.mxu2 }
  0xbb   :  { %v546_v58 = vpop.f32.mrf.mxu1  ;;  %v428_v59 = vadd.f32 %v427_v55, %v389_v56  ;;  %v362_v61 = vadd.f32 %v361_v48, %v327_v57 }
  0xbc   :  { %v547_v7 = vadd.f32 %v546_v58, %v497_v54 }
  0xbd   :  { %v395_v1 = vadd.f32 %v394_v50, %v362_v61 }
  0xc0   :  { %v456_v60 = vpop.f32.mrf.mxu3  ;;  %v505_v0 = vpop.f32.mrf.mxu0 }
  0xc1   :  { %v457_v62 = vadd.f32 %v456_v60, %v428_v59 }
  0xc2   :  { %v431_v63 = vpop.f32.mrf.mxu2 }
  0xc3   :  { %698 = vst.msk [vmem:[%s991_s2 + $0x10] sm:$0xff] %vm17_vm0, %v457_v62  ;;  %v432_v2 = vadd.f32 %v431_v63, %v395_v1  ;;  %v550_v4 = vpop.f32.mrf.mxu1 }
  0xc4   :  { %v551_v16 = vadd.f32 %v550_v4, %v505_v0 }
  0xc8   :  { %v460_v3 = vpop.f32.mrf.mxu3  ;;  %v651_v8 = vpop.f32.mrf.mxu0 }
  0xc9   :  { %v461_v5 = vadd.f32 %v460_v3, %v432_v2 }
  0xca   :  { %v580_v6 = vpop.f32.mrf.mxu2 }
  0xcb   :  { %699 = vst.msk [vmem:[%s991_s2 + $0x18] sm:$0xff] %vm17_vm0, %v461_v5  ;;  %v581_v9 = vadd.f32 %v580_v6, %v547_v7  ;;  %v680_v11 = vpop.f32.mrf.mxu1 }
  0xd0   :  { %v612_v10 = vpop.f32.mrf.mxu3  ;;  %v655_v22 = vpop.f32.mrf.mxu0 }
  0xd1   :  { %v613_v12 = vadd.f32 %v612_v10, %v581_v9 }
  0xd2   :  { %v585_v15 = vpop.f32.mrf.mxu2 }
  0xd3   :  { %v652_v14 = vadd.f32 %v651_v8, %v613_v12  ;;  %v586_v19 = vadd.f32 %v585_v15, %v551_v16  ;;  %v684_v24 = vpop.f32.mrf.mxu1 }
  0xd5   :  { %v681_v17 = vadd.f32 %v680_v11, %v652_v14 }
  0xd7   :  { %704 = vst.msk [vmem:[%s991_s2 + $0x20] sm:$0xff] %vm17_vm0, %v681_v17 }
  0xd8   :  { %v618_v21 = vpop.f32.mrf.mxu3 }
  0xd9   :  { %v619_v23 = vadd.f32 %v618_v21, %v586_v19 }
  0xdb   :  { %v656_v26 = vadd.f32 %v655_v22, %v619_v23 }
  0xdd   :  { %v685_v27 = vadd.f32 %v684_v24, %v656_v26 }
  0xdf   :  { %705 = vst.msk [vmem:[%s991_s2 + $0x28] sm:$0xff] %vm17_vm0, %v685_v27 }

// kernel: fwd.13
= control target key start
LH: loop header
LB: loop body
LE: loop exit
PB: predicated region body
PF: predicated region fallthrough
CT: control target
= control target key end

     0   :  { %v475_v0 = vmov 0   ;;  %vm424_vm2 = vcmask 261120   ;;  %s760_s0 = inlined_call_operand.vmem [shape: s32[16,1], index: 0, kind: input, shape index: {}]   ;;  %s761_s1 = inlined_call_operand.vmem [shape: f32[128,32], index: 1, kind: input, shape index: {}]   ;;  %s762_s2 = inlined_call_operand.vmem [shape: f32[16,32], index: 2, kind: input, shape index: {}]   ;;  %s763_s3 = inlined_call_operand.vmem [shape: f32[16,32], index: 3, kind: output, shape index: {}]  }
   0x1   :  { %474 = vset.pattern.permute.xlu0 %v475_v0  ;;  %v16_v1 = vld [vmem:[%s760_s0] sm:$0xff]  ;;  %v45_v2 = vld [vmem:[%s761_s1 + $0x78] sm:$0xff]  ;;  %v44_v4 = vld [vmem:[%s761_s1 + $0x70] sm:$0xff] }
   0x2   :  { %19 = vperm.xlu0 %474, %v16_v1   ;;  %v504_v3 = vand.u32 4294901760, %v45_v2  ;;  %v43_v5 = vld [vmem:[%s761_s1 + $0x68] sm:$0xff]  ;;  %v42_v6 = vld [vmem:[%s761_s1 + $0x60] sm:$0xff]  ;;  %v515_v7 = vand.u32 4294901760, %v44_v4  ;;  %v41_v10 = vld [vmem:[%s761_s1 + $0x58] sm:$0xff] }
   0x3   :  { %v517_v8 = vand.u32 4294901760, %v43_v5  ;;  %v519_v9 = vand.u32 4294901760, %v42_v6  ;;  %v40_v11 = vld [vmem:[%s761_s1 + $0x50] sm:$0xff]  ;;  %v39_v12 = vld [vmem:[%s761_s1 + $0x48] sm:$0xff]  ;;  %v532_v14 = vand.u32 4294901760, %v41_v10  ;;  %v38_v17 = vld [vmem:[%s761_s1 + $0x40] sm:$0xff] }
   0x4   :  { %v96_v13 = vsub.f32 %v45_v2, %v504_v3  ;;  %260 = vmatpush.msra.mxu3 %v504_v3  ;;  %47 = vmatpush.msra.mxu0 %v504_v3  ;;  %v535_v15 = vand.u32 4294901760, %v40_v11  ;;  %v537_v16 = vand.u32 4294901760, %v39_v12  ;;  %v102_v18 = vsub.f32 %v44_v4, %v515_v7  ;;  %v17_v25 = vld [vmem:[%s760_s0 + $0x8] sm:$0xff]  ;;  %v37_v35 = vld [vmem:[%s761_s1 + $0x38] sm:$0xff]  ;;  %v36_v39 = vld [vmem:[%s761_s1 + $0x30] sm:$0xff] }
   0x5   :  { %v108_v19 = vsub.f32 %v43_v5, %v517_v8  ;;  %v114_v20 = vsub.f32 %v42_v6, %v519_v9  ;;  %v545_v21 = vand.u32 4294901760, %v38_v17  ;;  %v120_v23 = vsub.f32 %v41_v10, %v532_v14  ;;  %v35_v40 = vld [vmem:[%s761_s1 + $0x28] sm:$0xff]  ;;  %v34_v43 = vld [vmem:[%s761_s1 + $0x20] sm:$0xff]  ;;  %v33_v50 = vld [vmem:[%s761_s1 + $0x18] sm:$0xff] }
   0x6   :  { %v547_v22 = vand.u32 4294901760, %v96_v13  ;;  %202 = vmatpush.msra.mxu2 %v96_v13  ;;  %262 = vmatpush.msra.mxu3 %v515_v7  ;;  %v126_v24 = vsub.f32 %v40_v11, %v535_v15  ;;  %v555_v26 = vand.u32 4294901760, %v102_v18  ;;  %v132_v29 = vsub.f32 %v39_v12, %v537_v16  ;;  %v32_v57 = vld [vmem:[%s761_s1 + $0x10] sm:$0xff]  ;;  %v31_v63 = vld [vmem:[%s761_s1 + $0x8] sm:$0xff]  ;;  %v30_v6 = vld [vmem:[%s761_s1] sm:$0xff] }
   0x7   :  { %v557_v27 = vand.u32 4294901760, %v108_v19  ;;  %v559_v28 = vand.u32 4294901760, %v114_v20  ;;  %49 = vmatpush.msra.mxu0 %v515_v7  ;;  %v564_v31 = vand.u32 4294901760, %v120_v23  ;;  %v138_v34 = vsub.f32 %v38_v17, %v545_v21 }
   0x8   :  { %v98_v30 = vsub.f32 %v96_v13, %v547_v22  ;;  %205 = vmatpush.msra.mxu2 %v102_v18  ;;  %264 = vmatpush.msra.mxu3 %v517_v8  ;;  %v104_v32 = vsub.f32 %v102_v18, %v555_v26  ;;  %v575_v38 = vand.u32 4294901760, %v126_v24  ;;  %v584_v42 = vand.u32 4294901760, %v132_v29 }
   0x9   :  { %v110_v33 = vsub.f32 %v108_v19, %v557_v27  ;;  %51 = vmatpush.msra.mxu0 %v517_v8  ;;  %v116_v37 = vsub.f32 %v114_v20, %v559_v28  ;;  %v122_v45 = vsub.f32 %v120_v23, %v564_v31  ;;  %v591_v46 = vand.u32 4294901760, %v37_v35 }
   0xa   :  { %22 = vperm.xlu0 %474, %v17_v25   ;;  %v99_v36 = vand.u32 4294901760, %v98_v30  ;;  %208 = vmatpush.msra.mxu2 %v108_v19  ;;  %v105_v41 = vand.u32 4294901760, %v104_v32  ;;  %v594_v47 = vand.u32 4294901760, %v138_v34  ;;  %v597_v48 = vand.u32 4294901760, %v36_v39 }
   0xb   :  { %266 = vmatpush.msra.mxu3 %v519_v9  ;;  %53 = vmatpush.msra.mxu0 %v519_v9  ;;  %v111_v44 = vand.u32 4294901760, %v110_v33  ;;  %v599_v49 = vand.u32 4294901760, %v35_v40  ;;  %v117_v51 = vand.u32 4294901760, %v116_v37  ;;  %v128_v52 = vsub.f32 %v126_v24, %v575_v38 }
   0xc   :  { %100 = vmatpush.msra.mxu1 %v99_v36  ;;  %211 = vmatpush.msra.mxu2 %v114_v20  ;;  %v144_v53 = vsub.f32 %v37_v35, %v591_v46  ;;  %v606_v54 = vand.u32 4294901760, %v34_v43  ;;  %v134_v55 = vsub.f32 %v132_v29, %v584_v42  ;;  %v150_v56 = vsub.f32 %v36_v39, %v597_v48 }
   0xd   :  { %268 = vmatpush.msra.mxu3 %v532_v14  ;;  %55 = vmatpush.msra.mxu0 %v532_v14  ;;  %v123_v58 = vand.u32 4294901760, %v122_v45  ;;  %v156_v60 = vsub.f32 %v35_v40, %v599_v49  ;;  %v618_v61 = vand.u32 4294901760, %v33_v50  ;;  %v140_v62 = vsub.f32 %v138_v34, %v594_v47 }
   0xe   :  { %106 = vmatpush.msra.mxu1 %v105_v41  ;;  %214 = vmatpush.msra.mxu2 %v120_v23  ;;  %v615_v59 = vand.u32 4294901760, %v144_v53  ;;  %v129_v0 = vand.u32 4294901760, %v128_v52  ;;  %v626_v1 = vand.u32 4294901760, %v150_v56  ;;  %v162_v2 = vsub.f32 %v34_v43, %v606_v54 }
   0xf   :  { %270 = vmatpush.msra.mxu3 %v535_v15  ;;  %57 = vmatpush.msra.mxu0 %v535_v15  ;;  %v629_v4 = vand.u32 4294901760, %v32_v57  ;;  %v135_v5 = vand.u32 4294901760, %v134_v55  ;;  %v637_v11 = vand.u32 4294901760, %v156_v60  ;;  %v168_v12 = vsub.f32 %v33_v50, %v618_v61 }
  0x10   :  { %112 = vmatpush.msra.mxu1 %v111_v44  ;;  %217 = vmatpush.msra.mxu2 %v126_v24  ;;  %v146_v10 = vsub.f32 %v144_v53, %v615_v59  ;;  %v640_v13 = vand.u32 4294901760, %v31_v63  ;;  %v141_v17 = vand.u32 4294901760, %v140_v62  ;;  %v152_v18 = vsub.f32 %v150_v56, %v626_v1 }
  0x11   :  { %272 = vmatpush.msra.mxu3 %v537_v16  ;;  %59 = vmatpush.msra.mxu0 %v537_v16  ;;  %v645_v19 = vand.u32 4294901760, %v162_v2  ;;  %v174_v20 = vsub.f32 %v32_v57, %v629_v4  ;;  %v648_v23 = vand.u32 4294901760, %v30_v6  ;;  %v158_v25 = vsub.f32 %v156_v60, %v637_v11 }
  0x12   :  { %118 = vmatpush.msra.mxu1 %v117_v51  ;;  %220 = vmatpush.msra.mxu2 %v132_v29  ;;  %v147_v24 = vand.u32 4294901760, %v146_v10  ;;  %v653_v29 = vand.u32 4294901760, %v168_v12  ;;  %v180_v30 = vsub.f32 %v31_v63, %v640_v13  ;;  %v153_v32 = vand.u32 4294901760, %v152_v18 }
  0x13   :  { %274 = vmatpush.msra.mxu3 %v545_v21  ;;  %61 = vmatpush.msra.mxu0 %v545_v21  ;;  %v164_v33 = vsub.f32 %v162_v2, %v645_v19  ;;  %v186_v35 = vsub.f32 %v30_v6, %v648_v23  ;;  %v159_v36 = vand.u32 4294901760, %v158_v25 }
  0x14   :  { %124 = vmatpush.msra.mxu1 %v123_v58  ;;  %223 = vmatpush.msra.mxu2 %v138_v34  ;;  %v659_v34 = vand.u32 4294901760, %v174_v20  ;;  %v170_v37 = vsub.f32 %v168_v12, %v653_v29  ;;  %v665_v39 = vand.u32 4294901760, %v180_v30 }
  0x15   :  { %276 = vmatpush.msra.mxu3 %v591_v46  ;;  %63 = vmatpush.msra.mxu0 %v591_v46  ;;  %v165_v40 = vand.u32 4294901760, %v164_v33  ;;  %v670_v43 = vand.u32 4294901760, %v186_v35 }
  0x16   :  { %130 = vmatpush.msra.mxu1 %v129_v0  ;;  %226 = vmatpush.msra.mxu2 %v144_v53  ;;  %v176_v41 = vsub.f32 %v174_v20, %v659_v34  ;;  %v171_v44 = vand.u32 4294901760, %v170_v37  ;;  %v182_v45 = vsub.f32 %v180_v30, %v665_v39 }
  0x17   :  { %278 = vmatpush.msra.mxu3 %v597_v48  ;;  %65 = vmatpush.msra.mxu0 %v597_v48  ;;  %v188_v51 = vsub.f32 %v186_v35, %v670_v43 }
  0x18   :  { %136 = vmatpush.msra.mxu1 %v135_v5  ;;  %229 = vmatpush.msra.mxu2 %v150_v56  ;;  %v177_v50 = vand.u32 4294901760, %v176_v41  ;;  %v183_v52 = vand.u32 4294901760, %v182_v45 }
  0x19   :  { %280 = vmatpush.msra.mxu3 %v599_v49  ;;  %67 = vmatpush.msra.mxu0 %v599_v49  ;;  %v189_v53 = vand.u32 4294901760, %v188_v51 }
  0x1a   :  { %142 = vmatpush.msra.mxu1 %v141_v17  ;;  %232 = vmatpush.msra.mxu2 %v156_v60  ;;  %v421_v17 = vld [vmem:[%s762_s2 + $0x8] sm:$0xff] }
  0x1b   :  { %282 = vmatpush.msra.mxu3 %v606_v54  ;;  %69 = vmatpush.msra.mxu0 %v606_v54 }
  0x1c   :  { %148 = vmatpush.msra.mxu1 %v147_v24  ;;  %235 = vmatpush.msra.mxu2 %v162_v2 }
  0x1d   :  { %284 = vmatpush.msra.mxu3 %v618_v61  ;;  %71 = vmatpush.msra.mxu0 %v618_v61 }
  0x1e   :  { %154 = vmatpush.msra.mxu1 %v153_v32  ;;  %238 = vmatpush.msra.mxu2 %v168_v12 }
  0x1f   :  { %286 = vmatpush.msra.mxu3 %v629_v4  ;;  %73 = vmatpush.msra.mxu0 %v629_v4 }
  0x20   :  { %160 = vmatpush.msra.mxu1 %v159_v36  ;;  %241 = vmatpush.msra.mxu2 %v174_v20 }
  0x21   :  { %288 = vmatpush.msra.mxu3 %v640_v13  ;;  %75 = vmatpush.msra.mxu0 %v640_v13 }
  0x22   :  { %166 = vmatpush.msra.mxu1 %v165_v40  ;;  %244 = vmatpush.msra.mxu2 %v180_v30 }
  0x23   :  { %290 = vmatpush.msra.mxu3 %v648_v23  ;;  %77 = vmatpush.msra.mxu0 %v648_v23 }
  0x24   :  { %172 = vmatpush.msra.mxu1 %v171_v44  ;;  %247 = vmatpush.msra.mxu2 %v186_v35 }
  0x25   :  { %455 = vmatpush.msrb.mxu3 %v504_v3  ;;  %307 = vmatpush.msrb.mxu0 %v547_v22 }
  0x26   :  { %439 = vmatpush.msrb.mxu2 %v547_v22  ;;  %178 = vmatpush.msra.mxu1 %v177_v50 }
  0x27   :  { %456 = vmatpush.msrb.mxu3 %v515_v7  ;;  %311 = vmatpush.msrb.mxu0 %v555_v26 }
  0x28   :  { %440 = vmatpush.msrb.mxu2 %v555_v26  ;;  %184 = vmatpush.msra.mxu1 %v183_v52 }
  0x29   :  { %457 = vmatpush.msrb.mxu3 %v517_v8  ;;  %315 = vmatpush.msrb.mxu0 %v557_v27 }
  0x2a   :  { %441 = vmatpush.msrb.mxu2 %v557_v27  ;;  %190 = vmatpush.msra.mxu1 %v189_v53 }
  0x2b   :  { %458 = vmatpush.msrb.mxu3 %v519_v9  ;;  %319 = vmatpush.msrb.mxu0 %v559_v28 }
  0x2c   :  { %378 = vmatpush.msrb.mxu1 %v504_v3  ;;  %442 = vmatpush.msrb.mxu2 %v559_v28  ;;  %v14_v3 = vlaneseq }
  0x2d   :  { %459 = vmatpush.msrb.mxu3 %v532_v14  ;;  %323 = vmatpush.msrb.mxu0 %v564_v31 }
  0x2e   :  { %380 = vmatpush.msrb.mxu1 %v515_v7  ;;  %443 = vmatpush.msrb.mxu2 %v564_v31  ;;  %v15_v7 = vand.u32 127, %v14_v3 }
  0x2f   :  { %460 = vmatpush.msrb.mxu3 %v535_v15  ;;  %327 = vmatpush.msrb.mxu0 %v575_v38 }
  0x30   :  { %382 = vmatpush.msrb.mxu1 %v517_v8  ;;  %444 = vmatpush.msrb.mxu2 %v575_v38 }
  0x31   :  { %461 = vmatpush.msrb.mxu3 %v537_v16  ;;  %331 = vmatpush.msrb.mxu0 %v584_v42 }
  0x32   :  { %384 = vmatpush.msrb.mxu1 %v519_v9  ;;  %445 = vmatpush.msrb.mxu2 %v584_v42  ;;  %v476_v9 = vmov 1.0  }
  0x33   :  { %462 = vmatpush.msrb.mxu3 %v545_v21  ;;  %335 = vmatpush.msrb.mxu0 %v594_v47 }
  0x34   :  { %386 = vmatpush.msrb.mxu1 %v532_v14  ;;  %446 = vmatpush.msrb.mxu2 %v594_v47  ;;  %v477_v14 = vmov 0.0  }
  0x35   :  { %463 = vmatpush.msrb.mxu3 %v591_v46  ;;  %339 = vmatpush.msrb.mxu0 %v615_v59 }
  0x36   :  { %388 = vmatpush.msrb.mxu1 %v535_v15  ;;  %447 = vmatpush.msrb.mxu2 %v615_v59 }
  0x37   :  { %464 = vmatpush.msrb.mxu3 %v597_v48  ;;  %343 = vmatpush.msrb.mxu0 %v626_v1 }
  0x38   :  { %390 = vmatpush.msrb.mxu1 %v537_v16  ;;  %448 = vmatpush.msrb.mxu2 %v626_v1 }
  0x39   :  { %465 = vmatpush.msrb.mxu3 %v599_v49  ;;  %347 = vmatpush.msrb.mxu0 %v637_v11 }
  0x3a   :  { %392 = vmatpush.msrb.mxu1 %v545_v21  ;;  %449 = vmatpush.msrb.mxu2 %v637_v11 }
  0x3b   :  { %466 = vmatpush.msrb.mxu3 %v606_v54  ;;  %351 = vmatpush.msrb.mxu0 %v645_v19 }
  0x3c   :  { %394 = vmatpush.msrb.mxu1 %v591_v46  ;;  %450 = vmatpush.msrb.mxu2 %v645_v19 }
  0x3d   :  { %467 = vmatpush.msrb.mxu3 %v618_v61  ;;  %355 = vmatpush.msrb.mxu0 %v653_v29 }
  0x3e   :  { %396 = vmatpush.msrb.mxu1 %v597_v48  ;;  %451 = vmatpush.msrb.mxu2 %v653_v29 }
  0x3f   :  { %468 = vmatpush.msrb.mxu3 %v629_v4  ;;  %359 = vmatpush.msrb.mxu0 %v659_v34 }
  0x40   :  { %398 = vmatpush.msrb.mxu1 %v599_v49  ;;  %452 = vmatpush.msrb.mxu2 %v659_v34 }
  0x41   :  { %469 = vmatpush.msrb.mxu3 %v640_v13  ;;  %363 = vmatpush.msrb.mxu0 %v665_v39 }
  0x42   :  { %400 = vmatpush.msrb.mxu1 %v606_v54  ;;  %453 = vmatpush.msrb.mxu2 %v665_v39 }
  0x43   :  { %470 = vmatpush.msrb.mxu3 %v648_v23  ;;  %367 = vmatpush.msrb.mxu0 %v670_v43 }
  0x44   :  { %402 = vmatpush.msrb.mxu1 %v618_v61  ;;  %454 = vmatpush.msrb.mxu2 %v670_v43 }
  0x46   :  { %404 = vmatpush.msrb.mxu1 %v629_v4 }
  0x48   :  { %406 = vmatpush.msrb.mxu1 %v640_v13  ;;  %v420_v13 = vld [vmem:[%s762_s2] sm:$0xff] }
  0x4a   :  { %408 = vmatpush.msrb.mxu1 %v648_v23 }
  0x74   :  { %v20_v8 = vpop.permute.xlu0 %19 }
  0x75   :  { %vm24_vm0 = vcmp.eq.s32.totalorder %v15_v7, %v20_v8 }
  0x76   :  { %433 = vmatmul.msk.f32.vlgmr.msra.gmra.mxu1 %vm24_vm0, %v476_v9  ;;  %v431_v15 = vsel %vm24_vm0, 1.0, %v477_v14 }
  0x77   :  { %v79_v16 = vsub.f32 %v431_v15, %v431_v15 }
  0x79   :  { %250 = vmatmul.f32.vlgmr.msra.gmra.mxu2 %v79_v16  ;;  %v80_v21 = vand.u32 4294901760, %v79_v16 }
  0x7b   :  { %294 = vmatmul.f32.vlgmr.msra.gmra.mxu3 %v80_v21  ;;  %v81_v22 = vsub.f32 %v79_v16, %v80_v21 }
  0x7c   :  { %v23_v26 = vpop.permute.xlu0 %22 }
  0x7d   :  { %vm25_vm1 = vcmp.eq.s32.totalorder %v15_v7, %v23_v26  ;;  %v82_v27 = vand.u32 4294901760, %v81_v22 }
  0x7e   :  { %434 = vmatmul.msk.f32.gmra.mxu1 %vm25_vm1, %v476_v9  ;;  %v432_v28 = vsel %vm25_vm1, 1.0, %v477_v14 }
  0x7f   :  { %83 = vmatmul.f32.vlgmr.msra.gmra.mxu0 %v82_v27  ;;  %v87_v31 = vsub.f32 %v432_v28, %v432_v28 }
  0x81   :  { %255 = vmatmul.f32.gmra.mxu2 %v87_v31  ;;  %v88_v38 = vand.u32 4294901760, %v87_v31 }
  0x83   :  { %300 = vmatmul.f32.gmra.mxu3 %v88_v38  ;;  %v89_v42 = vsub.f32 %v87_v31, %v88_v38 }
  0x85   :  { %v90_v46 = vand.u32 4294901760, %v89_v42 }
  0x86   :  { %437 = vmatmul.msk.f32.vlgmr.msrb.gmra.mxu1 %vm24_vm0, %v476_v9 }
  0x87   :  { %91 = vmatmul.f32.gmra.mxu0 %v90_v46 }
  0x89   :  { %436 = vmatmul.msk.f32.vlgmr.msrb.gmra.mxu2 %vm25_vm1, %v476_v9 }
  0x8b   :  { %438 = vmatmul.msk.f32.vlgmr.msrb.gmra.mxu3 %vm25_vm1, %v476_v9 }
  0x8f   :  { %435 = vmatmul.msk.f32.vlgmr.msrb.gmra.mxu0 %vm24_vm0, %v476_v9 }
  0xf3   :  { %v193_v47 = vpop.f32.mrf.mxu1 }
  0xfb   :  { %v197_v55 = vpop.f32.mrf.mxu1 }
  0xfc   :  { %v84_v48 = vpop.f32.mrf.mxu0  ;;  %v251_v49 = vpop.f32.mrf.mxu2 }
  0xfd   :  { %v194_v56 = vadd.f32 %v193_v47, %v84_v48 }
  0xfe   :  { %v295_v54 = vpop.f32.mrf.mxu3 }
  0xff   :  { %v252_v61 = vadd.f32 %v251_v49, %v194_v56 }
 0x101   :  { %v296_v63 = vadd.f32 %v295_v54, %v252_v61 }
 0x103   :  { %v411_v6 = vpop.f32.mrf.mxu1 }
 0x104   :  { %v92_v57 = vpop.f32.mrf.mxu0  ;;  %v256_v58 = vpop.f32.mrf.mxu2 }
 0x105   :  { %v198_v59 = vadd.f32 %v197_v55, %v92_v57 }
 0x106   :  { %v301_v60 = vpop.f32.mrf.mxu3 }
 0x107   :  { %v257_v62 = vadd.f32 %v256_v58, %v198_v59 }
 0x109   :  { %v302_v0 = vadd.f32 %v301_v60, %v257_v62 }
 0x10c   :  { %v370_v1 = vpop.f32.mrf.mxu0  ;;  %v374_v2 = vpop.f32.mrf.mxu2 }
 0x10d   :  { %v371_v4 = vadd.f32 %v370_v1, %v296_v63  ;;  %v375_v5 = vadd.f32 %v374_v2, %v302_v0 }
 0x10e   :  { %v415_v10 = vpop.f32.mrf.mxu3 }
 0x10f   :  { %v412_v11 = vadd.f32 %v411_v6, %v371_v4  ;;  %v416_v12 = vadd.f32 %v415_v10, %v375_v5 }
 0x111   :  { %v418_v18 = vmul.f32 5.656854, %v412_v11  ;;  %v419_v19 = vmul.f32 5.656854, %v416_v12 }
 0x113   :  { %v422_v20 = vadd.f32 %v420_v13, %v418_v18  ;;  %v423_v23 = vadd.f32 %v421_v17, %v419_v19 }
 0x115   :  { %425 = vst.msk [vmem:[%s763_s3] sm:$0xff] %vm424_vm2, %v422_v20 }
 0x116   :  { %426 = vst.msk [vmem:[%s763_s3 + $0x8] sm:$0xff] %vm424_vm2, %v423_v23 }

// kernel: fwd.17
= control target key start
LH: loop header
LB: loop body
LE: loop exit
PB: predicated region body
PF: predicated region fallthrough
CT: control target
= control target key end

     0   :  { %vm33_vm0 = vcmask 261120   ;;  %s689_s2 = inlined_call_operand.vmem [shape: f32[32,32], index: 2, kind: input, shape index: {}]   ;;  %s690_s0 = inlined_call_operand.vmem [shape: f32[16,32], index: 0, kind: input, shape index: {}]   ;;  %s691_s1 = inlined_call_operand.vmem [shape: f32[16,32], index: 1, kind: input, shape index: {}]   ;;  %s692_s3 = inlined_call_operand.vmem [shape: f32[1,32], index: 3, kind: input, shape index: {}]   ;;  %s693_s4 = inlined_call_operand.vmem [shape: f32[1,32], index: 4, kind: input, shape index: {}]   ;;  %s694_s5 = inlined_call_operand.vmem [shape: f32[32,32], index: 5, kind: input, shape index: {}]   ;;  %s695_s6 = inlined_call_operand.vmem [shape: f32[16,32], index: 6, kind: output, shape index: {0}]   ;;  %s696_s7 = inlined_call_operand.vmem [shape: f32[16,32], index: 7, kind: output, shape index: {1}]  }
   0x1   :  { %v30_v0 = vld [vmem:[%s689_s2 + $0x18] sm:$0xff]  ;;  %v29_v1 = vld [vmem:[%s689_s2 + $0x10] sm:$0xff]  ;;  %v28_v2 = vld [vmem:[%s689_s2 + $0x8] sm:$0xff] }
   0x2   :  { %v52_v3 = vand.u32 4294901760, %v30_v0  ;;  %v54_v4 = vand.u32 4294901760, %v29_v1  ;;  %v56_v5 = vand.u32 4294901760, %v28_v2  ;;  %v27_v6 = vld [vmem:[%s689_s2] sm:$0xff]  ;;  %v26_v8 = vld [vmem:[%s690_s0 + $0x8] sm:$0xff] }
   0x3   :  { %v25_v7 = vld [vmem:[%s690_s0] sm:$0xff]  ;;  %v58_v9 = vand.u32 4294901760, %v27_v6  ;;  %v38_v11 = vsel %vm33_vm0, %v26_v8, 0  ;;  %v32_v45 = vld [vmem:[%s691_s1 + $0x8] sm:$0xff] }
   0x4   :  { %v35_v10 = vsel %vm33_vm0, %v25_v7, 0  ;;  %53 = vmatpush.msra.mxu0 %v52_v3  ;;  %v90_v12 = vsub.f32 %v30_v0, %v52_v3  ;;  %v96_v13 = vsub.f32 %v29_v1, %v54_v4  ;;  %170 = vmatpush.msra.mxu3 %v52_v3  ;;  %v102_v14 = vsub.f32 %v28_v2, %v56_v5  ;;  %v31_v39 = vld [vmem:[%s691_s1] sm:$0xff] }
   0x5   :  { %v60_v15 = vand.u32 4294901760, %v35_v10  ;;  %v108_v16 = vsub.f32 %v27_v6, %v58_v9  ;;  %v68_v17 = vand.u32 4294901760, %v38_v11  ;;  %v566_v2 = vmov 32.0  }
   0x6   :  { %55 = vmatpush.msra.mxu0 %v54_v4  ;;  %136 = vmatpush.msra.mxu2 %v90_v12  ;;  %v91_v18 = vand.u32 4294901760, %v90_v12  ;;  %v97_v20 = vand.u32 4294901760, %v96_v13  ;;  %v103_v21 = vand.u32 4294901760, %v102_v14  ;;  %560 = vrcp.f32 %v566_v2 }
   0x7   :  { %v61_v19 = vsub.f32 %v35_v10, %v60_v15  ;;  %172 = vmatpush.msra.mxu3 %v54_v4  ;;  %v109_v22 = vand.u32 4294901760, %v108_v16  ;;  %v69_v23 = vsub.f32 %v38_v11, %v68_v17 }
   0x8   :  { %57 = vmatpush.msra.mxu0 %v56_v5  ;;  %139 = vmatpush.msra.mxu2 %v96_v13  ;;  %v92_v24 = vsub.f32 %v90_v12, %v91_v18  ;;  %v98_v26 = vsub.f32 %v96_v13, %v97_v20  ;;  %v104_v27 = vsub.f32 %v102_v14, %v103_v21 }
   0x9   :  { %v62_v25 = vand.u32 4294901760, %v61_v19  ;;  %174 = vmatpush.msra.mxu3 %v56_v5  ;;  %v110_v28 = vsub.f32 %v108_v16, %v109_v22  ;;  %v70_v32 = vand.u32 4294901760, %v69_v23 }
   0xa   :  { %59 = vmatpush.msra.mxu0 %v58_v9  ;;  %v93_v29 = vand.u32 4294901760, %v92_v24  ;;  %142 = vmatpush.msra.mxu2 %v102_v14  ;;  %v99_v31 = vand.u32 4294901760, %v98_v26  ;;  %v105_v34 = vand.u32 4294901760, %v104_v27  ;;  %v322_v24 = vld [vmem:[%s694_s5 + $0x8] sm:$0xff] }
   0xb   :  { %v63_v30 = vsub.f32 %v61_v19, %v62_v25  ;;  %176 = vmatpush.msra.mxu3 %v58_v9  ;;  %v111_v35 = vand.u32 4294901760, %v110_v28  ;;  %v71_v36 = vsub.f32 %v69_v23, %v70_v32  ;;  %v347_v27 = vand.u32 4294901760, %v322_v24  ;;  %v321_v28 = vld [vmem:[%s694_s5] sm:$0xff] }
   0xc   :  { %205 = vmatpush.msrb.mxu0 %v91_v18  ;;  %94 = vmatpush.msra.mxu1 %v93_v29 }
   0xd   :  { %v64_v33 = vand.u32 4294901760, %v63_v30  ;;  %145 = vmatpush.msra.mxu2 %v108_v16  ;;  %180 = vmatmul.f32.vlgmr.msra.gmra.mxu3 %v62_v25  ;;  %v72_v37 = vand.u32 4294901760, %v71_v36 }
   0xe   :  { %148 = vmatmul.f32.vlgmr.msra.gmra.mxu2 %v61_v19  ;;  %100 = vmatpush.msra.mxu1 %v99_v31  ;;  %v324_v19 = vld [vmem:[%s694_s5 + $0x18] sm:$0xff]  ;;  %v393_v31 = vsub.f32 %v322_v24, %v347_v27 }
   0xf   :  { %65 = vmatmul.f32.vlgmr.msra.gmra.mxu0 %v64_v33 }
  0x10   :  { %209 = vmatpush.msrb.mxu0 %v97_v20  ;;  %106 = vmatpush.msra.mxu1 %v105_v34  ;;  %v343_v20 = vand.u32 4294901760, %v324_v19 }
  0x12   :  { %213 = vmatpush.msrb.mxu0 %v103_v21  ;;  %112 = vmatpush.msra.mxu1 %v111_v35  ;;  %v323_v21 = vld [vmem:[%s694_s5 + $0x10] sm:$0xff]  ;;  %v394_v35 = vand.u32 4294901760, %v393_v31 }
  0x13   :  { %114 = vmatmul.f32.vlgmr.msra.gmra.mxu1 %v60_v15  ;;  %344 = vmatpush.msrb.mxu2 %v343_v20 }
  0x14   :  { %217 = vmatpush.msrb.mxu0 %v109_v22  ;;  %240 = vmatpush.msrb.mxu1 %v52_v3  ;;  %v561_v3 = vpop.eup %560  ;;  %v381_v22 = vsub.f32 %v324_v19, %v343_v20 }
  0x15   :  { %186 = vmatmul.f32.gmra.mxu3 %v70_v32  ;;  %vm269_vm1 = vweird.f32 %v561_v3  ;;  %v349_v32 = vand.u32 4294901760, %v321_v28 }
  0x16   :  { %153 = vmatmul.f32.gmra.mxu2 %v69_v23  ;;  %242 = vmatpush.msrb.mxu1 %v54_v4  ;;  %v265_v4 = vmul.f32 32.0, %v561_v3  ;;  %v345_v23 = vand.u32 4294901760, %v323_v21  ;;  %v382_v25 = vand.u32 4294901760, %v381_v22 }
  0x17   :  { %73 = vmatmul.f32.gmra.mxu0 %v72_v37  ;;  %v399_v36 = vsub.f32 %v321_v28, %v349_v32 }
  0x18   :  { %244 = vmatpush.msrb.mxu1 %v56_v5  ;;  %v266_v5 = vsub.f32 1.0, %v265_v4  ;;  %v387_v26 = vsub.f32 %v323_v21, %v345_v23  ;;  %427 = vmatpush.msra.mxu0 %v381_v22  ;;  %v383_v29 = vsub.f32 %v381_v22, %v382_v25 }
  0x19   :  { %346 = vmatpush.msrb.mxu2 %v345_v23 }
  0x1a   :  { %246 = vmatpush.msrb.mxu1 %v58_v9  ;;  %v267_v6 = vmul.f32 %v561_v3, %v266_v5  ;;  %v388_v30 = vand.u32 4294901760, %v387_v26  ;;  %430 = vmatpush.msra.mxu0 %v387_v26  ;;  %v384_v33 = vand.u32 4294901760, %v383_v29 }
  0x1b   :  { %118 = vmatmul.f32.gmra.mxu1 %v68_v17  ;;  %348 = vmatpush.msrb.mxu2 %v347_v27 }
  0x1c   :  { %v268_v7 = vadd.f32 %v561_v3, %v267_v6  ;;  %461 = vmatpush.msra.mxu1 %v343_v20  ;;  %v389_v34 = vsub.f32 %v387_v26, %v388_v30  ;;  %433 = vmatpush.msra.mxu0 %v393_v31 }
  0x1d   :  { %350 = vmatpush.msrb.mxu2 %v349_v32  ;;  %385 = vmatpush.msrb.mxu3 %v384_v33 }
  0x1e   :  { %v635_v8 = vsel %vm269_vm1, %v561_v3, %v268_v7  ;;  %463 = vmatpush.msra.mxu1 %v345_v23  ;;  %v390_v37 = vand.u32 4294901760, %v389_v34  ;;  %436 = vmatpush.msra.mxu0 %v399_v36 }
  0x1f   :  { %219 = vmatmul.f32.vlgmr.msrb.gmra.mxu0 %v60_v15  ;;  %496 = vmatpush.msra.mxu2 %v382_v25 }
  0x20   :  { %465 = vmatpush.msra.mxu1 %v347_v27  ;;  %391 = vmatpush.msrb.mxu3 %v390_v37 }
  0x21   :  { %500 = vmatpush.msra.mxu2 %v388_v30 }
  0x22   :  { %467 = vmatpush.msra.mxu1 %v349_v32 }
  0x23   :  { %248 = vmatmul.f32.vlgmr.msrb.gmra.mxu1 %v60_v15  ;;  %504 = vmatpush.msra.mxu2 %v394_v35 }
  0x27   :  { %223 = vmatmul.f32.gmra.mxu0 %v68_v17 }
  0x2b   :  { %252 = vmatmul.f32.gmra.mxu1 %v68_v17 }
  0x8c   :  { %v66_v38 = vpop.f32.mrf.mxu0 }
  0x8d   :  { %v67_v41 = vadd.f32 %v66_v38, %v31_v39  ;;  %v395_v38 = vsub.f32 %v393_v31, %v394_v35  ;;  %v400_v39 = vand.u32 4294901760, %v399_v36 }
  0x8f   :  { %508 = vmatpush.msra.mxu2 %v400_v39 }
  0x90   :  { %v115_v40 = vpop.f32.mrf.mxu1  ;;  %v181_v46 = vpop.f32.mrf.mxu3 }
  0x91   :  { %v149_v43 = vpop.f32.mrf.mxu2  ;;  %v116_v44 = vadd.f32 %v115_v40, %v67_v41  ;;  %v396_v40 = vand.u32 4294901760, %v395_v38  ;;  %v401_v41 = vsub.f32 %v399_v36, %v400_v39 }
  0x93   :  { %v150_v49 = vadd.f32 %v149_v43, %v116_v44  ;;  %397 = vmatpush.msrb.mxu3 %v396_v40 }
  0x94   :  { %v74_v42 = vpop.f32.mrf.mxu0 }
  0x95   :  { %v75_v48 = vadd.f32 %v74_v42, %v32_v45  ;;  %v182_v51 = vadd.f32 %v181_v46, %v150_v49  ;;  %v402_v42 = vand.u32 4294901760, %v401_v41 }
  0x97   :  { %403 = vmatpush.msrb.mxu3 %v402_v42 }
  0x98   :  { %v119_v47 = vpop.f32.mrf.mxu1  ;;  %v187_v58 = vpop.f32.mrf.mxu3 }
  0x99   :  { %v120_v52 = vadd.f32 %v119_v47, %v75_v48  ;;  %v154_v53 = vpop.f32.mrf.mxu2  ;;  %531 = vmatpush.msra.mxu3 %v343_v20 }
  0x9b   :  { %v155_v56 = vadd.f32 %v154_v53, %v120_v52  ;;  %533 = vmatpush.msra.mxu3 %v345_v23 }
  0x9c   :  { %v220_v50 = vpop.f32.mrf.mxu0 }
  0x9d   :  { %v221_v54 = vadd.f32 %v220_v50, %v182_v51  ;;  %v188_v61 = vadd.f32 %v187_v58, %v155_v56  ;;  %535 = vmatpush.msra.mxu3 %v347_v27 }
  0x9f   :  { %537 = vmatpush.msra.mxu3 %v349_v32 }
  0xa0   :  { %v249_v55 = vpop.f32.mrf.mxu1 }
  0xa1   :  { %v250_v57 = vadd.f32 %v249_v55, %v221_v54 }
  0xa3   :  { %v258_v59 = vsel %vm33_vm0, %v250_v57, 0.0 }
  0xa4   :  { %v224_v60 = vpop.f32.mrf.mxu0  ;;  %259 = vadd.xlane.f32.xlu0 %v258_v59 }
  0xa5   :  { %v225_v62 = vadd.f32 %v224_v60, %v188_v61  ;;  %v559_v61 = vld [vmem:[%s693_s4] ss:$0 sm:$0xff] }
  0xa8   :  { %v253_v63 = vpop.f32.mrf.mxu1 }
  0xa9   :  { %v254_v0 = vadd.f32 %v253_v63, %v225_v62 }
  0xab   :  { %v261_v1 = vsel %vm33_vm0, %v254_v0, 0.0 }
  0xac   :  { %262 = vadd.xlane.f32.xlu0 %v261_v1 }
 0x117   :  { %v260_v9 = vpop.xlane.xlu0 %259 }
 0x118   :  { %v271_v10 = vmul.f32 %v635_v8, %v260_v9 }
 0x11a   :  { %v638_v11 = vsub.f32 %v250_v57, %v271_v10  ;;  %v558_v57 = vld [vmem:[%s692_s3] ss:$0 sm:$0xff] }
 0x11c   :  { %v275_v12 = vmul.f32 %v638_v11, %v638_v11 }
 0x11e   :  { %v277_v13 = vsel %vm33_vm0, %v275_v12, 0.0 }
 0x11f   :  { %278 = vadd.xlane.f32.xlu1 %v277_v13  ;;  %v263_v14 = vpop.xlane.xlu0 %262 }
 0x120   :  { %v272_v15 = vmul.f32 %v635_v8, %v263_v14 }
 0x122   :  { %v644_v16 = vsub.f32 %v254_v0, %v272_v15 }
 0x124   :  { %v276_v17 = vmul.f32 %v644_v16, %v644_v16 }
 0x126   :  { %v280_v18 = vsel %vm33_vm0, %v276_v17, 0.0 }
 0x127   :  { %281 = vadd.xlane.f32.xlu1 %v280_v18 }
 0x192   :  { %v279_v43 = vpop.xlane.xlu1 %278 }
 0x193   :  { %v283_v44 = vmul.f32 %v279_v43, %v635_v8 }
 0x195   :  { %v285_v45 = vadd.f32 1e-05, %v283_v44 }
 0x197   :  { %562 = vrsqrt.f32 %v285_v45  ;;  %vm293_vm3 = vweird.f32 %v285_v45 }
 0x19a   :  { %v282_v46 = vpop.xlane.xlu1 %281 }
 0x19b   :  { %v284_v47 = vmul.f32 %v282_v46, %v635_v8 }
 0x19d   :  { %v563_v48 = vpop.eup %562  ;;  %v286_v49 = vadd.f32 1e-05, %v284_v47 }
 0x19e   :  { %v288_v50 = vmul.f32 %v563_v48, %v285_v45  ;;  %vm294_vm2 = vweird.f32 %v563_v48 }
 0x19f   :  { %564 = vrsqrt.f32 %v286_v49  ;;  %vm295_vm4 = vmor %vm293_vm3, %vm294_vm2  ;;  %vm303_vm6 = vweird.f32 %v286_v49 }
 0x1a0   :  { %v289_v51 = vmul.f32 %v563_v48, %v288_v50 }
 0x1a2   :  { %v290_v52 = vmul.f32 0.5, %v289_v51 }
 0x1a4   :  { %v291_v53 = vsub.f32 1.5, %v290_v52 }
 0x1a5   :  { %v565_v54 = vpop.eup %564 }
 0x1a6   :  { %v292_v55 = vmul.f32 %v563_v48, %v291_v53  ;;  %v298_v56 = vmul.f32 %v565_v54, %v286_v49  ;;  %vm304_vm5 = vweird.f32 %v565_v54 }
 0x1a7   :  { %vm305_vm7 = vmor %vm303_vm6, %vm304_vm5 }
 0x1a8   :  { %v296_v58 = vsel %vm295_vm4, %v563_v48, %v292_v55  ;;  %v299_v59 = vmul.f32 %v565_v54, %v298_v56 }
 0x1a9   :  { %v307_v60 = vmul.f32 %v296_v58, %v638_v11 }
 0x1aa   :  { %v300_v62 = vmul.f32 0.5, %v299_v59 }
 0x1ab   :  { %v312_v63 = vmul.f32 %v558_v57, %v307_v60 }
 0x1ac   :  { %v301_v0 = vsub.f32 1.5, %v300_v62 }
 0x1ad   :  { %v317_v1 = vadd.f32 %v559_v61, %v312_v63 }
 0x1ae   :  { %v302_v2 = vmul.f32 %v565_v54, %v301_v0 }
 0x1af   :  { %319 = vst.msk [vmem:[%s695_s6] sm:$0xff] %vm33_vm0, %v317_v1  ;;  %v326_v3 = vsel %vm33_vm0, %v317_v1, 0 }
 0x1b0   :  { %v306_v4 = vsel %vm305_vm7, %v565_v54, %v302_v2  ;;  %v351_v5 = vand.u32 4294901760, %v326_v3 }
 0x1b1   :  { %v308_v6 = vmul.f32 %v306_v4, %v644_v16 }
 0x1b2   :  { %405 = vmatmul.f32.vlgmr.msrb.gmra.mxu3 %v351_v5  ;;  %v352_v7 = vsub.f32 %v326_v3, %v351_v5 }
 0x1b3   :  { %v313_v8 = vmul.f32 %v558_v57, %v308_v6 }
 0x1b4   :  { %439 = vmatmul.f32.vlgmr.msra.gmra.mxu0 %v352_v7  ;;  %v353_v9 = vand.u32 4294901760, %v352_v7 }
 0x1b5   :  { %v318_v10 = vadd.f32 %v559_v61, %v313_v8 }
 0x1b6   :  { %471 = vmatmul.f32.vlgmr.msra.gmra.mxu1 %v353_v9  ;;  %v354_v11 = vsub.f32 %v352_v7, %v353_v9 }
 0x1b7   :  { %320 = vst.msk [vmem:[%s695_s6 + $0x8] sm:$0xff] %vm33_vm0, %v318_v10  ;;  %v329_v12 = vsel %vm33_vm0, %v318_v10, 0 }
 0x1b8   :  { %v355_v13 = vand.u32 4294901760, %v354_v11  ;;  %v359_v14 = vand.u32 4294901760, %v329_v12 }
 0x1ba   :  { %356 = vmatmul.f32.vlgmr.msrb.gmra.mxu2 %v355_v13  ;;  %409 = vmatmul.f32.gmra.mxu3 %v359_v14  ;;  %v360_v15 = vsub.f32 %v329_v12, %v359_v14 }
 0x1bc   :  { %444 = vmatmul.f32.gmra.mxu0 %v360_v15  ;;  %v361_v16 = vand.u32 4294901760, %v360_v15 }
 0x1be   :  { %477 = vmatmul.f32.gmra.mxu1 %v361_v16  ;;  %v362_v17 = vsub.f32 %v360_v15, %v361_v16 }
 0x1c0   :  { %v363_v18 = vand.u32 4294901760, %v362_v17 }
 0x1c2   :  { %364 = vmatmul.f32.gmra.mxu2 %v363_v18  ;;  %539 = vmatmul.f32.vlgmr.msra.gmra.mxu3 %v351_v5 }
 0x1ca   :  { %510 = vmatmul.f32.vlgmr.msra.gmra.mxu2 %v351_v5  ;;  %543 = vmatmul.f32.gmra.mxu3 %v359_v14 }
 0x1d2   :  { %514 = vmatmul.f32.gmra.mxu2 %v359_v14 }
 0x231   :  { %v440_v23 = vpop.f32.mrf.mxu0 }
 0x233   :  { %v472_v26 = vpop.f32.mrf.mxu1 }
 0x235   :  { %v406_v19 = vpop.f32.mrf.mxu3 }
 0x239   :  { %v445_v32 = vpop.f32.mrf.mxu0 }
 0x23b   :  { %v478_v35 = vpop.f32.mrf.mxu1 }
 0x23d   :  { %v357_v20 = vpop.f32.mrf.mxu2  ;;  %v410_v21 = vpop.f32.mrf.mxu3 }
 0x23e   :  { %v407_v22 = vadd.f32 %v406_v19, %v357_v20 }
 0x240   :  { %v441_v25 = vadd.f32 %v440_v23, %v407_v22 }
 0x242   :  { %v473_v28 = vadd.f32 %v472_v26, %v441_v25 }
 0x245   :  { %v365_v24 = vpop.f32.mrf.mxu2  ;;  %v540_v29 = vpop.f32.mrf.mxu3 }
 0x246   :  { %v411_v27 = vadd.f32 %v410_v21, %v365_v24 }
 0x248   :  { %v446_v33 = vadd.f32 %v445_v32, %v411_v27 }
 0x24a   :  { %v479_v36 = vadd.f32 %v478_v35, %v446_v33 }
 0x24d   :  { %v511_v30 = vpop.f32.mrf.mxu2  ;;  %v544_v39 = vpop.f32.mrf.mxu3 }
 0x24e   :  { %v512_v31 = vadd.f32 %v511_v30, %v473_v28 }
 0x250   :  { %v541_v34 = vadd.f32 %v540_v29, %v512_v31 }
 0x252   :  { %547 = vst.msk [vmem:[%s696_s7] sm:$0xff] %vm33_vm0, %v541_v34 }
 0x255   :  { %v515_v37 = vpop.f32.mrf.mxu2 }
 0x256   :  { %v516_v38 = vadd.f32 %v515_v37, %v479_v36 }
 0x258   :  { %v545_v40 = vadd.f32 %v544_v39, %v516_v38 }
 0x25a   :  { %548 = vst.msk [vmem:[%s696_s7 + $0x8] sm:$0xff] %vm33_vm0, %v545_v40 }

// kernel: fwd.16
= control target key start
LH: loop header
LB: loop body
LE: loop exit
PB: predicated region body
PF: predicated region fallthrough
CT: control target
= control target key end

     0   :  { %vm38_vm0 = vcmask 64512   ;;  %s3029_s1 = inlined_call_operand.vmem [shape: f32[8,8,8], index: 1, kind: input, shape index: {}]   ;;  %s3030_s0 = inlined_call_operand.vmem [shape: f32[8,8,8], index: 0, kind: input, shape index: {}]   ;;  %s3031_s2 = inlined_call_operand.vmem [shape: f32[8,8,8], index: 2, kind: input, shape index: {}]   ;;  %s3032_s3 = inlined_call_operand.vmem [shape: f32[8,8,8], index: 3, kind: output, shape index: {}]  }
   0x1   :  { %v22_v0 = vld [vmem:[%s3029_s1] sm:$0xff]  ;;  %v23_v2 = vld [vmem:[%s3029_s1 + $0x8] sm:$0xff]  ;;  %v24_v7 = vld [vmem:[%s3029_s1 + $0x10] sm:$0xff] }
   0x2   :  { %v14_v1 = vld [vmem:[%s3030_s0] sm:$0xff]  ;;  %v43_v3 = vsel %vm38_vm0, %v22_v0, 0  ;;  %v195_v5 = vsel %vm38_vm0, %v23_v2, 0  ;;  %v15_v6 = vld [vmem:[%s3030_s0 + $0x8] sm:$0xff]  ;;  %v25_v12 = vld [vmem:[%s3029_s1 + $0x18] sm:$0xff]  ;;  %v347_v14 = vsel %vm38_vm0, %v24_v7, 0 }
   0x3   :  { %v40_v4 = vsel %vm38_vm0, %v14_v1, 0  ;;  %v60_v8 = vand.u32 4294901760, %v43_v3  ;;  %v212_v10 = vand.u32 4294901760, %v195_v5  ;;  %v192_v11 = vsel %vm38_vm0, %v15_v6, 0  ;;  %v16_v35 = vld [vmem:[%s3030_s0 + $0x10] sm:$0xff]  ;;  %v17_v40 = vld [vmem:[%s3030_s0 + $0x18] sm:$0xff] }
   0x4   :  { %v62_v9 = vand.u32 4294901760, %v40_v4  ;;  %v2733_v13 = vand.u32 4294901760, %v192_v11  ;;  %v499_v15 = vsel %vm38_vm0, %v25_v12, 0  ;;  %v2737_v19 = vand.u32 4294901760, %v347_v14  ;;  %v26_v49 = vld [vmem:[%s3029_s1 + $0x20] sm:$0xff]  ;;  %v27_v50 = vld [vmem:[%s3029_s1 + $0x28] sm:$0xff] }
   0x5   :  { %v87_v16 = vsub.f32 %v43_v3, %v60_v8  ;;  %137 = vmatpush.xpose.msra.mxu3 %v60_v8  ;;  %61 = vmatpush.xpose.msra.mxu0 %v60_v8  ;;  %v239_v18 = vsub.f32 %v195_v5, %v212_v10  ;;  %v2742_v21 = vand.u32 4294901760, %v499_v15  ;;  %v344_v38 = vsel %vm38_vm0, %v16_v35, 0  ;;  %v18_v63 = vld [vmem:[%s3030_s0 + $0x20] sm:$0xff] }
   0x6   :  { %v63_v17 = vsub.f32 %v40_v4, %v62_v9  ;;  %v2740_v20 = vsub.f32 %v192_v11, %v2733_v13  ;;  %v391_v26 = vsub.f32 %v347_v14, %v2737_v19  ;;  %v2759_v41 = vand.u32 4294901760, %v344_v38  ;;  %v19_v4 = vld [vmem:[%s3030_s0 + $0x28] sm:$0xff] }
   0x7   :  { %114 = vmatpush.xpose.msra.mxu2 %v87_v16  ;;  %v88_v23 = vand.u32 4294901760, %v87_v16  ;;  %v240_v24 = vand.u32 4294901760, %v239_v18  ;;  %v2748_v31 = vsub.f32 %v499_v15, %v2742_v21  ;;  %v496_v44 = vsel %vm38_vm0, %v17_v40, 0 }
   0x8   :  { %v64_v22 = vand.u32 4294901760, %v63_v17  ;;  %v216_v25 = vand.u32 4294901760, %v2740_v20  ;;  %v392_v36 = vand.u32 4294901760, %v391_v26  ;;  %v367_v45 = vsub.f32 %v344_v38, %v2759_v41 }
   0x9   :  { %v89_v28 = vsub.f32 %v87_v16, %v88_v23  ;;  %163 = vmatpush.xpose.msrb.mxu0 %v88_v23  ;;  %v241_v29 = vsub.f32 %v239_v18, %v240_v24  ;;  %v544_v39 = vand.u32 4294901760, %v2748_v31  ;;  %v518_v48 = vand.u32 4294901760, %v496_v44 }
   0xa   :  { %141 = vmatmul.f32.vlgmr.msra.gmra.mxu3 %v64_v22  ;;  %v65_v27 = vsub.f32 %v63_v17, %v64_v22  ;;  %117 = vmatmul.f32.vlgmr.msra.gmra.mxu2 %v63_v17  ;;  %v217_v30 = vsub.f32 %v2740_v20, %v216_v25  ;;  %v393_v42 = vsub.f32 %v391_v26, %v392_v36  ;;  %v368_v51 = vand.u32 4294901760, %v367_v45  ;;  %v20_v22 = vld [vmem:[%s3030_s0 + $0x30] sm:$0xff] }
   0xb   :  { %213 = vmatpush.xpose.msrb.mxu2 %v212_v10  ;;  %v90_v33 = vand.u32 4294901760, %v89_v28  ;;  %v242_v34 = vand.u32 4294901760, %v241_v29  ;;  %v545_v43 = vsub.f32 %v2748_v31, %v544_v39  ;;  %v519_v52 = vsub.f32 %v496_v44, %v518_v48  ;;  %v29_v29 = vld [vmem:[%s3029_s1 + $0x38] sm:$0xff] }
   0xc   :  { %v66_v32 = vand.u32 4294901760, %v65_v27  ;;  %v218_v37 = vand.u32 4294901760, %v217_v30  ;;  %v394_v46 = vand.u32 4294901760, %v393_v42  ;;  %v651_v53 = vsel %vm38_vm0, %v26_v49, 0 }
   0xd   :  { %91 = vmatpush.xpose.msra.mxu1 %v90_v33  ;;  %243 = vmatpush.xpose.msrb.mxu3 %v242_v34  ;;  %v546_v47 = vand.u32 4294901760, %v545_v43  ;;  %v803_v54 = vsel %vm38_vm0, %v27_v50, 0  ;;  %v369_v55 = vsub.f32 %v367_v45, %v368_v51  ;;  %v668_v56 = vand.u32 4294901760, %v651_v53 }
   0xe   :  { %67 = vmatmul.f32.vlgmr.msra.gmra.mxu0 %v66_v32  ;;  %v520_v57 = vand.u32 4294901760, %v519_v52  ;;  %v820_v58 = vand.u32 4294901760, %v803_v54  ;;  %v648_v2 = vsel %vm38_vm0, %v18_v63, 0  ;;  %v21_v32 = vld [vmem:[%s3030_s0 + $0x38] sm:$0xff] }
   0xf   :  { %315 = vmatpush.xpose.msra.mxu2 %v240_v24  ;;  %266 = vmatpush.xpose.msra.mxu0 %v239_v18  ;;  %v370_v59 = vand.u32 4294901760, %v369_v55  ;;  %v695_v60 = vsub.f32 %v651_v53, %v668_v56  ;;  %v670_v5 = vand.u32 4294901760, %v648_v2  ;;  %v952_v24 = vsel %vm38_vm0, %v20_v22, 0 }
  0x10   :  { %93 = vmatmul.f32.vlgmr.msra.gmra.mxu1 %v62_v9  ;;  %v521_v61 = vsub.f32 %v519_v52, %v520_v57  ;;  %v847_v62 = vsub.f32 %v803_v54, %v820_v58  ;;  %v1104_v35 = vsel %vm38_vm0, %v21_v32, 0 }
  0x11   :  { %185 = vmatpush.xpose.msrb.mxu1 %v60_v8  ;;  %337 = vmatpush.xpose.msra.mxu3 %v212_v10  ;;  %v696_v0 = vand.u32 4294901760, %v695_v60  ;;  %v800_v8 = vsel %vm38_vm0, %v19_v4, 0 }
  0x12   :  { %245 = vmatmul.f32.vlgmr.msrb.gmra.mxu3 %v2733_v13  ;;  %219 = vmatmul.f32.vlgmr.msrb.gmra.mxu2 %v218_v37  ;;  %v522_v1 = vand.u32 4294901760, %v521_v61  ;;  %v848_v3 = vand.u32 4294901760, %v847_v62  ;;  %v822_v12 = vand.u32 4294901760, %v800_v8  ;;  %v1126_v37 = vand.u32 4294901760, %v1104_v35 }
  0x13   :  { %418 = vmatpush.xpose.msrb.mxu2 %v391_v26  ;;  %v697_v6 = vsub.f32 %v695_v60, %v696_v0 }
  0x14   :  { %v849_v7 = vsub.f32 %v847_v62, %v848_v3  ;;  %v823_v14 = vsub.f32 %v800_v8, %v822_v12 }
  0x15   :  { %289 = vmatpush.xpose.msra.mxu1 %v212_v10  ;;  %441 = vmatpush.xpose.msrb.mxu3 %v2737_v19  ;;  %v698_v10 = vand.u32 4294901760, %v697_v6 }
  0x16   :  { %165 = vmatmul.f32.vlgmr.msrb.gmra.mxu0 %v62_v9  ;;  %v850_v11 = vand.u32 4294901760, %v849_v7  ;;  %v824_v16 = vand.u32 4294901760, %v823_v14 }
  0x17   :  { %365 = vmatpush.xpose.msrb.mxu0 %v2737_v19 }
  0x18   :  { %187 = vmatmul.f32.vlgmr.msrb.gmra.mxu1 %v62_v9  ;;  %v671_v9 = vsub.f32 %v648_v2, %v670_v5  ;;  %v825_v18 = vsub.f32 %v823_v14, %v824_v16 }
  0x19   :  { %395 = vmatpush.xpose.msrb.mxu1 %v394_v46 }
  0x1a   :  { %339 = vmatmul.f32.vlgmr.msra.gmra.mxu3 %v2733_v13  ;;  %317 = vmatmul.f32.vlgmr.msra.gmra.mxu2 %v2733_v13  ;;  %v672_v13 = vand.u32 4294901760, %v671_v9 }
  0x1b   :  { %547 = vmatpush.xpose.msra.mxu3 %v546_v47  ;;  %517 = vmatpush.xpose.msra.mxu2 %v2742_v21 }
  0x1c   :  { %v673_v15 = vsub.f32 %v671_v9, %v672_v13 }
  0x1e   :  { %269 = vmatmul.f32.vlgmr.msra.gmra.mxu0 %v2740_v20  ;;  %v674_v17 = vand.u32 4294901760, %v673_v15  ;;  %v28_v20 = vld [vmem:[%s3029_s1 + $0x30] sm:$0xff] }
  0x1f   :  { %467 = vmatpush.xpose.msra.mxu0 %v392_v36 }
  0x20   :  { %293 = vmatmul.f32.vlgmr.msra.gmra.mxu1 %v216_v25  ;;  %v974_v25 = vand.u32 4294901760, %v952_v24 }
  0x21   :  { %489 = vmatpush.xpose.msra.mxu1 %v2737_v19  ;;  %v826_v19 = vand.u32 4294901760, %v825_v18 }
  0x22   :  { %445 = vmatmul.f32.vlgmr.msrb.gmra.mxu3 %v368_v51  ;;  %421 = vmatmul.f32.vlgmr.msrb.gmra.mxu2 %v367_v45  ;;  %v975_v27 = vsub.f32 %v952_v24, %v974_v25 }
  0x23   :  { %641 = vmatpush.xpose.msrb.mxu3 %v2742_v21  ;;  %619 = vmatpush.xpose.msrb.mxu2 %v544_v39 }
  0x24   :  { %v976_v30 = vand.u32 4294901760, %v975_v27 }
  0x26   :  { %371 = vmatmul.f32.vlgmr.msrb.gmra.mxu0 %v370_v59  ;;  %v977_v36 = vsub.f32 %v975_v27, %v976_v30 }
  0x27   :  { %570 = vmatpush.xpose.msrb.mxu0 %v2748_v31  ;;  %v1107_v31 = vsel %vm38_vm0, %v29_v29, 0 }
  0x28   :  { %397 = vmatmul.f32.vlgmr.msrb.gmra.mxu1 %v2759_v41  ;;  %v1124_v34 = vand.u32 4294901760, %v1107_v31  ;;  %v978_v40 = vand.u32 4294901760, %v977_v36 }
  0x29   :  { %593 = vmatpush.xpose.msrb.mxu1 %v2742_v21  ;;  %v955_v21 = vsel %vm38_vm0, %v28_v20, 0 }
  0x2a   :  { %549 = vmatmul.f32.vlgmr.msra.gmra.mxu3 %v518_v48  ;;  %523 = vmatmul.f32.vlgmr.msra.gmra.mxu2 %v522_v1  ;;  %v972_v23 = vand.u32 4294901760, %v955_v21  ;;  %v1151_v39 = vsub.f32 %v1107_v31, %v1124_v34 }
  0x2b   :  { %745 = vmatpush.xpose.msra.mxu3 %v668_v56  ;;  %722 = vmatpush.xpose.msra.mxu2 %v695_v60 }
  0x2c   :  { %v999_v26 = vsub.f32 %v955_v21, %v972_v23  ;;  %v1152_v42 = vand.u32 4294901760, %v1151_v39 }
  0x2e   :  { %469 = vmatmul.f32.vlgmr.msra.gmra.mxu0 %v2759_v41  ;;  %v1000_v28 = vand.u32 4294901760, %v999_v26  ;;  %v1153_v44 = vsub.f32 %v1151_v39, %v1152_v42 }
  0x2f   :  { %669 = vmatpush.xpose.msra.mxu0 %v668_v56 }
  0x30   :  { %491 = vmatmul.f32.vlgmr.msra.gmra.mxu1 %v2759_v41  ;;  %v1001_v33 = vsub.f32 %v999_v26, %v1000_v28  ;;  %v1127_v41 = vsub.f32 %v1104_v35, %v1126_v37  ;;  %v1154_v46 = vand.u32 4294901760, %v1153_v44 }
  0x31   :  { %699 = vmatpush.xpose.msra.mxu1 %v698_v10 }
  0x32   :  { %643 = vmatmul.f32.vlgmr.msrb.gmra.mxu3 %v518_v48  ;;  %621 = vmatmul.f32.vlgmr.msrb.gmra.mxu2 %v518_v48  ;;  %v1002_v38 = vand.u32 4294901760, %v1001_v33  ;;  %v1128_v43 = vand.u32 4294901760, %v1127_v41 }
  0x33   :  { %851 = vmatpush.xpose.msrb.mxu3 %v850_v11  ;;  %821 = vmatpush.xpose.msrb.mxu2 %v820_v58 }
  0x34   :  { %v1129_v45 = vsub.f32 %v1127_v41, %v1128_v43 }
  0x36   :  { %573 = vmatmul.f32.vlgmr.msrb.gmra.mxu0 %v519_v52  ;;  %v1130_v47 = vand.u32 4294901760, %v1129_v45 }
  0x37   :  { %771 = vmatpush.xpose.msrb.mxu0 %v696_v0 }
  0x38   :  { %597 = vmatmul.f32.vlgmr.msrb.gmra.mxu1 %v520_v57 }
  0x39   :  { %793 = vmatpush.xpose.msrb.mxu1 %v668_v56 }
  0x3a   :  { %749 = vmatmul.f32.vlgmr.msra.gmra.mxu3 %v672_v13  ;;  %725 = vmatmul.f32.vlgmr.msra.gmra.mxu2 %v671_v9 }
  0x3b   :  { %945 = vmatpush.xpose.msra.mxu3 %v820_v58  ;;  %923 = vmatpush.xpose.msra.mxu2 %v848_v3 }
  0x3e   :  { %675 = vmatmul.f32.vlgmr.msra.gmra.mxu0 %v674_v17 }
  0x3f   :  { %874 = vmatpush.xpose.msra.mxu0 %v847_v62 }
  0x40   :  { %701 = vmatmul.f32.vlgmr.msra.gmra.mxu1 %v670_v5 }
  0x41   :  { %897 = vmatpush.xpose.msra.mxu1 %v820_v58 }
  0x42   :  { %853 = vmatmul.f32.vlgmr.msrb.gmra.mxu3 %v822_v12  ;;  %827 = vmatmul.f32.vlgmr.msrb.gmra.mxu2 %v826_v19 }
  0x43   :  { %1049 = vmatpush.xpose.msrb.mxu3 %v972_v23  ;;  %1026 = vmatpush.xpose.msrb.mxu2 %v999_v26 }
  0x46   :  { %773 = vmatmul.f32.vlgmr.msrb.gmra.mxu0 %v670_v5 }
  0x47   :  { %973 = vmatpush.xpose.msrb.mxu0 %v972_v23 }
  0x48   :  { %795 = vmatmul.f32.vlgmr.msrb.gmra.mxu1 %v670_v5 }
  0x49   :  { %1003 = vmatpush.xpose.msrb.mxu1 %v1002_v38 }
  0x4a   :  { %947 = vmatmul.f32.vlgmr.msra.gmra.mxu3 %v822_v12  ;;  %925 = vmatmul.f32.vlgmr.msra.gmra.mxu2 %v822_v12 }
  0x4b   :  { %1125 = vmatpush.xpose.msra.mxu2 %v1124_v34  ;;  %1155 = vmatpush.xpose.msra.mxu3 %v1154_v46 }
  0x4e   :  { %877 = vmatmul.f32.vlgmr.msra.gmra.mxu0 %v823_v14 }
  0x4f   :  { %1075 = vmatpush.xpose.msra.mxu0 %v1000_v28 }
  0x50   :  { %901 = vmatmul.f32.vlgmr.msra.gmra.mxu1 %v824_v16 }
  0x51   :  { %1097 = vmatpush.xpose.msra.mxu1 %v972_v23 }
  0x52   :  { %1029 = vmatmul.f32.vlgmr.msrb.gmra.mxu2 %v975_v27  ;;  %1053 = vmatmul.f32.vlgmr.msrb.gmra.mxu3 %v976_v30 }
  0x53   :  { %1227 = vmatpush.xpose.msrb.mxu2 %v1152_v42  ;;  %1249 = vmatpush.xpose.msrb.mxu3 %v1124_v34 }
  0x56   :  { %979 = vmatmul.f32.vlgmr.msrb.gmra.mxu0 %v978_v40 }
  0x57   :  { %1178 = vmatpush.xpose.msrb.mxu0 %v1151_v39 }
  0x58   :  { %1005 = vmatmul.f32.vlgmr.msrb.gmra.mxu1 %v974_v25 }
  0x59   :  { %1201 = vmatpush.xpose.msrb.mxu1 %v1124_v34 }
  0x5a   :  { %1131 = vmatmul.f32.vlgmr.msra.gmra.mxu2 %v1130_v47  ;;  %1157 = vmatmul.f32.vlgmr.msra.gmra.mxu3 %v1126_v37 }
  0x5e   :  { %1077 = vmatmul.f32.vlgmr.msra.gmra.mxu0 %v974_v25 }
  0x60   :  { %1099 = vmatmul.f32.vlgmr.msra.gmra.mxu1 %v974_v25 }
  0x62   :  { %1229 = vmatmul.f32.vlgmr.msrb.gmra.mxu2 %v1126_v37  ;;  %1251 = vmatmul.f32.vlgmr.msrb.gmra.mxu3 %v1126_v37 }
  0x66   :  { %1181 = vmatmul.f32.vlgmr.msrb.gmra.mxu0 %v1127_v41 }
  0x68   :  { %1205 = vmatmul.f32.vlgmr.msrb.gmra.mxu1 %v1128_v43 }
  0x8b   :  { %v68_v48 = vpop.f32.mrf.mxu0 }
  0x8d   :  { %v142_v49 = vpop.f32.mrf.mxu3  ;;  %v94_v50 = vpop.f32.mrf.mxu1 }
  0x8e   :  { %v118_v51 = vpop.f32.mrf.mxu2  ;;  %v95_v52 = vadd.f32 %v94_v50, %v68_v48 }
  0x90   :  { %v119_v53 = vadd.f32 %v118_v51, %v95_v52 }
  0x92   :  { %v143_v54 = vadd.f32 %v142_v49, %v119_v53 }
  0x93   :  { %v166_v55 = vpop.f32.mrf.mxu0 }
  0x94   :  { %v167_v56 = vadd.f32 %v166_v55, %v143_v54 }
  0x95   :  { %v246_v57 = vpop.f32.mrf.mxu3  ;;  %v188_v58 = vpop.f32.mrf.mxu1 }
  0x96   :  { %v220_v59 = vpop.f32.mrf.mxu2  ;;  %v189_v60 = vadd.f32 %v188_v58, %v167_v56 }
  0x97   :  { %v247_v61 = vadd.f32 %v246_v57, %v220_v59 }
  0x98   :  { %v2809_v62 = vmul.f32 0.35355338, %v189_v60 }
  0x9a   :  { %v1263_v0 = vsel %vm38_vm0, %v2809_v62, -inf }
  0x9b   :  { %v270_v63 = vpop.f32.mrf.mxu0  ;;  %1264 = vmax.xlane.f32.xlu0 %v1263_v0 }
  0x9c   :  { %v271_v1 = vadd.f32 %v270_v63, %v247_v61 }
  0x9d   :  { %v340_v2 = vpop.f32.mrf.mxu3  ;;  %v294_v3 = vpop.f32.mrf.mxu1 }
  0x9e   :  { %v318_v4 = vpop.f32.mrf.mxu2  ;;  %v295_v5 = vadd.f32 %v294_v3, %v271_v1 }
  0xa0   :  { %v319_v6 = vadd.f32 %v318_v4, %v295_v5 }
  0xa2   :  { %v341_v7 = vadd.f32 %v340_v2, %v319_v6 }
  0xa3   :  { %v372_v8 = vpop.f32.mrf.mxu0 }
  0xa4   :  { %v2813_v9 = vmul.f32 0.35355338, %v341_v7 }
  0xa5   :  { %v446_v10 = vpop.f32.mrf.mxu3  ;;  %v398_v11 = vpop.f32.mrf.mxu1 }
  0xa6   :  { %v422_v12 = vpop.f32.mrf.mxu2  ;;  %v399_v13 = vadd.f32 %v398_v11, %v372_v8  ;;  %v1266_v14 = vsel %vm38_vm0, %v2813_v9, -inf }
  0xa7   :  { %1267 = vmax.xlane.f32.xlu0 %v1266_v14 }
  0xa8   :  { %v423_v15 = vadd.f32 %v422_v12, %v399_v13 }
  0xaa   :  { %v447_v16 = vadd.f32 %v446_v10, %v423_v15 }
  0xab   :  { %v470_v17 = vpop.f32.mrf.mxu0 }
  0xac   :  { %v471_v18 = vadd.f32 %v470_v17, %v447_v16 }
  0xad   :  { %v550_v19 = vpop.f32.mrf.mxu3  ;;  %v492_v20 = vpop.f32.mrf.mxu1 }
  0xae   :  { %v524_v21 = vpop.f32.mrf.mxu2  ;;  %v493_v22 = vadd.f32 %v492_v20, %v471_v18 }
  0xaf   :  { %v551_v23 = vadd.f32 %v550_v19, %v524_v21 }
  0xb0   :  { %v2817_v24 = vmul.f32 0.35355338, %v493_v22 }
  0xb2   :  { %v1269_v26 = vsel %vm38_vm0, %v2817_v24, -inf }
  0xb3   :  { %v574_v25 = vpop.f32.mrf.mxu0  ;;  %1270 = vmax.xlane.f32.xlu1 %v1269_v26 }
  0xb4   :  { %v575_v27 = vadd.f32 %v574_v25, %v551_v23 }
  0xb5   :  { %v644_v28 = vpop.f32.mrf.mxu3  ;;  %v598_v29 = vpop.f32.mrf.mxu1 }
  0xb6   :  { %v622_v30 = vpop.f32.mrf.mxu2  ;;  %v599_v31 = vadd.f32 %v598_v29, %v575_v27 }
  0xb8   :  { %v623_v32 = vadd.f32 %v622_v30, %v599_v31 }
  0xba   :  { %v645_v33 = vadd.f32 %v644_v28, %v623_v32 }
  0xbb   :  { %v676_v34 = vpop.f32.mrf.mxu0 }
  0xbc   :  { %v2821_v35 = vmul.f32 0.35355338, %v645_v33 }
  0xbd   :  { %v750_v36 = vpop.f32.mrf.mxu3  ;;  %v702_v37 = vpop.f32.mrf.mxu1 }
  0xbe   :  { %v726_v38 = vpop.f32.mrf.mxu2  ;;  %v703_v39 = vadd.f32 %v702_v37, %v676_v34  ;;  %v1272_v40 = vsel %vm38_vm0, %v2821_v35, -inf }
  0xbf   :  { %1273 = vmax.xlane.f32.xlu1 %v1272_v40 }
  0xc0   :  { %v727_v41 = vadd.f32 %v726_v38, %v703_v39 }
  0xc2   :  { %v751_v42 = vadd.f32 %v750_v36, %v727_v41 }
  0xc3   :  { %v774_v43 = vpop.f32.mrf.mxu0 }
  0xc4   :  { %v775_v44 = vadd.f32 %v774_v43, %v751_v42 }
  0xc5   :  { %v854_v45 = vpop.f32.mrf.mxu3  ;;  %v796_v46 = vpop.f32.mrf.mxu1 }
  0xc6   :  { %v828_v47 = vpop.f32.mrf.mxu2  ;;  %v797_v48 = vadd.f32 %v796_v46, %v775_v44 }
  0xc7   :  { %v855_v49 = vadd.f32 %v854_v45, %v828_v47 }
  0xc8   :  { %v2825_v50 = vmul.f32 0.35355338, %v797_v48 }
  0xca   :  { %v1275_v52 = vsel %vm38_vm0, %v2825_v50, -inf }
  0xcb   :  { %v878_v51 = vpop.f32.mrf.mxu0  ;;  %1276 = vmax.xlane.f32.xlu2 %v1275_v52 }
  0xcc   :  { %v879_v53 = vadd.f32 %v878_v51, %v855_v49 }
  0xcd   :  { %v902_v54 = vpop.f32.mrf.mxu1  ;;  %v948_v57 = vpop.f32.mrf.mxu3 }
  0xce   :  { %v926_v55 = vpop.f32.mrf.mxu2  ;;  %v903_v56 = vadd.f32 %v902_v54, %v879_v53 }
  0xd0   :  { %v927_v58 = vadd.f32 %v926_v55, %v903_v56 }
  0xd2   :  { %v949_v59 = vadd.f32 %v948_v57, %v927_v58 }
  0xd3   :  { %v980_v63 = vpop.f32.mrf.mxu0 }
  0xd4   :  { %v2829_v60 = vmul.f32 0.35355338, %v949_v59 }
  0xd5   :  { %v1006_v0 = vpop.f32.mrf.mxu1  ;;  %v1054_v1 = vpop.f32.mrf.mxu3 }
  0xd6   :  { %v1278_v61 = vsel %vm38_vm0, %v2829_v60, -inf  ;;  %v1007_v2 = vadd.f32 %v1006_v0, %v980_v63  ;;  %v1030_v3 = vpop.f32.mrf.mxu2 }
  0xd7   :  { %1279 = vmax.xlane.f32.xlu0 %v1278_v61 }
  0xd8   :  { %v1031_v6 = vadd.f32 %v1030_v3, %v1007_v2 }
  0xda   :  { %v1055_v11 = vadd.f32 %v1054_v1, %v1031_v6 }
  0xdb   :  { %v1078_v4 = vpop.f32.mrf.mxu0 }
  0xdc   :  { %v1079_v14 = vadd.f32 %v1078_v4, %v1055_v11 }
  0xdd   :  { %v1100_v10 = vpop.f32.mrf.mxu1  ;;  %v1158_v12 = vpop.f32.mrf.mxu3 }
  0xde   :  { %v1132_v13 = vpop.f32.mrf.mxu2  ;;  %v1101_v19 = vadd.f32 %v1100_v10, %v1079_v14 }
  0xdf   :  { %v1159_v15 = vadd.f32 %v1158_v12, %v1132_v13 }
  0xe0   :  { %v2839_v25 = vmul.f32 0.35355338, %v1101_v19 }
  0xe2   :  { %v1281_v28 = vsel %vm38_vm0, %v2839_v25, -inf }
  0xe3   :  { %v1182_v16 = vpop.f32.mrf.mxu0 }
  0xe4   :  { %v1183_v21 = vadd.f32 %v1182_v16, %v1159_v15 }
  0xe5   :  { %v1252_v30 = vpop.f32.mrf.mxu3 }
  0xe6   :  { %v1230_v27 = vpop.f32.mrf.mxu2 }
 0x10e   :  { %v1265_v5 = vpop.xlane.xlu0 %1264 }
 0x10f   :  { %v1287_v7 = vsub.f32 %v2809_v62, %v1265_v5  ;;  %v1206_v62 = vpop.f32.mrf.mxu1 }
 0x110   :  { %v1207_v26 = vadd.f32 %v1206_v62, %v1183_v21 }
 0x111   :  { %v1295_v8 = vmul.f32 1.442695, %v1287_v7 }
 0x112   :  { %v1231_v29 = vadd.f32 %v1230_v27, %v1207_v26 }
 0x113   :  { %2659 = vpow2.f32 %v1295_v8  ;;  %v32_v8 = vld [vmem:[%s3031_s2 + $0x10] sm:$0xff] }
 0x114   :  { %v1253_v33 = vadd.f32 %v1252_v30, %v1231_v29  ;;  %v2889_v16 = vand.u32 4294901760, %v32_v8 }
 0x116   :  { %v2848_v37 = vmul.f32 0.35355338, %v1253_v33  ;;  %v2892_v21 = vsub.f32 %v32_v8, %v2889_v16 }
 0x118   :  { %v1284_v38 = vsel %vm38_vm0, %v2848_v37, -inf  ;;  %v1799_v29 = vand.u32 4294901760, %v2892_v21 }
 0x119   :  { %v2834_v17 = vpop.eup %2659 }
 0x11a   :  { %v1268_v18 = vpop.xlane.xlu0 %1267  ;;  %v1311_v20 = vsel %vm38_vm0, %v2834_v17, 0.0 }
 0x11b   :  { %v1288_v22 = vsub.f32 %v2813_v9, %v1268_v18  ;;  %1312 = vadd.xlane.f32.xlu2 %v1311_v20 }
 0x11d   :  { %v1297_v23 = vmul.f32 1.442695, %v1288_v22 }
 0x11f   :  { %2661 = vpow2.f32 %v1297_v23 }
 0x123   :  { %1282 = vmax.xlane.f32.xlu2 %v1281_v28 }
 0x125   :  { %v2843_v31 = vpop.eup %2661 }
 0x126   :  { %v1271_v32 = vpop.xlane.xlu1 %1270  ;;  %v1314_v9 = vsel %vm38_vm0, %v2843_v31, 0.0 }
 0x127   :  { %v1289_v34 = vsub.f32 %v2817_v24, %v1271_v32  ;;  %1315 = vadd.xlane.f32.xlu1 %v1314_v9 }
 0x129   :  { %v1299_v36 = vmul.f32 1.442695, %v1289_v34 }
 0x12b   :  { %2663 = vpow2.f32 %v1299_v36 }
 0x12f   :  { %1285 = vmax.xlane.f32.xlu1 %v1284_v38 }
 0x131   :  { %v2852_v39 = vpop.eup %2663 }
 0x132   :  { %v1274_v40 = vpop.xlane.xlu1 %1273  ;;  %v1317_v41 = vsel %vm38_vm0, %v2852_v39, 0.0 }
 0x133   :  { %v1290_v42 = vsub.f32 %v2821_v35, %v1274_v40  ;;  %1318 = vadd.xlane.f32.xlu0 %v1317_v41  ;;  %v1800_v41 = vsub.f32 %v2892_v21, %v1799_v29 }
 0x135   :  { %v1301_v43 = vmul.f32 1.442695, %v1290_v42 }
 0x137   :  { %2665 = vpow2.f32 %v1301_v43 }
 0x13d   :  { %v2857_v24 = vpop.eup %2665 }
 0x13e   :  { %v1277_v44 = vpop.xlane.xlu2 %1276  ;;  %v1320_v45 = vsel %vm38_vm0, %v2857_v24, 0.0 }
 0x13f   :  { %v1291_v46 = vsub.f32 %v2825_v50, %v1277_v44  ;;  %1321 = vadd.xlane.f32.xlu2 %v1320_v45  ;;  %v30_v50 = vld [vmem:[%s3031_s2] sm:$0xff] }
 0x140   :  { %v1473_v55 = vand.u32 4294901760, %v30_v50 }
 0x141   :  { %v1303_v47 = vmul.f32 1.442695, %v1291_v46 }
 0x142   :  { %v1500_v56 = vsub.f32 %v30_v50, %v1473_v55  ;;  %1550 = vmatpush.msra.mxu3 %v1473_v55  ;;  %1474 = vmatpush.msra.mxu0 %v1473_v55 }
 0x143   :  { %2667 = vpow2.f32 %v1303_v47 }
 0x144   :  { %v1501_v57 = vand.u32 4294901760, %v1500_v56  ;;  %1527 = vmatpush.msra.mxu2 %v1500_v56 }
 0x146   :  { %v1502_v58 = vsub.f32 %v1500_v56, %v1501_v57  ;;  %1576 = vmatpush.msrb.mxu0 %v1501_v57 }
 0x148   :  { %v1503_v59 = vand.u32 4294901760, %v1502_v58 }
 0x149   :  { %v2862_v48 = vpop.eup %2667 }
 0x14a   :  { %v1280_v49 = vpop.xlane.xlu0 %1279  ;;  %v1323_v35 = vsel %vm38_vm0, %v2862_v48, 0.0  ;;  %1504 = vmatpush.msra.mxu1 %v1503_v59 }
 0x14b   :  { %v1292_v51 = vsub.f32 %v2829_v60, %v1280_v49  ;;  %1324 = vadd.xlane.f32.xlu0 %v1323_v35  ;;  %v31_v60 = vld [vmem:[%s3031_s2 + $0x8] sm:$0xff]  ;;  %v1801_v49 = vand.u32 4294901760, %v1800_v41 }
 0x14c   :  { %1598 = vmatpush.msrb.mxu1 %v1473_v55  ;;  %v2877_v61 = vand.u32 4294901760, %v31_v60 }
 0x14d   :  { %v1305_v52 = vmul.f32 1.442695, %v1292_v51 }
 0x14e   :  { %v2880_v63 = vsub.f32 %v31_v60, %v2877_v61  ;;  %1623 = vmatpush.msrb.mxu2 %v2877_v61 }
 0x14f   :  { %2669 = vpow2.f32 %v1305_v52 }
 0x150   :  { %v1650_v0 = vand.u32 4294901760, %v2880_v63 }
 0x152   :  { %v1651_v1 = vsub.f32 %v2880_v63, %v1650_v0 }
 0x154   :  { %v1652_v3 = vand.u32 4294901760, %v1651_v1 }
 0x155   :  { %v2867_v53 = vpop.eup %2669 }
 0x156   :  { %v1326_v54 = vsel %vm38_vm0, %v2867_v53, 0.0  ;;  %1653 = vmatpush.msrb.mxu3 %v1652_v3 }
 0x157   :  { %1327 = vadd.xlane.f32.xlu1 %v1326_v54 }
 0x18e   :  { %v1313_v2 = vpop.xlane.xlu2 %1312 }
 0x18f   :  { %2671 = vrcp.f32 %v1313_v2  ;;  %v1346_v11 = vand.u32 2147483648, %v1313_v2  ;;  %v1344_v14 = vand.u32 2147483647, %v1313_v2  ;;  %vm1340_vm2 = vweird.f32 %v1313_v2 }
 0x191   :  { %v1347_v19 = vor.u32 1.1754944e-38, %v1346_v11  ;;  %vm1345_vm4 = vcmp.eq.f32.partialorder %v1344_v14, 8.507059e+37 }
 0x195   :  { %v2672_v4 = vpop.eup %2671 }
 0x196   :  { %v1336_v5 = vmul.f32 %v2672_v4, %v1313_v2  ;;  %v1283_v6 = vpop.xlane.xlu2 %1282  ;;  %vm1341_vm1 = vweird.f32 %v2672_v4 }
 0x197   :  { %v1293_v7 = vsub.f32 %v2839_v25, %v1283_v6  ;;  %vm1342_vm3 = vmor %vm1340_vm2, %vm1341_vm1 }
 0x198   :  { %v1337_v10 = vsub.f32 1.0, %v1336_v5 }
 0x199   :  { %v1307_v12 = vmul.f32 1.442695, %v1293_v7 }
 0x19a   :  { %v1338_v13 = vmul.f32 %v2672_v4, %v1337_v10  ;;  %v1316_v15 = vpop.xlane.xlu1 %1315 }
 0x19b   :  { %2673 = vpow2.f32 %v1307_v12  ;;  %v1361_v38 = vand.u32 2147483648, %v1316_v15  ;;  %v1359_v43 = vand.u32 2147483647, %v1316_v15  ;;  %vm1355_vm6 = vweird.f32 %v1316_v15 }
 0x19c   :  { %v1339_v18 = vadd.f32 %v2672_v4, %v1338_v13  ;;  %2675 = vrcp.f32 %v1316_v15 }
 0x19d   :  { %v1362_v46 = vor.u32 1.1754944e-38, %v1361_v38  ;;  %vm1360_vm8 = vcmp.eq.f32.partialorder %v1359_v43, 8.507059e+37 }
 0x19e   :  { %v1343_v20 = vsel %vm1342_vm3, %v2672_v4, %v1339_v18 }
 0x19f   :  { %v1348_v22 = vsel %vm1345_vm4, %v1347_v19, %v1343_v20 }
 0x1a0   :  { %v1349_v62 = vmul.f32 %v2834_v17, %v1348_v22  ;;  %v33_v17 = vld [vmem:[%s3031_s2 + $0x18] sm:$0xff] }
 0x1a1   :  { %v2895_v23 = vpop.eup %2673  ;;  %v2909_v42 = vand.u32 4294901760, %v33_v17 }
 0x1a2   :  { %v2676_v25 = vpop.eup %2675  ;;  %v1286_v26 = vpop.xlane.xlu1 %1285  ;;  %v1329_v27 = vsel %vm38_vm0, %v2895_v23, 0.0  ;;  %v1456_v28 = vsel %vm38_vm0, %v1349_v62, 0 }
 0x1a3   :  { %v1351_v30 = vmul.f32 %v2676_v25, %v1316_v15  ;;  %v1294_v32 = vsub.f32 %v2848_v37, %v1286_v26  ;;  %1330 = vadd.xlane.f32.xlu2 %v1329_v27  ;;  %v1475_v33 = vand.u32 4294901760, %v1456_v28  ;;  %vm1356_vm5 = vweird.f32 %v2676_v25  ;;  %v35_v27 = vld [vmem:[%s3031_s2 + $0x28] sm:$0xff] }
 0x1a4   :  { %vm1357_vm7 = vmor %vm1355_vm6, %vm1356_vm5  ;;  %v2912_v35 = vsub.f32 %v33_v17, %v2909_v42 }
 0x1a5   :  { %v1352_v9 = vsub.f32 1.0, %v1351_v30  ;;  %v1309_v34 = vmul.f32 1.442695, %v1294_v32  ;;  %1506 = vmatmul.f32.vlgmr.msra.gmra.mxu1 %v1475_v33  ;;  %v1476_v36 = vsub.f32 %v1456_v28, %v1475_v33 }
 0x1a6   :  { %v1319_v40 = vpop.xlane.xlu0 %1318  ;;  %1699 = vmatpush.msra.mxu1 %v2877_v61  ;;  %v1948_v58 = vand.u32 4294901760, %v2912_v35 }
 0x1a7   :  { %v1353_v37 = vmul.f32 %v2676_v25, %v1352_v9  ;;  %2677 = vpow2.f32 %v1309_v34  ;;  %1530 = vmatmul.f32.vlgmr.msra.gmra.mxu2 %v1476_v36  ;;  %v1477_v44 = vand.u32 4294901760, %v1476_v36  ;;  %v1374_v1 = vand.u32 2147483647, %v1319_v40 }
 0x1a8   :  { %2679 = vrcp.f32 %v1319_v40  ;;  %1725 = vmatpush.msra.mxu2 %v1650_v0  ;;  %v34_v0 = vld [vmem:[%s3031_s2 + $0x20] sm:$0xff]  ;;  %v1376_v2 = vand.u32 2147483648, %v1319_v40  ;;  %v1949_v5 = vsub.f32 %v2912_v35, %v1948_v58  ;;  %vm1370_vm10 = vweird.f32 %v1319_v40 }
 0x1a9   :  { %v1354_v45 = vadd.f32 %v2676_v25, %v1353_v37  ;;  %1554 = vmatmul.f32.vlgmr.msra.gmra.mxu3 %v1477_v44  ;;  %v1478_v47 = vsub.f32 %v1476_v36, %v1477_v44  ;;  %vm1375_vm12 = vcmp.eq.f32.partialorder %v1374_v1, 8.507059e+37  ;;  %v2950_v9 = vand.u32 4294901760, %v35_v27 }
 0x1aa   :  { %1747 = vmatpush.msra.mxu3 %v2877_v61  ;;  %v1377_v10 = vor.u32 1.1754944e-38, %v1376_v2  ;;  %v1950_v13 = vand.u32 4294901760, %v1949_v5 }
 0x1ab   :  { %v1358_v51 = vsel %vm1357_vm7, %v2676_v25, %v1354_v45  ;;  %v1479_v54 = vand.u32 4294901760, %v1478_v47  ;;  %v2955_v37 = vsub.f32 %v35_v27, %v2950_v9 }
 0x1ac   :  { %v1363_v52 = vsel %vm1360_vm8, %v1362_v46, %v1358_v51 }
 0x1ad   :  { %v2915_v50 = vpop.eup %2677  ;;  %1600 = vmatmul.f32.vlgmr.msrb.gmra.mxu1 %v1475_v33  ;;  %v1364_v55 = vmul.f32 %v2843_v31, %v1363_v52  ;;  %1480 = vmatmul.f32.vlgmr.msra.gmra.mxu0 %v1479_v54  ;;  %v2246_v51 = vand.u32 4294901760, %v2955_v37 }
 0x1ae   :  { %v2680_v56 = vpop.eup %2679  ;;  %v1332_v57 = vsel %vm38_vm0, %v2915_v50, 0.0  ;;  %1802 = vmatpush.msrb.mxu1 %v1801_v49  ;;  %1676 = vmatpush.msra.mxu0 %v2880_v63  ;;  %v2930_v63 = vand.u32 4294901760, %v34_v0 }
 0x1af   :  { %v1366_v59 = vmul.f32 %v2680_v56, %v1319_v40  ;;  %1333 = vadd.xlane.f32.xlu0 %v1332_v57  ;;  %v1605_v60 = vsel %vm38_vm0, %v1364_v55, 0  ;;  %vm1371_vm9 = vweird.f32 %v2680_v56  ;;  %v2247_v57 = vsub.f32 %v2955_v37, %v2246_v51 }
 0x1b0   :  { %v1624_v61 = vand.u32 4294901760, %v1605_v60  ;;  %vm1372_vm11 = vmor %vm1370_vm10, %vm1371_vm9  ;;  %v2935_v14 = vsub.f32 %v34_v0, %v2930_v63 }
 0x1b1   :  { %v1367_v31 = vsub.f32 1.0, %v1366_v59 }
 0x1b2   :  { %v1625_v3 = vsub.f32 %v1605_v60, %v1624_v61  ;;  %1655 = vmatmul.f32.vlgmr.msrb.gmra.mxu3 %v1624_v61  ;;  %v1322_v4 = vpop.xlane.xlu2 %1321  ;;  %v2097_v25 = vand.u32 4294901760, %v2935_v14 }
 0x1b3   :  { %v1368_v6 = vmul.f32 %v2680_v56, %v1367_v31  ;;  %2681 = vrcp.f32 %v1322_v4  ;;  %1848 = vmatpush.msrb.mxu3 %v2889_v16  ;;  %v1391_v28 = vand.u32 2147483648, %v1322_v4  ;;  %vm1385_vm14 = vweird.f32 %v1322_v4 }
 0x1b4   :  { %v1626_v7 = vand.u32 4294901760, %v1625_v3  ;;  %v2098_v17 = vsub.f32 %v2935_v14, %v2097_v25 }
 0x1b5   :  { %v1369_v8 = vadd.f32 %v2680_v56, %v1368_v6  ;;  %1578 = vmatmul.f32.vlgmr.msrb.gmra.mxu0 %v1475_v33  ;;  %v1392_v38 = vor.u32 1.1754944e-38, %v1391_v28 }
 0x1b6   :  { %1703 = vmatmul.f32.vlgmr.msra.gmra.mxu1 %v1626_v7  ;;  %v1627_v11 = vsub.f32 %v1625_v3, %v1626_v7  ;;  %1772 = vmatpush.msrb.mxu0 %v2889_v16 }
 0x1b7   :  { %v1373_v12 = vsel %vm1372_vm11, %v2680_v56, %v1369_v8  ;;  %1896 = vmatpush.msra.mxu1 %v2889_v16 }
 0x1b8   :  { %v1378_v15 = vsel %vm1375_vm12, %v1377_v10, %v1373_v12  ;;  %v1628_v18 = vand.u32 4294901760, %v1627_v11 }
 0x1b9   :  { %v2682_v19 = vpop.eup %2681  ;;  %v1379_v20 = vmul.f32 %v2852_v39, %v1378_v15  ;;  %v1389_v39 = vand.u32 2147483647, %v1322_v4 }
 0x1ba   :  { %v1381_v22 = vmul.f32 %v2682_v19, %v1322_v4  ;;  %1629 = vmatmul.f32.vlgmr.msrb.gmra.mxu2 %v1628_v18  ;;  %1749 = vmatmul.f32.vlgmr.msra.gmra.mxu3 %v1624_v61  ;;  %vm1386_vm13 = vweird.f32 %v2682_v19 }
 0x1bb   :  { %v1754_v62 = vsel %vm38_vm0, %v1379_v20, 0  ;;  %1825 = vmatpush.msrb.mxu2 %v2892_v21  ;;  %1951 = vmatpush.msra.mxu3 %v1950_v13  ;;  %vm1387_vm15 = vmor %vm1385_vm14, %vm1386_vm13  ;;  %vm1390_vm1 = vcmp.eq.f32.partialorder %v1389_v39, 8.507059e+37 }
 0x1bc   :  { %v1382_v16 = vsub.f32 1.0, %v1381_v22  ;;  %v1773_v26 = vand.u32 4294901760, %v1754_v62 }
 0x1bd   :  { %1679 = vmatmul.f32.vlgmr.msra.gmra.mxu0 %v1625_v3 }
 0x1be   :  { %v1383_v30 = vmul.f32 %v2682_v19, %v1382_v16  ;;  %v1774_v32 = vsub.f32 %v1754_v62, %v1773_v26  ;;  %1804 = vmatmul.f32.vlgmr.msrb.gmra.mxu1 %v1773_v26  ;;  %v1325_v33 = vpop.xlane.xlu0 %1324  ;;  %1874 = vmatpush.msra.mxu0 %v1799_v29  ;;  %v2099_v29 = vand.u32 4294901760, %v2098_v17  ;;  %v37_v17 = vld [vmem:[%s3031_s2 + $0x38] sm:$0xff] }
 0x1bf   :  { %2683 = vrcp.f32 %v1325_v33  ;;  %1997 = vmatpush.msrb.mxu1 %v2909_v42  ;;  %v1406_v52 = vand.u32 2147483648, %v1325_v33  ;;  %v1404_v56 = vand.u32 2147483647, %v1325_v33  ;;  %vm1400_vm3 = vweird.f32 %v1325_v33 }
 0x1c0   :  { %v1384_v34 = vadd.f32 %v2682_v19, %v1383_v30  ;;  %v1775_v36 = vand.u32 4294901760, %v1774_v32 }
 0x1c1   :  { %vm1405_vm5 = vcmp.eq.f32.partialorder %v1404_v56, 8.507059e+37 }
 0x1c2   :  { %v1388_v40 = vsel %vm1387_vm15, %v2682_v19, %v1384_v34  ;;  %1727 = vmatmul.f32.vlgmr.msra.gmra.mxu2 %v1624_v61  ;;  %1852 = vmatmul.f32.vlgmr.msrb.gmra.mxu3 %v1775_v36  ;;  %v1776_v41 = vsub.f32 %v1774_v32, %v1775_v36  ;;  %v1407_v61 = vor.u32 1.1754944e-38, %v1406_v52 }
 0x1c3   :  { %v1393_v21 = vsel %vm1390_vm1, %v1392_v38, %v1388_v40  ;;  %1921 = vmatpush.msra.mxu2 %v2909_v42  ;;  %2045 = vmatpush.msrb.mxu3 %v2909_v42 }
 0x1c4   :  { %v1777_v43 = vand.u32 4294901760, %v1776_v41  ;;  %v1394_v44 = vmul.f32 %v2857_v24, %v1393_v21 }
 0x1c5   :  { %v2684_v45 = vpop.eup %2683 }
 0x1c6   :  { %v1396_v46 = vmul.f32 %v2684_v45, %v1325_v33  ;;  %1778 = vmatmul.f32.vlgmr.msrb.gmra.mxu0 %v1777_v43  ;;  %1898 = vmatmul.f32.vlgmr.msra.gmra.mxu1 %v1773_v26  ;;  %v1903_v47 = vsel %vm38_vm0, %v1394_v44, 0  ;;  %vm1401_vm2 = vweird.f32 %v2684_v45 }
 0x1c7   :  { %v1922_v49 = vand.u32 4294901760, %v1903_v47  ;;  %1974 = vmatpush.msrb.mxu0 %v2912_v35  ;;  %2100 = vmatpush.msra.mxu1 %v2099_v29  ;;  %vm1402_vm4 = vmor %vm1400_vm3, %vm1401_vm2  ;;  %v2248_v35 = vand.u32 4294901760, %v2247_v57 }
 0x1c8   :  { %v1397_v42 = vsub.f32 1.0, %v1396_v46 }
 0x1c9   :  { %v1923_v54 = vsub.f32 %v1903_v47, %v1922_v49 }
 0x1ca   :  { %v1398_v55 = vmul.f32 %v2684_v45, %v1397_v42  ;;  %1828 = vmatmul.f32.vlgmr.msrb.gmra.mxu2 %v1774_v32  ;;  %1953 = vmatmul.f32.vlgmr.msra.gmra.mxu3 %v1922_v49  ;;  %v1328_v24 = vpop.xlane.xlu1 %1327 }
 0x1cb   :  { %2685 = vrcp.f32 %v1328_v24  ;;  %2023 = vmatpush.msrb.mxu2 %v1948_v58  ;;  %2146 = vmatpush.msra.mxu3 %v2930_v63  ;;  %v1924_v60 = vand.u32 4294901760, %v1923_v54  ;;  %v1421_v8 = vand.u32 2147483648, %v1328_v24  ;;  %vm1415_vm7 = vweird.f32 %v1328_v24 }
 0x1cc   :  { %v1399_v59 = vadd.f32 %v2684_v45, %v1398_v55 }
 0x1cd   :  { %v1925_v31 = vsub.f32 %v1923_v54, %v1924_v60  ;;  %v1422_v13 = vor.u32 1.1754944e-38, %v1421_v8 }
 0x1ce   :  { %v1403_v0 = vsel %vm1402_vm4, %v2684_v45, %v1399_v59  ;;  %1876 = vmatmul.f32.vlgmr.msra.gmra.mxu0 %v1773_v26  ;;  %2001 = vmatmul.f32.vlgmr.msrb.gmra.mxu1 %v1924_v60 }
 0x1cf   :  { %v1408_v1 = vsel %vm1405_vm5, %v1407_v61, %v1403_v0  ;;  %2070 = vmatpush.msra.mxu0 %v2930_v63  ;;  %2194 = vmatpush.msrb.mxu1 %v2930_v63  ;;  %v1926_v58 = vand.u32 4294901760, %v1925_v31  ;;  %v1419_v63 = vand.u32 2147483647, %v1328_v24 }
 0x1d0   :  { %v1409_v2 = vmul.f32 %v2862_v48, %v1408_v1 }
 0x1d1   :  { %v2686_v3 = vpop.eup %2685  ;;  %vm1420_vm9 = vcmp.eq.f32.partialorder %v1419_v63, 8.507059e+37 }
 0x1d2   :  { %v1411_v4 = vmul.f32 %v2686_v3, %v1328_v24  ;;  %1927 = vmatmul.f32.vlgmr.msra.gmra.mxu2 %v1926_v58  ;;  %2047 = vmatmul.f32.vlgmr.msrb.gmra.mxu3 %v1922_v49  ;;  %v2052_v5 = vsel %vm38_vm0, %v1409_v2, 0  ;;  %vm1416_vm6 = vweird.f32 %v2686_v3 }
 0x1d3   :  { %v2071_v6 = vand.u32 4294901760, %v2052_v5  ;;  %2123 = vmatpush.msra.mxu2 %v2935_v14  ;;  %2249 = vmatpush.msrb.mxu3 %v2248_v35  ;;  %vm1417_vm8 = vmor %vm1415_vm7, %vm1416_vm6 }
 0x1d4   :  { %v1412_v7 = vsub.f32 1.0, %v1411_v4 }
 0x1d5   :  { %v2072_v10 = vsub.f32 %v2052_v5, %v2071_v6 }
 0x1d6   :  { %v1413_v11 = vmul.f32 %v2686_v3, %v1412_v7  ;;  %1977 = vmatmul.f32.vlgmr.msrb.gmra.mxu0 %v1923_v54  ;;  %2102 = vmatmul.f32.vlgmr.msra.gmra.mxu1 %v2071_v6 }
 0x1d7   :  { %v2073_v12 = vand.u32 4294901760, %v2072_v10  ;;  %2172 = vmatpush.msrb.mxu0 %v2097_v25  ;;  %2295 = vmatpush.msra.mxu1 %v2950_v9 }
 0x1d8   :  { %v1414_v48 = vadd.f32 %v2686_v3, %v1413_v11 }
 0x1d9   :  { %v2074_v15 = vsub.f32 %v2072_v10, %v2073_v12 }
 0x1da   :  { %v1418_v18 = vsel %vm1417_vm8, %v2686_v3, %v1414_v48  ;;  %2025 = vmatmul.f32.vlgmr.msrb.gmra.mxu2 %v1922_v49  ;;  %2150 = vmatmul.f32.vlgmr.msra.gmra.mxu3 %v2073_v12 }
 0x1db   :  { %v1423_v19 = vsel %vm1420_vm9, %v1422_v13, %v1418_v18  ;;  %v2075_v20 = vand.u32 4294901760, %v2074_v15  ;;  %2219 = vmatpush.msrb.mxu2 %v2950_v9  ;;  %2343 = vmatpush.msra.mxu3 %v2950_v9  ;;  %v2516_v9 = vand.u32 4294901760, %v37_v17 }
 0x1dc   :  { %v1424_v14 = vmul.f32 %v2867_v53, %v1423_v19  ;;  %v36_v53 = vld [vmem:[%s3031_s2 + $0x30] sm:$0xff] }
 0x1dd   :  { %v2367_v28 = vand.u32 4294901760, %v36_v53  ;;  %v2988_v34 = vsub.f32 %v37_v17, %v2516_v9 }
 0x1de   :  { %2076 = vmatmul.f32.vlgmr.msra.gmra.mxu0 %v2075_v20  ;;  %2196 = vmatmul.f32.vlgmr.msrb.gmra.mxu1 %v2071_v6  ;;  %v2201_v22 = vsel %vm38_vm0, %v1424_v14, 0 }
 0x1df   :  { %v2220_v62 = vand.u32 4294901760, %v2201_v22  ;;  %2272 = vmatpush.msra.mxu0 %v2955_v37  ;;  %v2394_v30 = vsub.f32 %v36_v53, %v2367_v28  ;;  %v2544_v36 = vand.u32 4294901760, %v2988_v34 }
 0x1e1   :  { %v2221_v25 = vsub.f32 %v2201_v22, %v2220_v62  ;;  %v2395_v39 = vand.u32 4294901760, %v2394_v30  ;;  %v2545_v38 = vsub.f32 %v2988_v34, %v2544_v36 }
 0x1e2   :  { %2126 = vmatmul.f32.vlgmr.msra.gmra.mxu2 %v2072_v10  ;;  %2251 = vmatmul.f32.vlgmr.msrb.gmra.mxu3 %v2220_v62 }
 0x1e3   :  { %v2222_v16 = vand.u32 4294901760, %v2221_v25  ;;  %2321 = vmatpush.msra.mxu2 %v2246_v51  ;;  %2444 = vmatpush.msrb.mxu3 %v2367_v28  ;;  %v2396_v32 = vsub.f32 %v2394_v30, %v2395_v39  ;;  %v2546_v41 = vand.u32 4294901760, %v2545_v38 }
 0x1e5   :  { %v2223_v26 = vsub.f32 %v2221_v25, %v2222_v16  ;;  %v2397_v33 = vand.u32 4294901760, %v2396_v32 }
 0x1e6   :  { %2174 = vmatmul.f32.vlgmr.msrb.gmra.mxu0 %v2071_v6  ;;  %2299 = vmatmul.f32.vlgmr.msra.gmra.mxu1 %v2222_v16 }
 0x1e7   :  { %v2224_v27 = vand.u32 4294901760, %v2223_v26  ;;  %2368 = vmatpush.msrb.mxu0 %v2367_v28  ;;  %2398 = vmatpush.msrb.mxu1 %v2397_v33 }
 0x1e9   :  { %2492 = vmatpush.msra.mxu1 %v2367_v28 }
 0x1ea   :  { %2225 = vmatmul.f32.vlgmr.msrb.gmra.mxu2 %v2224_v27  ;;  %2345 = vmatmul.f32.vlgmr.msra.gmra.mxu3 %v2220_v62 }
 0x1eb   :  { %2421 = vmatpush.msrb.mxu2 %v2394_v30  ;;  %2547 = vmatpush.msra.mxu3 %v2546_v41 }
 0x1ee   :  { %2275 = vmatmul.f32.vlgmr.msra.gmra.mxu0 %v2221_v25 }
 0x1ef   :  { %2470 = vmatpush.msra.mxu0 %v2395_v39 }
 0x1f2   :  { %2323 = vmatmul.f32.vlgmr.msra.gmra.mxu2 %v2220_v62 }
 0x1f3   :  { %2517 = vmatpush.msra.mxu2 %v2516_v9 }
 0x216   :  { %v1331_v40 = vpop.xlane.xlu2 %1330 }
 0x217   :  { %2687 = vrcp.f32 %v1331_v40  ;;  %v1436_v43 = vand.u32 2147483648, %v1331_v40  ;;  %v1434_v45 = vand.u32 2147483647, %v1331_v40  ;;  %vm1430_vm11 = vweird.f32 %v1331_v40 }
 0x219   :  { %v1437_v51 = vor.u32 1.1754944e-38, %v1436_v43  ;;  %vm1435_vm13 = vcmp.eq.f32.partialorder %v1434_v45, 8.507059e+37 }
 0x21d   :  { %v2688_v21 = vpop.eup %2687 }
 0x21e   :  { %v1426_v29 = vmul.f32 %v2688_v21, %v1331_v40  ;;  %vm1431_vm10 = vweird.f32 %v2688_v21 }
 0x21f   :  { %vm1432_vm12 = vmor %vm1430_vm11, %vm1431_vm10 }
 0x220   :  { %v1427_v37 = vsub.f32 1.0, %v1426_v29 }
 0x222   :  { %v1428_v44 = vmul.f32 %v2688_v21, %v1427_v37  ;;  %v1334_v46 = vpop.xlane.xlu0 %1333  ;;  %v1507_v47 = vpop.f32.mrf.mxu1 }
 0x223   :  { %2689 = vrcp.f32 %v1334_v46  ;;  %v1451_v31 = vand.u32 2147483648, %v1334_v46  ;;  %v1449_v3 = vand.u32 2147483647, %v1334_v46  ;;  %vm1445_vm15 = vweird.f32 %v1334_v46 }
 0x224   :  { %v1429_v49 = vadd.f32 %v2688_v21, %v1428_v44 }
 0x225   :  { %v1452_v6 = vor.u32 1.1754944e-38, %v1451_v31  ;;  %vm1450_vm2 = vcmp.eq.f32.partialorder %v1449_v3, 8.507059e+37 }
 0x226   :  { %v1433_v42 = vsel %vm1432_vm12, %v2688_v21, %v1429_v49 }
 0x227   :  { %v1438_v52 = vsel %vm1435_vm13, %v1437_v51, %v1433_v42 }
 0x228   :  { %v1439_v54 = vmul.f32 %v2895_v23, %v1438_v52 }
 0x229   :  { %v2690_v55 = vpop.eup %2689 }
 0x22a   :  { %v1441_v56 = vmul.f32 %v2690_v55, %v1334_v46  ;;  %v2350_v24 = vsel %vm38_vm0, %v1439_v54, 0  ;;  %v1481_v57 = vpop.f32.mrf.mxu0  ;;  %v1531_v0 = vpop.f32.mrf.mxu2  ;;  %vm1446_vm14 = vweird.f32 %v2690_v55 }
 0x22b   :  { %v2369_v59 = vand.u32 4294901760, %v2350_v24  ;;  %v1508_v61 = vadd.f32 %v1507_v47, %v1481_v57  ;;  %v1601_v1 = vpop.f32.mrf.mxu1  ;;  %vm1447_vm1 = vmor %vm1445_vm15, %vm1446_vm14 }
 0x22c   :  { %v1442_v60 = vsub.f32 1.0, %v1441_v56  ;;  %v1555_v35 = vpop.f32.mrf.mxu3 }
 0x22d   :  { %2400 = vmatmul.f32.vlgmr.msrb.gmra.mxu1 %v2369_v59  ;;  %v2370_v58 = vsub.f32 %v2350_v24, %v2369_v59  ;;  %v1532_v4 = vadd.f32 %v1531_v0, %v1508_v61 }
 0x22e   :  { %v1443_v2 = vmul.f32 %v2690_v55, %v1442_v60  ;;  %2593 = vmatpush.msrb.mxu1 %v2516_v9 }
 0x22f   :  { %2424 = vmatmul.f32.vlgmr.msrb.gmra.mxu2 %v2370_v58  ;;  %v2371_v23 = vand.u32 4294901760, %v2370_v58  ;;  %v1556_v10 = vadd.f32 %v1555_v35, %v1532_v4 }
 0x230   :  { %v1444_v5 = vadd.f32 %v2690_v55, %v1443_v2  ;;  %2619 = vmatpush.msrb.mxu2 %v2544_v36 }
 0x231   :  { %2448 = vmatmul.f32.vlgmr.msrb.gmra.mxu3 %v2371_v23  ;;  %v2372_v7 = vsub.f32 %v2370_v58, %v2371_v23 }
 0x232   :  { %v1448_v8 = vsel %vm1447_vm1, %v2690_v55, %v1444_v5  ;;  %2641 = vmatpush.msrb.mxu3 %v2516_v9  ;;  %v1579_v63 = vpop.f32.mrf.mxu0 }
 0x233   :  { %v1453_v11 = vsel %vm1450_vm2, %v1452_v6, %v1448_v8  ;;  %v2373_v12 = vand.u32 4294901760, %v2372_v7  ;;  %v1580_v13 = vadd.f32 %v1579_v63, %v1556_v10  ;;  %v1704_v20 = vpop.f32.mrf.mxu1 }
 0x234   :  { %v1454_v48 = vmul.f32 %v2915_v50, %v1453_v11 }
 0x235   :  { %v1656_v15 = vpop.f32.mrf.mxu3  ;;  %2374 = vmatmul.f32.vlgmr.msrb.gmra.mxu0 %v2373_v12  ;;  %2494 = vmatmul.f32.vlgmr.msra.gmra.mxu1 %v2369_v59  ;;  %v1602_v18 = vadd.f32 %v1601_v1, %v1580_v13 }
 0x236   :  { %v2499_v19 = vsel %vm38_vm0, %v1454_v48, 0  ;;  %2570 = vmatpush.msrb.mxu0 %v2988_v34 }
 0x237   :  { %v2518_v14 = vand.u32 4294901760, %v2499_v19  ;;  %2647 = vst.msk [vmem:[%s3032_s3] sm:$0xff] %vm38_vm0, %v1602_v18 }
 0x239   :  { %v2519_v22 = vsub.f32 %v2499_v19, %v2518_v14  ;;  %2549 = vmatmul.f32.vlgmr.msra.gmra.mxu3 %v2518_v14 }
 0x23a   :  { %v1680_v62 = vpop.f32.mrf.mxu0 }
 0x23b   :  { %v2520_v50 = vand.u32 4294901760, %v2519_v22  ;;  %v1805_v30 = vpop.f32.mrf.mxu1 }
 0x23d   :  { %v1630_v25 = vpop.f32.mrf.mxu2  ;;  %v1750_v16 = vpop.f32.mrf.mxu3  ;;  %2472 = vmatmul.f32.vlgmr.msra.gmra.mxu0 %v2369_v59  ;;  %2597 = vmatmul.f32.vlgmr.msrb.gmra.mxu1 %v2520_v50  ;;  %v2521_v26 = vsub.f32 %v2519_v22, %v2520_v50 }
 0x23e   :  { %v1657_v27 = vadd.f32 %v1656_v15, %v1630_v25 }
 0x23f   :  { %v2522_v53 = vand.u32 4294901760, %v2521_v26 }
 0x240   :  { %v1681_v28 = vadd.f32 %v1680_v62, %v1657_v27 }
 0x241   :  { %2523 = vmatmul.f32.vlgmr.msra.gmra.mxu2 %v2522_v53  ;;  %2643 = vmatmul.f32.vlgmr.msrb.gmra.mxu3 %v2518_v14 }
 0x242   :  { %v1705_v32 = vadd.f32 %v1704_v20, %v1681_v28 }
 0x243   :  { %v1779_v39 = vpop.f32.mrf.mxu0  ;;  %v1899_v36 = vpop.f32.mrf.mxu1 }
 0x244   :  { %v1806_v40 = vadd.f32 %v1805_v30, %v1779_v39 }
 0x245   :  { %v1728_v33 = vpop.f32.mrf.mxu2  ;;  %v1853_v17 = vpop.f32.mrf.mxu3  ;;  %2573 = vmatmul.f32.vlgmr.msrb.gmra.mxu0 %v2519_v22 }
 0x246   :  { %v1729_v9 = vadd.f32 %v1728_v33, %v1705_v32 }
 0x248   :  { %v1751_v34 = vadd.f32 %v1750_v16, %v1729_v9 }
 0x249   :  { %2621 = vmatmul.f32.vlgmr.msrb.gmra.mxu2 %v2518_v14 }
 0x24a   :  { %2648 = vst.msk [vmem:[%s3032_s3 + $0x8] sm:$0xff] %vm38_vm0, %v1751_v34 }
 0x24b   :  { %v1877_v38 = vpop.f32.mrf.mxu0  ;;  %v2002_v46 = vpop.f32.mrf.mxu1 }
 0x24d   :  { %v1829_v41 = vpop.f32.mrf.mxu2  ;;  %v1954_v29 = vpop.f32.mrf.mxu3 }
 0x24e   :  { %v1830_v21 = vadd.f32 %v1829_v41, %v1806_v40 }
 0x250   :  { %v1854_v37 = vadd.f32 %v1853_v17, %v1830_v21 }
 0x252   :  { %v1878_v43 = vadd.f32 %v1877_v38, %v1854_v37 }
 0x253   :  { %v1978_v44 = vpop.f32.mrf.mxu0  ;;  %v2103_v24 = vpop.f32.mrf.mxu1 }
 0x254   :  { %v1900_v45 = vadd.f32 %v1899_v36, %v1878_v43 }
 0x255   :  { %v1928_v47 = vpop.f32.mrf.mxu2  ;;  %v2048_v42 = vpop.f32.mrf.mxu3 }
 0x256   :  { %2649 = vst.msk [vmem:[%s3032_s3 + $0x10] sm:$0xff] %vm38_vm0, %v1900_v45  ;;  %v1955_v49 = vadd.f32 %v1954_v29, %v1928_v47 }
 0x258   :  { %v1979_v51 = vadd.f32 %v1978_v44, %v1955_v49 }
 0x25a   :  { %v2003_v54 = vadd.f32 %v2002_v46, %v1979_v51 }
 0x25b   :  { %v2077_v52 = vpop.f32.mrf.mxu0  ;;  %v2197_v35 = vpop.f32.mrf.mxu1 }
 0x25c   :  { %v2104_v60 = vadd.f32 %v2103_v24, %v2077_v52 }
 0x25d   :  { %v2026_v55 = vpop.f32.mrf.mxu2  ;;  %v2151_v59 = vpop.f32.mrf.mxu3 }
 0x25e   :  { %v2027_v56 = vadd.f32 %v2026_v55, %v2003_v54 }
 0x260   :  { %v2049_v57 = vadd.f32 %v2048_v42, %v2027_v56 }
 0x262   :  { %2650 = vst.msk [vmem:[%s3032_s3 + $0x18] sm:$0xff] %vm38_vm0, %v2049_v57 }
 0x263   :  { %v2175_v61 = vpop.f32.mrf.mxu0  ;;  %v2300_v7 = vpop.f32.mrf.mxu1 }
 0x265   :  { %v2127_v0 = vpop.f32.mrf.mxu2  ;;  %v2252_v3 = vpop.f32.mrf.mxu3 }
 0x266   :  { %v2128_v31 = vadd.f32 %v2127_v0, %v2104_v60 }
 0x268   :  { %v2152_v1 = vadd.f32 %v2151_v59, %v2128_v31 }
 0x26a   :  { %v2176_v58 = vadd.f32 %v2175_v61, %v2152_v1 }
 0x26b   :  { %v2276_v5 = vpop.f32.mrf.mxu0 }
 0x26c   :  { %v2198_v2 = vadd.f32 %v2197_v35, %v2176_v58 }
 0x26d   :  { %v2226_v4 = vpop.f32.mrf.mxu2  ;;  %v2346_v63 = vpop.f32.mrf.mxu3 }
 0x26e   :  { %2651 = vst.msk [vmem:[%s3032_s3 + $0x20] sm:$0xff] %vm38_vm0, %v2198_v2  ;;  %v2253_v23 = vadd.f32 %v2252_v3, %v2226_v4 }
 0x270   :  { %v2277_v6 = vadd.f32 %v2276_v5, %v2253_v23 }
 0x272   :  { %v2301_v8 = vadd.f32 %v2300_v7, %v2277_v6 }
 0x275   :  { %v2324_v10 = vpop.f32.mrf.mxu2 }
 0x276   :  { %v2325_v11 = vadd.f32 %v2324_v10, %v2301_v8 }
 0x278   :  { %v2347_v12 = vadd.f32 %v2346_v63, %v2325_v11 }
 0x27a   :  { %2652 = vst.msk [vmem:[%s3032_s3 + $0x28] sm:$0xff] %vm38_vm0, %v2347_v12 }
 0x2aa   :  { %v2401_v48 = vpop.f32.mrf.mxu1 }
 0x2b2   :  { %v2375_v13 = vpop.f32.mrf.mxu0  ;;  %v2425_v18 = vpop.f32.mrf.mxu2 }
 0x2b3   :  { %v2402_v15 = vadd.f32 %v2401_v48, %v2375_v13  ;;  %v2495_v50 = vpop.f32.mrf.mxu1 }
 0x2b4   :  { %v2449_v20 = vpop.f32.mrf.mxu3 }
 0x2b5   :  { %v2426_v19 = vadd.f32 %v2425_v18, %v2402_v15 }
 0x2b7   :  { %v2450_v14 = vadd.f32 %v2449_v20, %v2426_v19 }
 0x2ba   :  { %v2473_v22 = vpop.f32.mrf.mxu0 }
 0x2bb   :  { %v2474_v62 = vadd.f32 %v2473_v22, %v2450_v14  ;;  %v2598_v30 = vpop.f32.mrf.mxu1 }
 0x2bc   :  { %v2550_v16 = vpop.f32.mrf.mxu3 }
 0x2bd   :  { %v2496_v25 = vadd.f32 %v2495_v50, %v2474_v62 }
 0x2bf   :  { %2653 = vst.msk [vmem:[%s3032_s3 + $0x30] sm:$0xff] %vm38_vm0, %v2496_v25 }
 0x2c2   :  { %v2574_v53 = vpop.f32.mrf.mxu0 }
 0x2c4   :  { %v2524_v26 = vpop.f32.mrf.mxu2  ;;  %v2644_v17 = vpop.f32.mrf.mxu3 }
 0x2c5   :  { %v2551_v27 = vadd.f32 %v2550_v16, %v2524_v26 }
 0x2c7   :  { %v2575_v28 = vadd.f32 %v2574_v53, %v2551_v27 }
 0x2c9   :  { %v2599_v39 = vadd.f32 %v2598_v30, %v2575_v28 }
 0x2cc   :  { %v2622_v32 = vpop.f32.mrf.mxu2 }
 0x2cd   :  { %v2623_v33 = vadd.f32 %v2622_v32, %v2599_v39 }
 0x2cf   :  { %v2645_v9 = vadd.f32 %v2644_v17, %v2623_v33 }
 0x2d1   :  { %2654 = vst.msk [vmem:[%s3032_s3 + $0x38] sm:$0xff] %vm38_vm0, %v2645_v9 }

// kernel: fwd.14
= control target key start
LH: loop header
LB: loop body
LE: loop exit
PB: predicated region body
PF: predicated region fallthrough
CT: control target
= control target key end

     0   :  { %vm17_vm0 = vcmask 261120   ;;  %s1290_s1 = inlined_call_operand.vmem [shape: f32[4,32,32], index: 1, kind: input, shape index: {}]   ;;  %s1291_s0 = inlined_call_operand.vmem [shape: f32[16,32], index: 0, kind: input, shape index: {}]   ;;  %s1292_s2 = inlined_call_operand.vmem [shape: f32[4,16,32], index: 2, kind: output, shape index: {}]  }
   0x1   :  { %v16_v0 = vld [vmem:[%s1290_s1 + $0x18] sm:$0xff]  ;;  %v15_v1 = vld [vmem:[%s1290_s1 + $0x10] sm:$0xff]  ;;  %v14_v2 = vld [vmem:[%s1290_s1 + $0x8] sm:$0xff] }
   0x2   :  { %v960_v3 = vand.u32 4294901760, %v16_v0  ;;  %v962_v4 = vand.u32 4294901760, %v15_v1  ;;  %v964_v5 = vand.u32 4294901760, %v14_v2  ;;  %v13_v6 = vld [vmem:[%s1290_s1] sm:$0xff]  ;;  %v921_v8 = vld [vmem:[%s1290_s1 + $0x38] sm:$0xff]  ;;  %v920_v12 = vld [vmem:[%s1290_s1 + $0x30] sm:$0xff] }
   0x3   :  { %v11_v7 = vld [vmem:[%s1291_s0] sm:$0xff]  ;;  %v975_v9 = vand.u32 4294901760, %v13_v6  ;;  %v978_v11 = vand.u32 4294901760, %v921_v8  ;;  %v12_v13 = vld [vmem:[%s1291_s0 + $0x8] sm:$0xff]  ;;  %v1001_v20 = vand.u32 4294901760, %v920_v12  ;;  %v927_v57 = vld [vmem:[%s1290_s1 + $0x58] sm:$0xff] }
   0x4   :  { %v19_v10 = vsel %vm17_vm0, %v11_v7, 0  ;;  %37 = vmatpush.msra.mxu0 %v960_v3  ;;  %v74_v14 = vsub.f32 %v16_v0, %v960_v3  ;;  %154 = vmatpush.msra.mxu3 %v960_v3  ;;  %v80_v15 = vsub.f32 %v15_v1, %v962_v4  ;;  %v991_v16 = vsub.f32 %v14_v2, %v964_v5  ;;  %v919_v37 = vld [vmem:[%s1290_s1 + $0x28] sm:$0xff]  ;;  %v918_v38 = vld [vmem:[%s1290_s1 + $0x20] sm:$0xff]  ;;  %v926_v62 = vld [vmem:[%s1290_s1 + $0x50] sm:$0xff] }
   0x5   :  { %v993_v17 = vand.u32 4294901760, %v19_v10  ;;  %v996_v18 = vsub.f32 %v13_v6, %v975_v9  ;;  %v999_v19 = vsub.f32 %v921_v8, %v978_v11  ;;  %v22_v21 = vsel %vm17_vm0, %v12_v13, 0  ;;  %v925_v2 = vld [vmem:[%s1290_s1 + $0x48] sm:$0xff] }
   0x6   :  { %39 = vmatpush.msra.mxu0 %v962_v4  ;;  %120 = vmatpush.msra.mxu2 %v74_v14  ;;  %v75_v22 = vand.u32 4294901760, %v74_v14  ;;  %v81_v24 = vand.u32 4294901760, %v80_v15  ;;  %v87_v25 = vand.u32 4294901760, %v991_v16  ;;  %v1012_v28 = vand.u32 4294901760, %v22_v21 }
   0x7   :  { %v1006_v23 = vsub.f32 %v19_v10, %v993_v17  ;;  %156 = vmatpush.msra.mxu3 %v962_v4  ;;  %v298_v26 = vand.u32 4294901760, %v999_v19  ;;  %v93_v27 = vand.u32 4294901760, %v996_v18  ;;  %v1015_v29 = vsub.f32 %v920_v12, %v1001_v20  ;;  %v933_v12 = vld [vmem:[%s1290_s1 + $0x78] sm:$0xff] }
   0x8   :  { %41 = vmatpush.msra.mxu0 %v964_v5  ;;  %123 = vmatpush.msra.mxu2 %v80_v15  ;;  %v76_v30 = vsub.f32 %v74_v14, %v75_v22  ;;  %v82_v32 = vsub.f32 %v80_v15, %v81_v24  ;;  %v88_v33 = vsub.f32 %v991_v16, %v87_v25  ;;  %v1051_v48 = vand.u32 4294901760, %v919_v37 }
   0x9   :  { %v1019_v31 = vand.u32 4294901760, %v1006_v23  ;;  %158 = vmatpush.msra.mxu3 %v964_v5  ;;  %v299_v34 = vsub.f32 %v999_v19, %v298_v26  ;;  %v1027_v35 = vsub.f32 %v22_v21, %v1012_v28  ;;  %v304_v36 = vand.u32 4294901760, %v1015_v29  ;;  %v931_v21 = vld [vmem:[%s1290_s1 + $0x68] sm:$0xff] }
   0xa   :  { %43 = vmatpush.msra.mxu0 %v975_v9  ;;  %v77_v39 = vand.u32 4294901760, %v76_v30  ;;  %126 = vmatpush.msra.mxu2 %v991_v16  ;;  %v83_v41 = vand.u32 4294901760, %v82_v32  ;;  %v94_v42 = vsub.f32 %v996_v18, %v93_v27  ;;  %v89_v47 = vand.u32 4294901760, %v88_v33  ;;  %v932_v16 = vld [vmem:[%s1290_s1 + $0x70] sm:$0xff]  ;;  %v930_v30 = vld [vmem:[%s1290_s1 + $0x60] sm:$0xff] }
   0xb   :  { %v47_v40 = vsub.f32 %v1006_v23, %v1019_v31  ;;  %160 = vmatpush.msra.mxu3 %v975_v9  ;;  %v300_v43 = vand.u32 4294901760, %v299_v34  ;;  %v1043_v44 = vand.u32 4294901760, %v1027_v35  ;;  %v305_v45 = vsub.f32 %v1015_v29, %v304_v36 }
   0xc   :  { %189 = vmatpush.msrb.mxu0 %v75_v22  ;;  %78 = vmatpush.msra.mxu1 %v77_v39  ;;  %v1053_v49 = vand.u32 4294901760, %v918_v38  ;;  %v95_v51 = vand.u32 4294901760, %v94_v42  ;;  %v309_v53 = vsub.f32 %v919_v37, %v1051_v48  ;;  %v1075_v61 = vand.u32 4294901760, %v927_v57 }
   0xd   :  { %v1048_v46 = vand.u32 4294901760, %v47_v40  ;;  %129 = vmatpush.msra.mxu2 %v996_v18  ;;  %164 = vmatmul.f32.vlgmr.msra.gmra.mxu3 %v1019_v31  ;;  %v306_v50 = vand.u32 4294901760, %v305_v45  ;;  %v55_v52 = vsub.f32 %v1027_v35, %v1043_v44  ;;  %v1083_v1 = vand.u32 4294901760, %v926_v62 }
   0xe   :  { %132 = vmatmul.f32.vlgmr.msra.gmra.mxu2 %v1006_v23  ;;  %84 = vmatpush.msra.mxu1 %v83_v41  ;;  %v1062_v54 = vsub.f32 %v918_v38, %v1053_v49  ;;  %v310_v55 = vand.u32 4294901760, %v309_v53  ;;  %v1097_v6 = vand.u32 4294901760, %v925_v2  ;;  %v1134_v14 = vand.u32 4294901760, %v933_v12 }
   0xf   :  { %49 = vmatmul.f32.vlgmr.msra.gmra.mxu0 %v1048_v46  ;;  %260 = vmatpush.msrb.mxu2 %v978_v11  ;;  %v1070_v58 = vand.u32 4294901760, %v55_v52  ;;  %v1104_v7 = vsub.f32 %v926_v62, %v1083_v1  ;;  %v1174_v33 = vand.u32 4294901760, %v930_v30 }
  0x10   :  { %301 = vmatpush.msrb.mxu3 %v300_v43  ;;  %90 = vmatpush.msra.mxu1 %v89_v47  ;;  %v316_v56 = vand.u32 4294901760, %v1062_v54  ;;  %v311_v59 = vsub.f32 %v309_v53, %v310_v55  ;;  %v1117_v10 = vsub.f32 %v925_v2, %v1097_v6 }
  0x11   :  { %193 = vmatpush.msrb.mxu0 %v81_v24  ;;  %262 = vmatpush.msrb.mxu2 %v1001_v20  ;;  %v763_v40 = vsub.f32 %v930_v30, %v1174_v33 }
  0x12   :  { %307 = vmatpush.msrb.mxu3 %v306_v50  ;;  %96 = vmatpush.msra.mxu1 %v95_v51  ;;  %v317_v60 = vsub.f32 %v1062_v54, %v316_v56  ;;  %v312_v63 = vand.u32 4294901760, %v311_v59  ;;  %v534_v15 = vand.u32 4294901760, %v1117_v10 }
  0x13   :  { %197 = vmatpush.msrb.mxu0 %v87_v25  ;;  %98 = vmatmul.f32.vlgmr.msra.gmra.mxu1 %v993_v17  ;;  %v764_v47 = vand.u32 4294901760, %v763_v40 }
  0x14   :  { %264 = vmatpush.msrb.mxu2 %v1051_v48  ;;  %224 = vmatpush.msrb.mxu1 %v960_v3  ;;  %v318_v0 = vand.u32 4294901760, %v317_v60  ;;  %v1092_v3 = vsub.f32 %v927_v57, %v1075_v61 }
  0x15   :  { %201 = vmatpush.msrb.mxu0 %v93_v27  ;;  %170 = vmatmul.f32.gmra.mxu3 %v1043_v44  ;;  %v535_v27 = vsub.f32 %v1117_v10, %v534_v15  ;;  %v765_v50 = vsub.f32 %v763_v40, %v764_v47 }
  0x16   :  { %137 = vmatmul.f32.gmra.mxu2 %v1027_v35  ;;  %226 = vmatpush.msrb.mxu1 %v962_v4  ;;  %v924_v4 = vld [vmem:[%s1290_s1 + $0x40] sm:$0xff] }
  0x17   :  { %57 = vmatmul.f32.gmra.mxu0 %v1070_v58  ;;  %313 = vmatpush.msrb.mxu3 %v312_v63  ;;  %v1112_v8 = vand.u32 4294901760, %v924_v4  ;;  %v536_v38 = vand.u32 4294901760, %v535_v27  ;;  %v766_v52 = vand.u32 4294901760, %v765_v50 }
  0x18   :  { %266 = vmatpush.msrb.mxu2 %v1053_v49  ;;  %228 = vmatpush.msrb.mxu1 %v964_v5  ;;  %v522_v5 = vand.u32 4294901760, %v1092_v3 }
  0x19   :  { %319 = vmatpush.msrb.mxu3 %v318_v0  ;;  %343 = vmatpush.msra.mxu0 %v999_v19  ;;  %v1132_v13 = vsub.f32 %v924_v4, %v1112_v8  ;;  %v1146_v19 = vsub.f32 %v933_v12, %v1134_v14 }
  0x1a   :  { %412 = vmatpush.msra.mxu2 %v298_v26  ;;  %230 = vmatpush.msrb.mxu1 %v975_v9  ;;  %v528_v9 = vand.u32 4294901760, %v1104_v7  ;;  %v1161_v26 = vand.u32 4294901760, %v931_v21 }
  0x1b   :  { %447 = vmatpush.msra.mxu3 %v978_v11  ;;  %102 = vmatmul.f32.gmra.mxu1 %v1012_v28  ;;  %v540_v24 = vand.u32 4294901760, %v1132_v13 }
  0x1c   :  { %416 = vmatpush.msra.mxu2 %v304_v36  ;;  %377 = vmatpush.msra.mxu1 %v978_v11  ;;  %v523_v11 = vsub.f32 %v1092_v3, %v522_v5  ;;  %v529_v18 = vsub.f32 %v1104_v7, %v528_v9  ;;  %v757_v37 = vsub.f32 %v931_v21, %v1161_v26 }
  0x1d   :  { %346 = vmatpush.msra.mxu0 %v1015_v29  ;;  %321 = vmatmul.f32.vlgmr.msrb.gmra.mxu3 %v993_v17  ;;  %v746_v29 = vand.u32 4294901760, %v1146_v19  ;;  %v541_v36 = vsub.f32 %v1132_v13, %v540_v24 }
  0x1e   :  { %272 = vmatmul.f32.vlgmr.msrb.gmra.mxu2 %v1048_v46  ;;  %449 = vmatpush.msra.mxu3 %v1001_v20  ;;  %v524_v22 = vand.u32 4294901760, %v523_v11  ;;  %v530_v32 = vand.u32 4294901760, %v529_v18  ;;  %v758_v43 = vand.u32 4294901760, %v757_v37 }
  0x1f   :  { %203 = vmatmul.f32.vlgmr.msrb.gmra.mxu0 %v993_v17  ;;  %379 = vmatpush.msra.mxu1 %v1001_v20  ;;  %v1148_v20 = vand.u32 4294901760, %v932_v16  ;;  %v747_v39 = vsub.f32 %v1146_v19, %v746_v29  ;;  %v542_v42 = vand.u32 4294901760, %v541_v36 }
  0x20   :  { %420 = vmatpush.msra.mxu2 %v310_v55  ;;  %349 = vmatpush.msra.mxu0 %v309_v53 }
  0x21   :  { %451 = vmatpush.msra.mxu3 %v1051_v48  ;;  %381 = vmatpush.msra.mxu1 %v1051_v48  ;;  %v1159_v25 = vsub.f32 %v932_v16, %v1148_v20  ;;  %v748_v45 = vand.u32 4294901760, %v747_v39 }
  0x22   :  { %424 = vmatpush.msra.mxu2 %v316_v56  ;;  %352 = vmatpush.msra.mxu0 %v1062_v54 }
  0x23   :  { %453 = vmatpush.msra.mxu3 %v1053_v49  ;;  %232 = vmatmul.f32.vlgmr.msrb.gmra.mxu1 %v993_v17  ;;  %v752_v34 = vand.u32 4294901760, %v1159_v25 }
  0x24   :  { %567 = vmatpush.msrb.mxu2 %v1092_v3  ;;  %383 = vmatpush.msra.mxu1 %v1053_v49  ;;  %v759_v49 = vsub.f32 %v757_v37, %v758_v43 }
  0x25   :  { %484 = vmatpush.msrb.mxu0 %v1075_v61  ;;  %325 = vmatmul.f32.gmra.mxu3 %v1012_v28  ;;  %v753_v41 = vsub.f32 %v1159_v25, %v752_v34 }
  0x26   :  { %280 = vmatmul.f32.gmra.mxu2 %v1070_v58  ;;  %601 = vmatpush.msrb.mxu3 %v1075_v61  ;;  %v760_v51 = vand.u32 4294901760, %v759_v49 }
  0x27   :  { %207 = vmatmul.f32.gmra.mxu0 %v1012_v28  ;;  %525 = vmatpush.msrb.mxu1 %v524_v22  ;;  %v754_v48 = vand.u32 4294901760, %v753_v41 }
  0x28   :  { %570 = vmatpush.msrb.mxu2 %v1104_v7  ;;  %486 = vmatpush.msrb.mxu0 %v1083_v1 }
  0x29   :  { %603 = vmatpush.msrb.mxu3 %v1083_v1  ;;  %531 = vmatpush.msrb.mxu1 %v530_v32 }
  0x2a   :  { %573 = vmatpush.msrb.mxu2 %v1117_v10  ;;  %488 = vmatpush.msrb.mxu0 %v1097_v6 }
  0x2b   :  { %605 = vmatpush.msrb.mxu3 %v1097_v6  ;;  %236 = vmatmul.f32.gmra.mxu1 %v1012_v28 }
  0x2c   :  { %576 = vmatpush.msrb.mxu2 %v1132_v13  ;;  %537 = vmatpush.msrb.mxu1 %v536_v38 }
  0x2d   :  { %490 = vmatpush.msrb.mxu0 %v1112_v8  ;;  %455 = vmatmul.f32.vlgmr.msra.gmra.mxu3 %v993_v17 }
  0x2e   :  { %426 = vmatmul.f32.vlgmr.msra.gmra.mxu2 %v993_v17  ;;  %607 = vmatpush.msrb.mxu3 %v1112_v8 }
  0x2f   :  { %355 = vmatmul.f32.vlgmr.msra.gmra.mxu0 %v1006_v23  ;;  %543 = vmatpush.msrb.mxu1 %v542_v42 }
  0x30   :  { %708 = vmatpush.msra.mxu2 %v1134_v14  ;;  %636 = vmatpush.msra.mxu0 %v522_v5 }
  0x31   :  { %749 = vmatpush.msra.mxu3 %v748_v45 }
  0x32   :  { %710 = vmatpush.msra.mxu2 %v1148_v20  ;;  %640 = vmatpush.msra.mxu0 %v528_v9 }
  0x33   :  { %755 = vmatpush.msra.mxu3 %v754_v48  ;;  %387 = vmatmul.f32.vlgmr.msra.gmra.mxu1 %v1019_v31 }
  0x34   :  { %712 = vmatpush.msra.mxu2 %v1161_v26  ;;  %671 = vmatpush.msra.mxu1 %v1075_v61 }
  0x35   :  { %644 = vmatpush.msra.mxu0 %v534_v15  ;;  %459 = vmatmul.f32.gmra.mxu3 %v1012_v28 }
  0x36   :  { %430 = vmatmul.f32.gmra.mxu2 %v1012_v28  ;;  %673 = vmatpush.msra.mxu1 %v1083_v1 }
  0x37   :  { %360 = vmatmul.f32.gmra.mxu0 %v1027_v35  ;;  %761 = vmatpush.msra.mxu3 %v760_v51 }
  0x38   :  { %714 = vmatpush.msra.mxu2 %v1174_v33  ;;  %675 = vmatpush.msra.mxu1 %v1097_v6 }
  0x39   :  { %648 = vmatpush.msra.mxu0 %v540_v24  ;;  %767 = vmatpush.msra.mxu3 %v766_v52 }
  0x3a   :  { %677 = vmatpush.msra.mxu1 %v1112_v8 }
  0x3b   :  { %393 = vmatmul.f32.gmra.mxu1 %v1043_v44 }
  0x3d   :  { %611 = vmatmul.f32.vlgmr.msrb.gmra.mxu3 %v1019_v31 }
  0x3e   :  { %579 = vmatmul.f32.vlgmr.msrb.gmra.mxu2 %v1006_v23  ;;  %895 = vmatpush.msrb.mxu3 %v1134_v14 }
  0x3f   :  { %496 = vmatmul.f32.vlgmr.msrb.gmra.mxu0 %v1048_v46  ;;  %860 = vmatpush.msrb.mxu2 %v746_v29 }
  0x40   :  { %791 = vmatpush.msrb.mxu0 %v1146_v19  ;;  %897 = vmatpush.msrb.mxu3 %v1148_v20 }
  0x41   :  { %864 = vmatpush.msrb.mxu2 %v752_v34 }
  0x42   :  { %794 = vmatpush.msrb.mxu0 %v1159_v25  ;;  %899 = vmatpush.msrb.mxu3 %v1161_v26 }
  0x43   :  { %868 = vmatpush.msrb.mxu2 %v758_v43  ;;  %545 = vmatmul.f32.vlgmr.msrb.gmra.mxu1 %v993_v17 }
  0x44   :  { %797 = vmatpush.msrb.mxu0 %v757_v37  ;;  %825 = vmatpush.msrb.mxu1 %v1134_v14 }
  0x45   :  { %617 = vmatmul.f32.gmra.mxu3 %v1043_v44  ;;  %872 = vmatpush.msrb.mxu2 %v764_v47 }
  0x46   :  { %584 = vmatmul.f32.gmra.mxu2 %v1027_v35  ;;  %827 = vmatpush.msrb.mxu1 %v1148_v20 }
  0x47   :  { %504 = vmatmul.f32.gmra.mxu0 %v1070_v58  ;;  %901 = vmatpush.msrb.mxu3 %v1174_v33 }
  0x48   :  { %800 = vmatpush.msrb.mxu0 %v763_v40  ;;  %829 = vmatpush.msrb.mxu1 %v1161_v26 }
  0x4a   :  { %831 = vmatpush.msrb.mxu1 %v1174_v33 }
  0x4b   :  { %549 = vmatmul.f32.gmra.mxu1 %v1012_v28 }
  0x4d   :  { %769 = vmatmul.f32.vlgmr.msra.gmra.mxu3 %v993_v17 }
  0x4e   :  { %720 = vmatmul.f32.vlgmr.msra.gmra.mxu2 %v1048_v46 }
  0x4f   :  { %650 = vmatmul.f32.vlgmr.msra.gmra.mxu0 %v993_v17 }
  0x53   :  { %679 = vmatmul.f32.vlgmr.msra.gmra.mxu1 %v993_v17 }
  0x55   :  { %773 = vmatmul.f32.gmra.mxu3 %v1012_v28 }
  0x56   :  { %728 = vmatmul.f32.gmra.mxu2 %v1070_v58 }
  0x57   :  { %654 = vmatmul.f32.gmra.mxu0 %v1012_v28 }
  0x5b   :  { %683 = vmatmul.f32.gmra.mxu1 %v1012_v28 }
  0x5d   :  { %903 = vmatmul.f32.vlgmr.msrb.gmra.mxu3 %v993_v17 }
  0x5e   :  { %874 = vmatmul.f32.vlgmr.msrb.gmra.mxu2 %v993_v17 }
  0x5f   :  { %803 = vmatmul.f32.vlgmr.msrb.gmra.mxu0 %v1006_v23 }
  0x63   :  { %835 = vmatmul.f32.vlgmr.msrb.gmra.mxu1 %v1019_v31 }
  0x65   :  { %907 = vmatmul.f32.gmra.mxu3 %v1012_v28 }
  0x66   :  { %878 = vmatmul.f32.gmra.mxu2 %v1012_v28 }
  0x67   :  { %808 = vmatmul.f32.gmra.mxu0 %v1027_v35 }
  0x6b   :  { %841 = vmatmul.f32.gmra.mxu1 %v1043_v44 }
  0x8c   :  { %v50_v46 = vpop.f32.mrf.mxu0 }
  0x90   :  { %v99_v53 = vpop.f32.mrf.mxu1  ;;  %v165_v55 = vpop.f32.mrf.mxu3 }
  0x91   :  { %v133_v54 = vpop.f32.mrf.mxu2  ;;  %v100_v57 = vadd.f32 %v99_v53, %v50_v46 }
  0x93   :  { %v134_v59 = vadd.f32 %v133_v54, %v100_v57 }
  0x94   :  { %v58_v56 = vpop.f32.mrf.mxu0 }
  0x95   :  { %v166_v31 = vadd.f32 %v165_v55, %v134_v59 }
  0x98   :  { %v103_v58 = vpop.f32.mrf.mxu1  ;;  %v171_v23 = vpop.f32.mrf.mxu3 }
  0x99   :  { %v138_v17 = vpop.f32.mrf.mxu2  ;;  %v104_v61 = vadd.f32 %v103_v58, %v58_v56 }
  0x9b   :  { %v139_v0 = vadd.f32 %v138_v17, %v104_v61 }
  0x9c   :  { %v204_v60 = vpop.f32.mrf.mxu0 }
  0x9d   :  { %v205_v62 = vadd.f32 %v204_v60, %v166_v31  ;;  %v172_v2 = vadd.f32 %v171_v23, %v139_v0 }
  0xa0   :  { %v233_v63 = vpop.f32.mrf.mxu1  ;;  %v322_v1 = vpop.f32.mrf.mxu3 }
  0xa1   :  { %v273_v28 = vpop.f32.mrf.mxu2  ;;  %v234_v35 = vadd.f32 %v233_v63, %v205_v62 }
  0xa2   :  { %v323_v10 = vadd.f32 %v322_v1, %v273_v28 }
  0xa3   :  { %240 = vst.msk [vmem:[%s1292_s2] sm:$0xff] %vm17_vm0, %v234_v35 }
  0xa4   :  { %v208_v44 = vpop.f32.mrf.mxu0 }
  0xa5   :  { %v209_v3 = vadd.f32 %v208_v44, %v172_v2 }
  0xa8   :  { %v237_v6 = vpop.f32.mrf.mxu1  ;;  %v326_v5 = vpop.f32.mrf.mxu3 }
  0xa9   :  { %v281_v4 = vpop.f32.mrf.mxu2  ;;  %v238_v7 = vadd.f32 %v237_v6, %v209_v3 }
  0xaa   :  { %v327_v18 = vadd.f32 %v326_v5, %v281_v4 }
  0xab   :  { %241 = vst.msk [vmem:[%s1292_s2 + $0x8] sm:$0xff] %vm17_vm0, %v238_v7 }
  0xac   :  { %v356_v8 = vpop.f32.mrf.mxu0 }
  0xad   :  { %v357_v9 = vadd.f32 %v356_v8, %v323_v10 }
  0xb0   :  { %v388_v12 = vpop.f32.mrf.mxu1  ;;  %v456_v14 = vpop.f32.mrf.mxu3 }
  0xb1   :  { %v427_v11 = vpop.f32.mrf.mxu2  ;;  %v389_v13 = vadd.f32 %v388_v12, %v357_v9 }
  0xb3   :  { %v428_v16 = vadd.f32 %v427_v11, %v389_v13 }
  0xb4   :  { %v361_v15 = vpop.f32.mrf.mxu0 }
  0xb5   :  { %v457_v19 = vadd.f32 %v456_v14, %v428_v16  ;;  %v362_v20 = vadd.f32 %v361_v15, %v327_v18 }
  0xb7   :  { %922 = vst.msk [vmem:[%s1292_s2 + $0x10] sm:$0xff] %vm17_vm0, %v457_v19 }
  0xb8   :  { %v394_v21 = vpop.f32.mrf.mxu1  ;;  %v460_v25 = vpop.f32.mrf.mxu3 }
  0xb9   :  { %v431_v22 = vpop.f32.mrf.mxu2  ;;  %v395_v24 = vadd.f32 %v394_v21, %v362_v20 }
  0xbb   :  { %v432_v26 = vadd.f32 %v431_v22, %v395_v24 }
  0xbc   :  { %v497_v27 = vpop.f32.mrf.mxu0 }
  0xbd   :  { %v461_v29 = vadd.f32 %v460_v25, %v432_v26 }
  0xbf   :  { %923 = vst.msk [vmem:[%s1292_s2 + $0x18] sm:$0xff] %vm17_vm0, %v461_v29 }
  0xc0   :  { %v546_v30 = vpop.f32.mrf.mxu1  ;;  %v612_v33 = vpop.f32.mrf.mxu3 }
  0xc1   :  { %v580_v32 = vpop.f32.mrf.mxu2  ;;  %v547_v36 = vadd.f32 %v546_v30, %v497_v27 }
  0xc3   :  { %v581_v39 = vadd.f32 %v580_v32, %v547_v36 }
  0xc4   :  { %v505_v34 = vpop.f32.mrf.mxu0 }
  0xc5   :  { %v613_v42 = vadd.f32 %v612_v33, %v581_v39 }
  0xc8   :  { %v550_v37 = vpop.f32.mrf.mxu1  ;;  %v618_v40 = vpop.f32.mrf.mxu3 }
  0xc9   :  { %v585_v38 = vpop.f32.mrf.mxu2  ;;  %v551_v43 = vadd.f32 %v550_v37, %v505_v34 }
  0xcb   :  { %v586_v49 = vadd.f32 %v585_v38, %v551_v43 }
  0xcc   :  { %v651_v41 = vpop.f32.mrf.mxu0 }
  0xcd   :  { %v652_v45 = vadd.f32 %v651_v41, %v613_v42  ;;  %v619_v46 = vadd.f32 %v618_v40, %v586_v49 }
  0xd0   :  { %v680_v47 = vpop.f32.mrf.mxu1  ;;  %v770_v51 = vpop.f32.mrf.mxu3 }
  0xd1   :  { %v721_v48 = vpop.f32.mrf.mxu2  ;;  %v681_v50 = vadd.f32 %v680_v47, %v652_v45 }
  0xd2   :  { %v771_v17 = vadd.f32 %v770_v51, %v721_v48 }
  0xd3   :  { %928 = vst.msk [vmem:[%s1292_s2 + $0x20] sm:$0xff] %vm17_vm0, %v681_v50 }
  0xd4   :  { %v655_v52 = vpop.f32.mrf.mxu0 }
  0xd5   :  { %v656_v53 = vadd.f32 %v655_v52, %v619_v46 }
  0xd8   :  { %v684_v54 = vpop.f32.mrf.mxu1  ;;  %v774_v57 = vpop.f32.mrf.mxu3 }
  0xd9   :  { %v729_v55 = vpop.f32.mrf.mxu2  ;;  %v685_v56 = vadd.f32 %v684_v54, %v656_v53 }
  0xda   :  { %v775_v28 = vadd.f32 %v774_v57, %v729_v55 }
  0xdb   :  { %929 = vst.msk [vmem:[%s1292_s2 + $0x28] sm:$0xff] %vm17_vm0, %v685_v56 }
  0xdc   :  { %v804_v58 = vpop.f32.mrf.mxu0 }
  0xdd   :  { %v805_v59 = vadd.f32 %v804_v58, %v771_v17 }
  0xe0   :  { %v836_v23 = vpop.f32.mrf.mxu1  ;;  %v904_v61 = vpop.f32.mrf.mxu3 }
  0xe1   :  { %v875_v60 = vpop.f32.mrf.mxu2  ;;  %v837_v31 = vadd.f32 %v836_v23, %v805_v59 }
  0xe3   :  { %v876_v62 = vadd.f32 %v875_v60, %v837_v31 }
  0xe4   :  { %v809_v63 = vpop.f32.mrf.mxu0 }
  0xe5   :  { %v905_v0 = vadd.f32 %v904_v61, %v876_v62  ;;  %v810_v35 = vadd.f32 %v809_v63, %v775_v28 }
  0xe7   :  { %934 = vst.msk [vmem:[%s1292_s2 + $0x30] sm:$0xff] %vm17_vm0, %v905_v0 }
  0xe8   :  { %v842_v1 = vpop.f32.mrf.mxu1  ;;  %v908_v3 = vpop.f32.mrf.mxu3 }
  0xe9   :  { %v879_v44 = vpop.f32.mrf.mxu2  ;;  %v843_v2 = vadd.f32 %v842_v1, %v810_v35 }
  0xeb   :  { %v880_v6 = vadd.f32 %v879_v44, %v843_v2 }
  0xed   :  { %v909_v4 = vadd.f32 %v908_v3, %v880_v6 }
  0xef   :  { %935 = vst.msk [vmem:[%s1292_s2 + $0x38] sm:$0xff] %vm17_vm0, %v909_v4 }

// kernel: fwd.19
= control target key start
LH: loop header
LB: loop body
LE: loop exit
PB: predicated region body
PF: predicated region fallthrough
CT: control target
= control target key end

     0   :  { %vm46_vm0 = vcmask 261120   ;;  %vm576_vm8 = vcmask 523264   ;;  %s1205_s2 = inlined_call_operand.vmem [shape: f32[32,32], index: 2, kind: input, shape index: {}]   ;;  %s1206_s0 = inlined_call_operand.vmem [shape: f32[16,32], index: 0, kind: input, shape index: {}]   ;;  %s1207_s1 = inlined_call_operand.vmem [shape: f32[16,32], index: 1, kind: input, shape index: {}]   ;;  %s1208_s3 = inlined_call_operand.vmem [shape: f32[1,32], index: 3, kind: input, shape index: {}]   ;;  %s1209_s4 = inlined_call_operand.vmem [shape: f32[1,32], index: 4, kind: input, shape index: {}]   ;;  %s1210_s5 = inlined_call_operand.vmem [shape: f32[32,64], index: 5, kind: input, shape index: {}]   ;;  %s1211_s6 = inlined_call_operand.vmem [shape: f32[1,64], index: 6, kind: input, shape index: {}]   ;;  %s1212_s7 = inlined_call_operand.vmem [shape: f32[64,32], index: 7, kind: input, shape index: {}]   ;;  %s1213_s8 = inlined_call_operand.vmem [shape: f32[1,32], index: 8, kind: input, shape index: {}]   ;;  %s1214_s9 = inlined_call_operand.vmem [shape: f32[1,32], index: 9, kind: input, shape index: {}]   ;;  %s1215_s10 = inlined_call_operand.vmem [shape: f32[1,32], index: 10, kind: input, shape index: {}]   ;;  %s1216_s11 = inlined_call_operand.vmem [shape: f32[16,32], index: 11, kind: output, shape index: {}]  }
   0x1   :  { %v43_v0 = vld [vmem:[%s1205_s2 + $0x18] sm:$0xff]  ;;  %v42_v1 = vld [vmem:[%s1205_s2 + $0x10] sm:$0xff]  ;;  %v41_v2 = vld [vmem:[%s1205_s2 + $0x8] sm:$0xff] }
   0x2   :  { %v65_v3 = vand.u32 4294901760, %v43_v0  ;;  %v1010_v4 = vand.u32 4294901760, %v42_v1  ;;  %v1012_v5 = vand.u32 4294901760, %v41_v2  ;;  %v40_v6 = vld [vmem:[%s1205_s2] sm:$0xff]  ;;  %v39_v7 = vld [vmem:[%s1206_s0 + $0x8] sm:$0xff] }
   0x3   :  { %v38_v8 = vld [vmem:[%s1206_s0] sm:$0xff]  ;;  %v1023_v9 = vand.u32 4294901760, %v40_v6  ;;  %v51_v10 = vsel %vm46_vm0, %v39_v7, 0  ;;  %v45_v47 = vld [vmem:[%s1207_s1 + $0x8] sm:$0xff] }
   0x4   :  { %v48_v11 = vsel %vm46_vm0, %v38_v8, 0  ;;  %915 = vmatpush.msra.mxu2 %v65_v3  ;;  %v103_v12 = vsub.f32 %v43_v0, %v65_v3  ;;  %v1027_v13 = vand.u32 4294901760, %v51_v10  ;;  %v109_v14 = vsub.f32 %v42_v1, %v1010_v4  ;;  %66 = vmatpush.msra.mxu0 %v65_v3  ;;  %v44_v38 = vld [vmem:[%s1207_s1] sm:$0xff] }
   0x5   :  { %v115_v15 = vsub.f32 %v41_v2, %v1012_v5  ;;  %v121_v16 = vsub.f32 %v40_v6, %v1023_v9  ;;  %v73_v17 = vand.u32 4294901760, %v48_v11  ;;  %v940_v2 = vmov 32.0  }
   0x6   :  { %916 = vmatpush.msra.mxu2 %v1010_v4  ;;  %v104_v18 = vand.u32 4294901760, %v103_v12  ;;  %v82_v19 = vsub.f32 %v51_v10, %v1027_v13  ;;  %v110_v20 = vand.u32 4294901760, %v109_v14  ;;  %68 = vmatpush.msra.mxu0 %v1010_v4  ;;  %930 = vrcp.f32 %v940_v2 }
   0x7   :  { %v116_v21 = vand.u32 4294901760, %v115_v15  ;;  %v122_v22 = vand.u32 4294901760, %v121_v16  ;;  %v74_v23 = vsub.f32 %v48_v11, %v73_v17 }
   0x8   :  { %917 = vmatpush.msra.mxu2 %v1012_v5  ;;  %v105_v24 = vsub.f32 %v103_v12, %v104_v18  ;;  %v83_v25 = vand.u32 4294901760, %v82_v19  ;;  %v111_v26 = vsub.f32 %v109_v14, %v110_v20  ;;  %70 = vmatpush.msra.mxu0 %v1012_v5 }
   0x9   :  { %v117_v27 = vsub.f32 %v115_v15, %v116_v21  ;;  %v75_v28 = vand.u32 4294901760, %v74_v23  ;;  %v123_v32 = vsub.f32 %v121_v16, %v122_v22 }
   0xa   :  { %918 = vmatpush.msra.mxu2 %v1023_v9  ;;  %v106_v29 = vand.u32 4294901760, %v105_v24  ;;  %v84_v30 = vsub.f32 %v82_v19, %v83_v25  ;;  %v112_v31 = vand.u32 4294901760, %v111_v26  ;;  %72 = vmatpush.msra.mxu0 %v1023_v9  ;;  %v333_v24 = vld [vmem:[%s1210_s5 + $0x8] sm:$0xff] }
   0xb   :  { %v76_v33 = vsub.f32 %v74_v23, %v75_v28  ;;  %v118_v35 = vand.u32 4294901760, %v117_v27  ;;  %v124_v37 = vand.u32 4294901760, %v123_v32  ;;  %v362_v27 = vand.u32 4294901760, %v333_v24 }
   0xc   :  { %149 = vmatpush.msrb.mxu2 %v103_v12  ;;  %218 = vmatpush.msrb.mxu0 %v104_v18  ;;  %v85_v34 = vand.u32 4294901760, %v84_v30 }
   0xd   :  { %919 = vmatpush.msra.mxu3 %v106_v29  ;;  %107 = vmatpush.msra.mxu1 %v106_v29  ;;  %v77_v36 = vand.u32 4294901760, %v76_v33 }
   0xe   :  { %152 = vmatpush.msrb.mxu2 %v109_v14  ;;  %222 = vmatpush.msrb.mxu0 %v110_v20 }
   0xf   :  { %86 = vmatmul.f32.vlgmr.msra.gmra.mxu2 %v85_v34  ;;  %920 = vmatpush.msra.mxu3 %v112_v31 }
  0x10   :  { %155 = vmatpush.msrb.mxu2 %v115_v15  ;;  %113 = vmatpush.msra.mxu1 %v112_v31  ;;  %v408_v31 = vsub.f32 %v333_v24, %v362_v27 }
  0x11   :  { %921 = vmatpush.msra.mxu3 %v118_v35  ;;  %78 = vmatmul.f32.vlgmr.msra.gmra.mxu0 %v77_v36 }
  0x12   :  { %158 = vmatpush.msrb.mxu2 %v121_v16  ;;  %119 = vmatpush.msra.mxu1 %v118_v35  ;;  %v409_v35 = vand.u32 4294901760, %v408_v31 }
  0x13   :  { %922 = vmatpush.msra.mxu3 %v124_v37  ;;  %226 = vmatpush.msrb.mxu0 %v116_v21  ;;  %v334_v21 = vld [vmem:[%s1210_s5 + $0x10] sm:$0xff] }
  0x14   :  { %131 = vmatmul.f32.vlgmr.msra.gmra.mxu3 %v1027_v13  ;;  %125 = vmatpush.msra.mxu1 %v124_v37 }
  0x15   :  { %183 = vmatpush.msrb.mxu3 %v65_v3  ;;  %127 = vmatmul.f32.vlgmr.msra.gmra.mxu1 %v73_v17 }
  0x16   :  { %253 = vmatpush.msrb.mxu1 %v65_v3  ;;  %230 = vmatpush.msrb.mxu0 %v122_v22  ;;  %v931_v3 = vpop.eup %930 }
  0x17   :  { %161 = vmatmul.f32.vlgmr.msrb.gmra.mxu2 %v74_v23  ;;  %185 = vmatpush.msrb.mxu3 %v1010_v4  ;;  %vm282_vm1 = vweird.f32 %v931_v3  ;;  %v360_v23 = vand.u32 4294901760, %v334_v21 }
  0x18   :  { %255 = vmatpush.msrb.mxu1 %v1010_v4  ;;  %v278_v4 = vmul.f32 32.0, %v931_v3 }
  0x19   :  { %187 = vmatpush.msrb.mxu3 %v1012_v5  ;;  %232 = vmatmul.f32.vlgmr.msrb.gmra.mxu0 %v73_v17  ;;  %v402_v26 = vsub.f32 %v334_v21, %v360_v23 }
  0x1a   :  { %257 = vmatpush.msrb.mxu1 %v1012_v5  ;;  %v279_v5 = vsub.f32 1.0, %v278_v4 }
  0x1b   :  { %189 = vmatpush.msrb.mxu3 %v1023_v9  ;;  %v403_v30 = vand.u32 4294901760, %v402_v26 }
  0x1c   :  { %193 = vmatmul.f32.vlgmr.msrb.gmra.mxu3 %v75_v28  ;;  %259 = vmatpush.msrb.mxu1 %v1023_v9  ;;  %v280_v6 = vmul.f32 %v931_v3, %v279_v5  ;;  %v332_v28 = vld [vmem:[%s1210_s5] sm:$0xff] }
  0x1d   :  { %261 = vmatmul.f32.vlgmr.msrb.gmra.mxu1 %v73_v17  ;;  %v364_v32 = vand.u32 4294901760, %v332_v28  ;;  %v404_v34 = vsub.f32 %v402_v26, %v403_v30 }
  0x1e   :  { %v281_v7 = vadd.f32 %v931_v3, %v280_v6 }
  0x1f   :  { %166 = vmatmul.f32.gmra.mxu2 %v82_v19  ;;  %v335_v19 = vld [vmem:[%s1210_s5 + $0x18] sm:$0xff]  ;;  %v414_v36 = vsub.f32 %v332_v28, %v364_v32  ;;  %v405_v37 = vand.u32 4294901760, %v404_v34 }
  0x20   :  { %v1056_v8 = vsel %vm282_vm1, %v931_v3, %v281_v7  ;;  %v358_v20 = vand.u32 4294901760, %v335_v19  ;;  %v567_v34 = vld [vmem:[%s1212_s7 + $0x18] sm:$0xff] }
  0x21   :  { %236 = vmatmul.f32.gmra.mxu0 %v1027_v13 }
  0x22   :  { %359 = vmatpush.msra.mxu2 %v358_v20  ;;  %v396_v22 = vsub.f32 %v335_v19, %v358_v20  ;;  %476 = vmatpush.msra.mxu1 %v358_v20 }
  0x24   :  { %199 = vmatmul.f32.gmra.mxu3 %v83_v25  ;;  %v397_v25 = vand.u32 4294901760, %v396_v22  ;;  %442 = vmatpush.msra.mxu0 %v396_v22 }
  0x25   :  { %265 = vmatmul.f32.gmra.mxu1 %v1027_v13  ;;  %361 = vmatpush.msra.mxu2 %v360_v23 }
  0x26   :  { %478 = vmatpush.msra.mxu1 %v360_v23  ;;  %v398_v29 = vsub.f32 %v396_v22, %v397_v25  ;;  %445 = vmatpush.msra.mxu0 %v402_v26  ;;  %v570_v22 = vld [vmem:[%s1212_s7 + $0x30] sm:$0xff] }
  0x27   :  { %363 = vmatpush.msra.mxu2 %v362_v27  ;;  %v1111_v24 = vand.u32 4294901760, %v570_v22 }
  0x28   :  { %480 = vmatpush.msra.mxu1 %v362_v27  ;;  %v399_v33 = vand.u32 4294901760, %v398_v29  ;;  %448 = vmatpush.msra.mxu0 %v408_v31  ;;  %v568_v29 = vld [vmem:[%s1212_s7 + $0x20] sm:$0xff] }
  0x29   :  { %365 = vmatpush.msra.mxu2 %v364_v32 }
  0x2a   :  { %482 = vmatpush.msra.mxu1 %v364_v32  ;;  %400 = vmatpush.msra.mxu3 %v399_v33  ;;  %v1138_v33 = vand.u32 4294901760, %v568_v29 }
  0x2b   :  { %511 = vmatpush.msrb.mxu2 %v397_v25  ;;  %451 = vmatpush.msra.mxu0 %v414_v36  ;;  %v569_v25 = vld [vmem:[%s1212_s7 + $0x28] sm:$0xff] }
  0x2c   :  { %406 = vmatpush.msra.mxu3 %v405_v37  ;;  %v1123_v28 = vand.u32 4294901760, %v569_v25 }
  0x2d   :  { %515 = vmatpush.msrb.mxu2 %v403_v30 }
  0x2f   :  { %519 = vmatpush.msrb.mxu2 %v409_v35 }
  0x8e   :  { %v79_v39 = vpop.f32.mrf.mxu0 }
  0x8f   :  { %v80_v41 = vadd.f32 %v79_v39, %v44_v38  ;;  %v410_v38 = vsub.f32 %v408_v31, %v409_v35  ;;  %v415_v39 = vand.u32 4294901760, %v414_v36 }
  0x91   :  { %523 = vmatpush.msrb.mxu2 %v415_v39 }
  0x92   :  { %v87_v40 = vpop.f32.mrf.mxu2  ;;  %v128_v42 = vpop.f32.mrf.mxu1 }
  0x93   :  { %v129_v44 = vadd.f32 %v128_v42, %v80_v41  ;;  %v88_v51 = vadd.f32 %v87_v40, %v45_v47  ;;  %v411_v40 = vand.u32 4294901760, %v410_v38  ;;  %v416_v41 = vsub.f32 %v414_v36, %v415_v39 }
  0x94   :  { %v651_v38 = vsub.f32 %v568_v29, %v1138_v33  ;;  %v1150_v39 = vand.u32 4294901760, %v567_v34 }
  0x95   :  { %412 = vmatpush.msra.mxu3 %v411_v40  ;;  %v417_v42 = vand.u32 4294901760, %v416_v41  ;;  %v566_v40 = vld [vmem:[%s1212_s7 + $0x10] sm:$0xff] }
  0x96   :  { %v233_v48 = vpop.f32.mrf.mxu0 }
  0x97   :  { %v132_v43 = vpop.f32.mrf.mxu3  ;;  %418 = vmatpush.msra.mxu3 %v417_v42 }
  0x98   :  { %v133_v55 = vadd.f32 %v132_v43, %v88_v51 }
  0x99   :  { %546 = vmatpush.msrb.mxu3 %v358_v20  ;;  %v571_v20 = vld [vmem:[%s1212_s7 + $0x38] sm:$0xff] }
  0x9a   :  { %v162_v45 = vpop.f32.mrf.mxu2  ;;  %v262_v50 = vpop.f32.mrf.mxu1  ;;  %v1103_v21 = vand.u32 4294901760, %v571_v20 }
  0x9b   :  { %v163_v46 = vadd.f32 %v162_v45, %v129_v44  ;;  %548 = vmatpush.msrb.mxu3 %v360_v23 }
  0x9c   :  { %v1109_v23 = vsub.f32 %v571_v20, %v1103_v21  ;;  %592 = vmatpush.msrb.mxu0 %v1103_v21 }
  0x9d   :  { %550 = vmatpush.msrb.mxu3 %v362_v27  ;;  %v1120_v27 = vsub.f32 %v570_v22, %v1111_v24 }
  0x9e   :  { %v237_v60 = vpop.f32.mrf.mxu0  ;;  %v634_v26 = vand.u32 4294901760, %v1109_v23  ;;  %594 = vmatpush.msrb.mxu0 %v1111_v24 }
  0x9f   :  { %v194_v49 = vpop.f32.mrf.mxu3  ;;  %552 = vmatpush.msrb.mxu3 %v364_v32  ;;  %v640_v31 = vand.u32 4294901760, %v1120_v27  ;;  %v1135_v32 = vsub.f32 %v569_v25, %v1123_v28 }
  0xa0   :  { %v195_v52 = vadd.f32 %v194_v49, %v163_v46  ;;  %v635_v30 = vsub.f32 %v1109_v23, %v634_v26  ;;  %596 = vmatpush.msrb.mxu0 %v1123_v28 }
  0xa1   :  { %v641_v36 = vsub.f32 %v1120_v27, %v640_v31  ;;  %v646_v37 = vand.u32 4294901760, %v1135_v32 }
  0xa2   :  { %v234_v53 = vadd.f32 %v233_v48, %v195_v52  ;;  %v167_v54 = vpop.f32.mrf.mxu2  ;;  %v266_v62 = vpop.f32.mrf.mxu1  ;;  %v636_v35 = vand.u32 4294901760, %v635_v30  ;;  %598 = vmatpush.msrb.mxu0 %v1138_v33 }
  0xa3   :  { %v168_v57 = vadd.f32 %v167_v54, %v133_v55  ;;  %v642_v41 = vand.u32 4294901760, %v641_v36  ;;  %v647_v42 = vsub.f32 %v1135_v32, %v646_v37 }
  0xa4   :  { %v263_v56 = vadd.f32 %v262_v50, %v234_v53  ;;  %637 = vmatpush.msrb.mxu1 %v636_v35  ;;  %600 = vmatpush.msrb.mxu0 %v1150_v39 }
  0xa6   :  { %v271_v58 = vsel %vm46_vm0, %v263_v56, 0.0  ;;  %643 = vmatpush.msrb.mxu1 %v642_v41 }
  0xa7   :  { %v200_v59 = vpop.f32.mrf.mxu3  ;;  %272 = vadd.xlane.f32.xlu0 %v271_v58 }
  0xa8   :  { %v201_v61 = vadd.f32 %v200_v59, %v168_v57  ;;  %v924_v57 = vld [vmem:[%s1208_s3] ss:$0 sm:$0xff] }
  0xaa   :  { %v238_v63 = vadd.f32 %v237_v60, %v201_v61  ;;  %v925_v61 = vld [vmem:[%s1209_s4] ss:$0 sm:$0xff] }
  0xac   :  { %v267_v0 = vadd.f32 %v266_v62, %v238_v63 }
  0xae   :  { %v274_v1 = vsel %vm46_vm0, %v267_v0, 0.0 }
  0xaf   :  { %275 = vadd.xlane.f32.xlu0 %v274_v1 }
 0x11a   :  { %v273_v9 = vpop.xlane.xlu0 %272 }
 0x11b   :  { %v284_v10 = vmul.f32 %v1056_v8, %v273_v9 }
 0x11d   :  { %v1059_v11 = vsub.f32 %v263_v56, %v284_v10 }
 0x11f   :  { %v288_v12 = vmul.f32 %v1059_v11, %v1059_v11 }
 0x121   :  { %v290_v13 = vsel %vm46_vm0, %v288_v12, 0.0 }
 0x122   :  { %291 = vadd.xlane.f32.xlu1 %v290_v13  ;;  %v276_v14 = vpop.xlane.xlu0 %275 }
 0x123   :  { %v285_v15 = vmul.f32 %v1056_v8, %v276_v14 }
 0x125   :  { %v1065_v16 = vsub.f32 %v267_v0, %v285_v15 }
 0x127   :  { %v289_v17 = vmul.f32 %v1065_v16, %v1065_v16 }
 0x129   :  { %v293_v18 = vsel %vm46_vm0, %v289_v17, 0.0 }
 0x12a   :  { %294 = vadd.xlane.f32.xlu1 %v293_v18 }
 0x195   :  { %v292_v43 = vpop.xlane.xlu1 %291 }
 0x196   :  { %v296_v44 = vmul.f32 %v292_v43, %v1056_v8  ;;  %v652_v43 = vand.u32 4294901760, %v651_v38 }
 0x198   :  { %v298_v45 = vadd.f32 1e-05, %v296_v44  ;;  %v601_v44 = vand.u32 4294901760, %v566_v40 }
 0x19a   :  { %932 = vrsqrt.f32 %v298_v45  ;;  %vm306_vm3 = vweird.f32 %v298_v45  ;;  %602 = vmatpush.msrb.mxu0 %v601_v44 }
 0x19d   :  { %v295_v46 = vpop.xlane.xlu1 %294 }
 0x19e   :  { %v297_v47 = vmul.f32 %v295_v46, %v1056_v8  ;;  %v565_v46 = vld [vmem:[%s1212_s7 + $0x8] sm:$0xff] }
 0x1a0   :  { %v933_v48 = vpop.eup %932  ;;  %v299_v49 = vadd.f32 1e-05, %v297_v47  ;;  %v648_v47 = vand.u32 4294901760, %v647_v42 }
 0x1a1   :  { %v301_v50 = vmul.f32 %v933_v48, %v298_v45  ;;  %vm307_vm2 = vweird.f32 %v933_v48  ;;  %v657_v45 = vsub.f32 %v567_v34, %v1150_v39 }
 0x1a2   :  { %934 = vrsqrt.f32 %v299_v49  ;;  %vm308_vm4 = vmor %vm306_vm3, %vm307_vm2  ;;  %vm316_vm6 = vweird.f32 %v299_v49  ;;  %649 = vmatpush.msrb.mxu1 %v648_v47  ;;  %v927_v47 = vld [vmem:[%s1213_s8] ss:$0 sm:$0xff] }
 0x1a3   :  { %v302_v51 = vmul.f32 %v933_v48, %v301_v50  ;;  %v603_v50 = vand.u32 4294901760, %v565_v46 }
 0x1a5   :  { %v303_v52 = vmul.f32 0.5, %v302_v51  ;;  %v658_v51 = vand.u32 4294901760, %v657_v45  ;;  %604 = vmatpush.msrb.mxu0 %v603_v50 }
 0x1a7   :  { %v304_v53 = vsub.f32 1.5, %v303_v52  ;;  %v564_v52 = vld [vmem:[%s1212_s7] sm:$0xff] }
 0x1a8   :  { %v935_v54 = vpop.eup %934 }
 0x1a9   :  { %v305_v55 = vmul.f32 %v933_v48, %v304_v53  ;;  %v311_v56 = vmul.f32 %v935_v54, %v299_v49  ;;  %vm317_vm5 = vweird.f32 %v935_v54  ;;  %v663_v49 = vsub.f32 %v566_v40, %v601_v44 }
 0x1aa   :  { %vm318_vm7 = vmor %vm316_vm6, %vm317_vm5 }
 0x1ab   :  { %v309_v58 = vsel %vm308_vm4, %v933_v48, %v305_v55  ;;  %v312_v59 = vmul.f32 %v935_v54, %v311_v56  ;;  %v653_v48 = vsub.f32 %v651_v38, %v652_v43  ;;  %v669_v55 = vsub.f32 %v565_v46, %v603_v50 }
 0x1ac   :  { %v320_v60 = vmul.f32 %v309_v58, %v1059_v11  ;;  %v605_v56 = vand.u32 4294901760, %v564_v52 }
 0x1ad   :  { %v313_v62 = vmul.f32 0.5, %v312_v59  ;;  %v654_v53 = vand.u32 4294901760, %v653_v48  ;;  %v670_v59 = vand.u32 4294901760, %v669_v55 }
 0x1ae   :  { %v325_v63 = vmul.f32 %v924_v57, %v320_v60  ;;  %v675_v60 = vsub.f32 %v564_v52, %v605_v56  ;;  %606 = vmatpush.msrb.mxu0 %v605_v56 }
 0x1af   :  { %v314_v0 = vsub.f32 1.5, %v313_v62  ;;  %655 = vmatpush.msrb.mxu1 %v654_v53 }
 0x1b0   :  { %v1091_v1 = vadd.f32 %v925_v61, %v325_v63  ;;  %v671_v63 = vsub.f32 %v669_v55, %v670_v59 }
 0x1b1   :  { %v315_v2 = vmul.f32 %v935_v54, %v314_v0  ;;  %v676_v0 = vand.u32 4294901760, %v675_v60 }
 0x1b2   :  { %v341_v3 = vsel %vm46_vm0, %v1091_v1, 0 }
 0x1b3   :  { %v319_v4 = vsel %vm318_vm7, %v935_v54, %v315_v2  ;;  %v366_v5 = vand.u32 4294901760, %v341_v3  ;;  %v664_v54 = vand.u32 4294901760, %v663_v49  ;;  %v672_v2 = vand.u32 4294901760, %v671_v63 }
 0x1b4   :  { %v321_v6 = vmul.f32 %v319_v4, %v1065_v16 }
 0x1b5   :  { %420 = vmatmul.f32.vlgmr.msra.gmra.mxu3 %v366_v5  ;;  %v367_v7 = vsub.f32 %v341_v3, %v366_v5  ;;  %v665_v58 = vsub.f32 %v663_v49, %v664_v54  ;;  %v677_v3 = vsub.f32 %v675_v60, %v676_v0 }
 0x1b6   :  { %v326_v9 = vmul.f32 %v924_v57, %v321_v6  ;;  %741 = vmatpush.msra.mxu3 %v1103_v21  ;;  %v659_v57 = vsub.f32 %v657_v45, %v658_v51  ;;  %v926_v6 = vld [vmem:[%s1211_s6] ss:$0 sm:$0xff] }
 0x1b7   :  { %454 = vmatmul.f32.vlgmr.msra.gmra.mxu0 %v367_v7  ;;  %v368_v10 = vand.u32 4294901760, %v367_v7  ;;  %v666_v62 = vand.u32 4294901760, %v665_v58  ;;  %v678_v4 = vand.u32 4294901760, %v677_v3 }
 0x1b8   :  { %v1096_v11 = vadd.f32 %v925_v61, %v326_v9  ;;  %743 = vmatpush.msra.mxu3 %v1111_v24  ;;  %v660_v61 = vand.u32 4294901760, %v659_v57  ;;  %780 = vmatpush.msra.mxu0 %v634_v26 }
 0x1b9   :  { %486 = vmatmul.f32.vlgmr.msra.gmra.mxu1 %v368_v10  ;;  %v369_v12 = vsub.f32 %v367_v7, %v368_v10 }
 0x1ba   :  { %v344_v13 = vsel %vm46_vm0, %v1096_v11, 0  ;;  %745 = vmatpush.msra.mxu3 %v1123_v28  ;;  %661 = vmatpush.msrb.mxu1 %v660_v61 }
 0x1bb   :  { %v370_v14 = vand.u32 4294901760, %v369_v12  ;;  %v374_v15 = vand.u32 4294901760, %v344_v13  ;;  %784 = vmatpush.msra.mxu0 %v640_v31 }
 0x1bc   :  { %747 = vmatpush.msra.mxu3 %v1138_v33  ;;  %667 = vmatpush.msrb.mxu1 %v666_v62 }
 0x1bd   :  { %371 = vmatmul.f32.vlgmr.msra.gmra.mxu2 %v370_v14  ;;  %424 = vmatmul.f32.gmra.mxu3 %v374_v15  ;;  %v375_v17 = vsub.f32 %v344_v13, %v374_v15 }
 0x1be   :  { %699 = vmatpush.msra.mxu2 %v1109_v23  ;;  %749 = vmatpush.msra.mxu3 %v1150_v39 }
 0x1bf   :  { %459 = vmatmul.f32.gmra.mxu0 %v375_v17  ;;  %v376_v18 = vand.u32 4294901760, %v375_v17  ;;  %673 = vmatpush.msrb.mxu1 %v672_v2 }
 0x1c0   :  { %702 = vmatpush.msra.mxu2 %v1120_v27  ;;  %751 = vmatpush.msra.mxu3 %v601_v44 }
 0x1c1   :  { %492 = vmatmul.f32.gmra.mxu1 %v376_v18  ;;  %v377_v16 = vsub.f32 %v375_v17, %v376_v18  ;;  %788 = vmatpush.msra.mxu0 %v646_v37 }
 0x1c2   :  { %705 = vmatpush.msra.mxu2 %v1135_v32  ;;  %753 = vmatpush.msra.mxu3 %v603_v50 }
 0x1c3   :  { %v378_v19 = vand.u32 4294901760, %v377_v16  ;;  %679 = vmatpush.msrb.mxu1 %v678_v4  ;;  %792 = vmatpush.msra.mxu0 %v652_v43 }
 0x1c4   :  { %708 = vmatpush.msra.mxu2 %v651_v38  ;;  %755 = vmatpush.msra.mxu3 %v605_v56 }
 0x1c5   :  { %379 = vmatmul.f32.gmra.mxu2 %v378_v19  ;;  %554 = vmatmul.f32.vlgmr.msrb.gmra.mxu3 %v366_v5 }
 0x1c6   :  { %711 = vmatpush.msra.mxu2 %v657_v45  ;;  %827 = vmatpush.msra.mxu1 %v1103_v21 }
 0x1c7   :  { %796 = vmatpush.msra.mxu0 %v658_v51 }
 0x1c8   :  { %714 = vmatpush.msra.mxu2 %v663_v49  ;;  %829 = vmatpush.msra.mxu1 %v1111_v24 }
 0x1c9   :  { %800 = vmatpush.msra.mxu0 %v664_v54 }
 0x1ca   :  { %717 = vmatpush.msra.mxu2 %v669_v55  ;;  %831 = vmatpush.msra.mxu1 %v1123_v28 }
 0x1cb   :  { %804 = vmatpush.msra.mxu0 %v670_v59 }
 0x1cc   :  { %720 = vmatpush.msra.mxu2 %v675_v60  ;;  %833 = vmatpush.msra.mxu1 %v1138_v33 }
 0x1cd   :  { %525 = vmatmul.f32.vlgmr.msrb.gmra.mxu2 %v366_v5  ;;  %558 = vmatmul.f32.gmra.mxu3 %v374_v15 }
 0x1ce   :  { %835 = vmatpush.msra.mxu1 %v1150_v39  ;;  %808 = vmatpush.msra.mxu0 %v676_v0 }
 0x1d0   :  { %837 = vmatpush.msra.mxu1 %v601_v44 }
 0x1d2   :  { %839 = vmatpush.msra.mxu1 %v603_v50 }
 0x1d4   :  { %841 = vmatpush.msra.mxu1 %v605_v56 }
 0x1d5   :  { %529 = vmatmul.f32.gmra.mxu2 %v374_v15 }
 0x234   :  { %v455_v13 = vpop.f32.mrf.mxu0 }
 0x236   :  { %v487_v18 = vpop.f32.mrf.mxu1 }
 0x238   :  { %v421_v5 = vpop.f32.mrf.mxu3 }
 0x23c   :  { %v460_v23 = vpop.f32.mrf.mxu0 }
 0x23e   :  { %v493_v27 = vpop.f32.mrf.mxu1 }
 0x240   :  { %v372_v7 = vpop.f32.mrf.mxu2  ;;  %v425_v10 = vpop.f32.mrf.mxu3 }
 0x241   :  { %v373_v9 = vadd.f32 %v926_v6, %v372_v7 }
 0x243   :  { %v422_v12 = vadd.f32 %v421_v5, %v373_v9 }
 0x245   :  { %v456_v17 = vadd.f32 %v455_v13, %v422_v12 }
 0x247   :  { %v488_v19 = vadd.f32 %v487_v18, %v456_v17 }
 0x248   :  { %v380_v14 = vpop.f32.mrf.mxu2  ;;  %v555_v20 = vpop.f32.mrf.mxu3 }
 0x249   :  { %v381_v15 = vadd.f32 %v926_v6, %v380_v14 }
 0x24b   :  { %v426_v16 = vadd.f32 %v425_v10, %v381_v15 }
 0x24d   :  { %v461_v25 = vadd.f32 %v460_v23, %v426_v16 }
 0x24f   :  { %v494_v29 = vadd.f32 %v493_v27, %v461_v25 }
 0x250   :  { %v526_v21 = vpop.f32.mrf.mxu2  ;;  %v559_v34 = vpop.f32.mrf.mxu3 }
 0x251   :  { %v527_v22 = vadd.f32 %v526_v21, %v488_v19 }
 0x253   :  { %v556_v24 = vadd.f32 %v555_v20, %v527_v22 }
 0x255   :  { %v562_v26 = vmax.f32 %v556_v24, 0.0 }
 0x257   :  { %v578_v28 = vsel %vm576_vm8, %v562_v26, 0 }
 0x258   :  { %v607_v30 = vand.u32 4294901760, %v578_v28  ;;  %v530_v31 = vpop.f32.mrf.mxu2 }
 0x259   :  { %v531_v32 = vadd.f32 %v530_v31, %v494_v29 }
 0x25a   :  { %v608_v33 = vsub.f32 %v578_v28, %v607_v30  ;;  %681 = vmatmul.f32.vlgmr.msrb.gmra.mxu1 %v607_v30 }
 0x25b   :  { %v560_v35 = vadd.f32 %v559_v34, %v531_v32 }
 0x25c   :  { %723 = vmatmul.f32.vlgmr.msra.gmra.mxu2 %v608_v33  ;;  %v609_v36 = vand.u32 4294901760, %v608_v33 }
 0x25d   :  { %v563_v37 = vmax.f32 %v560_v35, 0.0 }
 0x25e   :  { %759 = vmatmul.f32.vlgmr.msra.gmra.mxu3 %v609_v36  ;;  %v610_v38 = vsub.f32 %v608_v33, %v609_v36  ;;  %v928_v36 = vld [vmem:[%s1214_s9] ss:$0 sm:$0xff] }
 0x25f   :  { %v581_v39 = vsel %vm576_vm8, %v563_v37, 0 }
 0x260   :  { %v615_v40 = vand.u32 4294901760, %v581_v39  ;;  %v611_v41 = vand.u32 4294901760, %v610_v38 }
 0x262   :  { %612 = vmatmul.f32.vlgmr.msrb.gmra.mxu0 %v611_v41  ;;  %685 = vmatmul.f32.gmra.mxu1 %v615_v40  ;;  %v616_v42 = vsub.f32 %v581_v39, %v615_v40 }
 0x264   :  { %728 = vmatmul.f32.gmra.mxu2 %v616_v42  ;;  %v617_v43 = vand.u32 4294901760, %v616_v42 }
 0x266   :  { %765 = vmatmul.f32.gmra.mxu3 %v617_v43  ;;  %v618_v44 = vsub.f32 %v616_v42, %v617_v43 }
 0x268   :  { %v619_v45 = vand.u32 4294901760, %v618_v44 }
 0x26a   :  { %620 = vmatmul.f32.gmra.mxu0 %v619_v45  ;;  %843 = vmatmul.f32.vlgmr.msra.gmra.mxu1 %v607_v30 }
 0x272   :  { %810 = vmatmul.f32.vlgmr.msra.gmra.mxu0 %v607_v30  ;;  %847 = vmatmul.f32.gmra.mxu1 %v615_v40 }
 0x27a   :  { %814 = vmatmul.f32.gmra.mxu0 %v615_v40 }
 0x2d7   :  { %v682_v46 = vpop.f32.mrf.mxu1 }
 0x2df   :  { %v613_v48 = vpop.f32.mrf.mxu0  ;;  %v686_v50 = vpop.f32.mrf.mxu1 }
 0x2e0   :  { %v614_v49 = vadd.f32 %v927_v47, %v613_v48  ;;  %v724_v52 = vpop.f32.mrf.mxu2 }
 0x2e1   :  { %v760_v56 = vpop.f32.mrf.mxu3 }
 0x2e2   :  { %v683_v51 = vadd.f32 %v682_v46, %v614_v49 }
 0x2e4   :  { %v725_v54 = vadd.f32 %v724_v52, %v683_v51 }
 0x2e6   :  { %v761_v57 = vadd.f32 %v760_v56, %v725_v54 }
 0x2e7   :  { %v621_v53 = vpop.f32.mrf.mxu0  ;;  %v844_v59 = vpop.f32.mrf.mxu1 }
 0x2e8   :  { %v622_v55 = vadd.f32 %v927_v47, %v621_v53  ;;  %v729_v62 = vpop.f32.mrf.mxu2 }
 0x2e9   :  { %v766_v3 = vpop.f32.mrf.mxu3 }
 0x2ea   :  { %v687_v58 = vadd.f32 %v686_v50, %v622_v55 }
 0x2ec   :  { %v730_v63 = vadd.f32 %v729_v62, %v687_v58 }
 0x2ee   :  { %v767_v4 = vadd.f32 %v766_v3, %v730_v63 }
 0x2ef   :  { %v811_v60 = vpop.f32.mrf.mxu0  ;;  %v848_v9 = vpop.f32.mrf.mxu1 }
 0x2f0   :  { %v812_v61 = vadd.f32 %v811_v60, %v761_v57 }
 0x2f2   :  { %v845_v0 = vadd.f32 %v844_v59, %v812_v61 }
 0x2f4   :  { %v851_v2 = vadd.f32 %v845_v0, %v1091_v1 }
 0x2f6   :  { %v855_v5 = vsel %vm46_vm0, %v851_v2, 0.0 }
 0x2f7   :  { %v815_v6 = vpop.f32.mrf.mxu0  ;;  %856 = vadd.xlane.f32.xlu2 %v855_v5 }
 0x2f8   :  { %v816_v7 = vadd.f32 %v815_v6, %v767_v4 }
 0x2fa   :  { %v849_v10 = vadd.f32 %v848_v9, %v816_v7 }
 0x2fc   :  { %v852_v12 = vadd.f32 %v849_v10, %v1096_v11 }
 0x2fe   :  { %v858_v13 = vsel %vm46_vm0, %v852_v12, 0.0 }
 0x2ff   :  { %859 = vadd.xlane.f32.xlu2 %v858_v13 }
 0x36a   :  { %v857_v14 = vpop.xlane.xlu2 %856 }
 0x36b   :  { %v861_v15 = vmul.f32 %v857_v14, %v1056_v8 }
 0x36d   :  { %v863_v17 = vsub.f32 %v851_v2, %v861_v15 }
 0x36f   :  { %v865_v18 = vmul.f32 %v863_v17, %v863_v17 }
 0x371   :  { %v867_v1 = vsel %vm46_vm0, %v865_v18, 0.0 }
 0x372   :  { %868 = vadd.xlane.f32.xlu0 %v867_v1  ;;  %v860_v16 = vpop.xlane.xlu2 %859 }
 0x373   :  { %v862_v19 = vmul.f32 %v860_v16, %v1056_v8 }
 0x375   :  { %v864_v20 = vsub.f32 %v852_v12, %v862_v19 }
 0x377   :  { %v866_v21 = vmul.f32 %v864_v20, %v864_v20 }
 0x379   :  { %v870_v22 = vsel %vm46_vm0, %v866_v21, 0.0 }
 0x37a   :  { %871 = vadd.xlane.f32.xlu1 %v870_v22 }
 0x3e5   :  { %v869_v11 = vpop.xlane.xlu0 %868 }
 0x3e6   :  { %v873_v23 = vmul.f32 %v869_v11, %v1056_v8 }
 0x3e8   :  { %v875_v24 = vadd.f32 1e-05, %v873_v23 }
 0x3ea   :  { %936 = vrsqrt.f32 %v875_v24  ;;  %vm883_vm10 = vweird.f32 %v875_v24 }
 0x3ed   :  { %v872_v25 = vpop.xlane.xlu1 %871 }
 0x3ee   :  { %v874_v26 = vmul.f32 %v872_v25, %v1056_v8  ;;  %v929_v8 = vld [vmem:[%s1215_s10] ss:$0 sm:$0xff] }
 0x3f0   :  { %v937_v27 = vpop.eup %936  ;;  %v876_v28 = vadd.f32 1e-05, %v874_v26 }
 0x3f1   :  { %v878_v29 = vmul.f32 %v937_v27, %v875_v24  ;;  %vm884_vm9 = vweird.f32 %v937_v27 }
 0x3f2   :  { %938 = vrsqrt.f32 %v876_v28  ;;  %vm885_vm11 = vmor %vm883_vm10, %vm884_vm9  ;;  %vm893_vm13 = vweird.f32 %v876_v28 }
 0x3f3   :  { %v879_v30 = vmul.f32 %v937_v27, %v878_v29 }
 0x3f5   :  { %v880_v31 = vmul.f32 0.5, %v879_v30 }
 0x3f7   :  { %v881_v32 = vsub.f32 1.5, %v880_v31 }
 0x3f8   :  { %v939_v33 = vpop.eup %938 }
 0x3f9   :  { %v882_v34 = vmul.f32 %v937_v27, %v881_v32  ;;  %v888_v35 = vmul.f32 %v939_v33, %v876_v28  ;;  %vm894_vm12 = vweird.f32 %v939_v33 }
 0x3fa   :  { %vm895_vm14 = vmor %vm893_vm13, %vm894_vm12 }
 0x3fb   :  { %v886_v37 = vsel %vm885_vm11, %v937_v27, %v882_v34  ;;  %v889_v38 = vmul.f32 %v939_v33, %v888_v35 }
 0x3fc   :  { %v897_v39 = vmul.f32 %v886_v37, %v863_v17 }
 0x3fd   :  { %v890_v40 = vmul.f32 0.5, %v889_v38 }
 0x3fe   :  { %v902_v41 = vmul.f32 %v928_v36, %v897_v39 }
 0x3ff   :  { %v891_v42 = vsub.f32 1.5, %v890_v40 }
 0x400   :  { %v907_v43 = vadd.f32 %v929_v8, %v902_v41 }
 0x401   :  { %v892_v44 = vmul.f32 %v939_v33, %v891_v42 }
 0x402   :  { %909 = vst.msk [vmem:[%s1216_s11] sm:$0xff] %vm46_vm0, %v907_v43 }
 0x403   :  { %v896_v45 = vsel %vm895_vm14, %v939_v33, %v892_v44 }
 0x404   :  { %v898_v46 = vmul.f32 %v896_v45, %v864_v20 }
 0x406   :  { %v903_v47 = vmul.f32 %v928_v36, %v898_v46 }
 0x408   :  { %v908_v48 = vadd.f32 %v929_v8, %v903_v47 }
 0x40a   :  { %910 = vst.msk [vmem:[%s1216_s11 + $0x8] sm:$0xff] %vm46_vm0, %v908_v48 }

// kernel: fwd.25
= control target key start
LH: loop header
LB: loop body
LE: loop exit
PB: predicated region body
PF: predicated region fallthrough
CT: control target
= control target key end

     0   :  { %vm25_vm0 = vcmask 261120   ;;  %s387_s0 = inlined_call_operand.vmem [shape: f32[16,32], index: 0, kind: input, shape index: {}]   ;;  %s388_s1 = inlined_call_operand.vmem [shape: f32[32,128], index: 1, kind: input, shape index: {}]   ;;  %s389_s2 = inlined_call_operand.vmem [shape: f32[1,128], index: 2, kind: input, shape index: {}]   ;;  %s390_s3 = inlined_call_operand.hbm [shape: f32[16,128], index: 3, kind: output, shape index: {}]  }
   0x1   :  { %v20_v0 = vld [vmem:[%s388_s1 + $0x18] sm:$0xff]  ;;  %v19_v1 = vld [vmem:[%s388_s1 + $0x10] sm:$0xff]  ;;  %v18_v2 = vld [vmem:[%s388_s1 + $0x8] sm:$0xff] }
   0x2   :  { %v338_v3 = vand.u32 4294901760, %v20_v0  ;;  %v340_v4 = vand.u32 4294901760, %v19_v1  ;;  %v342_v5 = vand.u32 4294901760, %v18_v2  ;;  %v17_v6 = vld [vmem:[%s388_s1] sm:$0xff]  ;;  %v16_v7 = vld [vmem:[%s387_s0 + $0x8] sm:$0xff] }
   0x3   :  { %v15_v8 = vld [vmem:[%s387_s0] sm:$0xff]  ;;  %v353_v9 = vand.u32 4294901760, %v17_v6  ;;  %v30_v10 = vsel %vm25_vm0, %v16_v7, 0 }
   0x4   :  { %v27_v11 = vsel %vm25_vm0, %v15_v8, 0  ;;  %268 = vmatpush.msra.mxu2 %v338_v3  ;;  %v82_v12 = vsub.f32 %v20_v0, %v338_v3  ;;  %v357_v13 = vand.u32 4294901760, %v30_v10  ;;  %v88_v14 = vsub.f32 %v19_v1, %v340_v4  ;;  %45 = vmatpush.msra.mxu0 %v338_v3 }
   0x5   :  { %v94_v15 = vsub.f32 %v18_v2, %v342_v5 }
   0x6   :  { %8 = vsyncpa [#allocation3], 0  ;;  %v100_v16 = vsub.f32 %v17_v6, %v353_v9  ;;  %v52_v17 = vand.u32 4294901760, %v27_v11  ;;  %269 = vmatpush.msra.mxu2 %v340_v4  ;;  %v83_v18 = vand.u32 4294901760, %v82_v12  ;;  %v61_v19 = vsub.f32 %v30_v10, %v357_v13  ;;  %47 = vmatpush.msra.mxu0 %v340_v4  ;;  %v279_v39 = vld [vmem:[%s389_s2] ss:$0 sm:$0xff] }
   0x7   :  { %v89_v20 = vand.u32 4294901760, %v88_v14  ;;  %v95_v21 = vand.u32 4294901760, %v94_v15  ;;  %s306_s2 = smov [#allocation2]   ;;  %s256_s27 = sshll.u32 %s390_s3, 4  ;;  %s257_s27 = int_to_ptr.hbm [resolvable:$true] %s256_s27 }
   0x8   :  { %v101_v22 = vand.u32 4294901760, %v100_v16  ;;  %v53_v23 = vsub.f32 %v27_v11, %v52_v17  ;;  %270 = vmatpush.msra.mxu2 %v342_v5  ;;  %v84_v24 = vsub.f32 %v82_v12, %v83_v18  ;;  %v62_v25 = vand.u32 4294901760, %v61_v19  ;;  %49 = vmatpush.msra.mxu0 %v342_v5  ;;  %s254_s24 = sshll.u32 %s306_s2, 4  ;;  %s307_s28 = smov 128   ;;  %s255_s24 = int_to_ptr.vmem [resolvable:$true] %s254_s24 }
   0x9   :  { %v90_v26 = vsub.f32 %v88_v14, %v89_v20  ;;  %v96_v27 = vsub.f32 %v94_v15, %v95_v21  ;;  %s308_s29 = smov 8  }
   0xa   :  { %v54_v28 = vand.u32 4294901760, %v53_v23  ;;  %271 = vmatpush.msra.mxu2 %v353_v9  ;;  %v85_v29 = vand.u32 4294901760, %v84_v24  ;;  %v63_v30 = vsub.f32 %v61_v19, %v62_v25  ;;  %v102_v32 = vsub.f32 %v100_v16, %v101_v22  ;;  %51 = vmatpush.msra.mxu0 %v353_v9 }
   0xb   :  { %v91_v31 = vand.u32 4294901760, %v90_v26  ;;  %v97_v35 = vand.u32 4294901760, %v96_v27 }
   0xc   :  { %128 = vmatpush.msrb.mxu2 %v82_v12  ;;  %v55_v33 = vsub.f32 %v53_v23, %v54_v28  ;;  %197 = vmatpush.msrb.mxu0 %v83_v18  ;;  %v64_v34 = vand.u32 4294901760, %v63_v30  ;;  %v103_v37 = vand.u32 4294901760, %v102_v32 }
   0xd   :  { %272 = vmatpush.msra.mxu3 %v85_v29  ;;  %86 = vmatpush.msra.mxu1 %v85_v29 }
   0xe   :  { %131 = vmatpush.msrb.mxu2 %v88_v14  ;;  %v56_v36 = vand.u32 4294901760, %v55_v33  ;;  %201 = vmatpush.msrb.mxu0 %v89_v20 }
   0xf   :  { %65 = vmatmul.f32.vlgmr.msra.gmra.mxu2 %v64_v34  ;;  %273 = vmatpush.msra.mxu3 %v91_v31 }
  0x10   :  { %134 = vmatpush.msrb.mxu2 %v94_v15  ;;  %92 = vmatpush.msra.mxu1 %v91_v31 }
  0x11   :  { %274 = vmatpush.msra.mxu3 %v97_v35  ;;  %57 = vmatmul.f32.vlgmr.msra.gmra.mxu0 %v56_v36 }
  0x12   :  { %137 = vmatpush.msrb.mxu2 %v100_v16  ;;  %98 = vmatpush.msra.mxu1 %v97_v35 }
  0x13   :  { %275 = vmatpush.msra.mxu3 %v103_v37  ;;  %205 = vmatpush.msrb.mxu0 %v95_v21 }
  0x14   :  { %110 = vmatmul.f32.vlgmr.msra.gmra.mxu3 %v357_v13  ;;  %104 = vmatpush.msra.mxu1 %v103_v37 }
  0x15   :  { %162 = vmatpush.msrb.mxu3 %v338_v3  ;;  %106 = vmatmul.f32.vlgmr.msra.gmra.mxu1 %v52_v17 }
  0x16   :  { %232 = vmatpush.msrb.mxu1 %v338_v3  ;;  %209 = vmatpush.msrb.mxu0 %v101_v22 }
  0x17   :  { %140 = vmatmul.f32.vlgmr.msrb.gmra.mxu2 %v53_v23  ;;  %164 = vmatpush.msrb.mxu3 %v340_v4 }
  0x18   :  { %234 = vmatpush.msrb.mxu1 %v340_v4 }
  0x19   :  { %166 = vmatpush.msrb.mxu3 %v342_v5  ;;  %211 = vmatmul.f32.vlgmr.msrb.gmra.mxu0 %v52_v17 }
  0x1a   :  { %236 = vmatpush.msrb.mxu1 %v342_v5 }
  0x1b   :  { %168 = vmatpush.msrb.mxu3 %v353_v9 }
  0x1c   :  { %172 = vmatmul.f32.vlgmr.msrb.gmra.mxu3 %v54_v28  ;;  %238 = vmatpush.msrb.mxu1 %v353_v9 }
  0x1d   :  { %240 = vmatmul.f32.vlgmr.msrb.gmra.mxu1 %v52_v17 }
  0x1f   :  { %145 = vmatmul.f32.gmra.mxu2 %v61_v19 }
  0x21   :  { %215 = vmatmul.f32.gmra.mxu0 %v357_v13 }
  0x24   :  { %178 = vmatmul.f32.gmra.mxu3 %v62_v25 }
  0x25   :  { %244 = vmatmul.f32.gmra.mxu1 %v357_v13 }
  0x8e   :  { %v58_v38 = vpop.f32.mrf.mxu0 }
  0x8f   :  { %v59_v41 = vadd.f32 %v279_v39, %v58_v38 }
  0x92   :  { %v66_v40 = vpop.f32.mrf.mxu2  ;;  %v107_v42 = vpop.f32.mrf.mxu1 }
  0x93   :  { %v108_v44 = vadd.f32 %v107_v42, %v59_v41  ;;  %v67_v50 = vadd.f32 %v279_v39, %v66_v40 }
  0x96   :  { %v212_v47 = vpop.f32.mrf.mxu0 }
  0x97   :  { %v111_v43 = vpop.f32.mrf.mxu3 }
  0x98   :  { %v112_v54 = vadd.f32 %v111_v43, %v67_v50 }
  0x9a   :  { %v141_v45 = vpop.f32.mrf.mxu2  ;;  %v241_v49 = vpop.f32.mrf.mxu1 }
  0x9b   :  { %v142_v46 = vadd.f32 %v141_v45, %v108_v44 }
  0x9e   :  { %v216_v58 = vpop.f32.mrf.mxu0 }
  0x9f   :  { %v173_v48 = vpop.f32.mrf.mxu3 }
  0xa0   :  { %v174_v51 = vadd.f32 %v173_v48, %v142_v46 }
  0xa2   :  { %v213_v52 = vadd.f32 %v212_v47, %v174_v51  ;;  %v146_v53 = vpop.f32.mrf.mxu2  ;;  %v245_v60 = vpop.f32.mrf.mxu1 }
  0xa3   :  { %v147_v56 = vadd.f32 %v146_v53, %v112_v54 }
  0xa4   :  { %v242_v55 = vadd.f32 %v241_v49, %v213_v52 }
  0xa6   :  { %248 = vst [vmem:[#allocation2] sm:$0xff] %v242_v55 }
  0xa7   :  { %v179_v57 = vpop.f32.mrf.mxu3 }
  0xa8   :  { %v180_v59 = vadd.f32 %v179_v57, %v147_v56 }
  0xaa   :  { %v217_v61 = vadd.f32 %v216_v58, %v180_v59 }
  0xac   :  { %v246_v62 = vadd.f32 %v245_v60, %v217_v61 }
  0xae   :  { %249 = vst [vmem:[#allocation2 + $0x8] sm:$0xff] %v246_v62 }
  0xaf   :  { %262 = dma.vmem_to_hbm [thread:$0]  %s255_s24, 256, %s257_s27, [#allocation3], %s307_s28, %s307_s28, %s308_s29  }
  0xb0   :  { %304 = dma.done.wait [#allocation3], 256  }
  0xb1   :  { %305 = vsyncadd [#allocation3], 4294967040 }
  0xb2   :  { %267 = vsyncpa [#allocation3], 1 }

// kernel: fwd.18
= control target key start
LH: loop header
LB: loop body
LE: loop exit
PB: predicated region body
PF: predicated region fallthrough
CT: control target
= control target key end

     0   :  { %vm41_vm0 = vcmask 64512   ;;  %v2756_v3 = vmov 0   ;;  %s3114_s1 = inlined_call_operand.vmem [shape: f32[8,8,8], index: 1, kind: input, shape index: {}]   ;;  %s3115_s0 = inlined_call_operand.vmem [shape: f32[8,8,8], index: 0, kind: input, shape index: {}]   ;;  %s3116_s3 = inlined_call_operand.vmem [shape: s32[8,1], index: 3, kind: input, shape index: {}]   ;;  %s3117_s2 = inlined_call_operand.vmem [shape: f32[8,8,8], index: 2, kind: input, shape index: {}]   ;;  %s3118_s4 = inlined_call_operand.vmem [shape: f32[8,8,8], index: 4, kind: output, shape index: {}]  }
   0x1   :  { %v25_v0 = vld [vmem:[%s3114_s1] sm:$0xff]  ;;  %v26_v2 = vld [vmem:[%s3114_s1 + $0x8] sm:$0xff]  ;;  %2721 = vset.pattern.permute.xlu0 %v2756_v3  ;;  %2722 = vset.pattern.permute.xlu1 %v2756_v3  ;;  %v27_v8 = vld [vmem:[%s3114_s1 + $0x10] sm:$0xff] }
   0x2   :  { %v17_v1 = vld [vmem:[%s3115_s0] sm:$0xff]  ;;  %v46_v4 = vsel %vm41_vm0, %v25_v0, 0  ;;  %v198_v6 = vsel %vm41_vm0, %v26_v2, 0  ;;  %v18_v7 = vld [vmem:[%s3115_s0 + $0x8] sm:$0xff]  ;;  %2723 = vset.pattern.permute.xlu2 %v2756_v3  ;;  %v28_v14 = vld [vmem:[%s3114_s1 + $0x18] sm:$0xff]  ;;  %v350_v16 = vsel %vm41_vm0, %v27_v8, 0 }
   0x3   :  { %v43_v5 = vsel %vm41_vm0, %v17_v1, 0  ;;  %v2803_v9 = vld [vmem:[%s3116_s3] sm:$0xff]  ;;  %v63_v10 = vand.u32 4294901760, %v46_v4  ;;  %v215_v12 = vand.u32 4294901760, %v198_v6  ;;  %v195_v13 = vsel %vm41_vm0, %v18_v7, 0  ;;  %v19_v39 = vld [vmem:[%s3115_s0 + $0x10] sm:$0xff] }
   0x4   :  { %v2805_v11 = vand.u32 4294901760, %v43_v5  ;;  %v2811_v15 = vand.u32 4294901760, %v195_v13  ;;  %v1276_v17 = vperm.slane %v2803_v9, 0  ;;  %v2816_v21 = vand.u32 4294901760, %v350_v16  ;;  %v20_v45 = vld [vmem:[%s3115_s0 + $0x18] sm:$0xff]  ;;  %v29_v54 = vld [vmem:[%s3114_s1 + $0x20] sm:$0xff] }
   0x5   :  { %v90_v18 = vsub.f32 %v46_v4, %v63_v10  ;;  %140 = vmatpush.xpose.msra.mxu3 %v63_v10  ;;  %64 = vmatpush.xpose.msra.mxu0 %v63_v10  ;;  %v242_v20 = vsub.f32 %v198_v6, %v215_v12  ;;  %v502_v23 = vsel %vm41_vm0, %v28_v14, 0  ;;  %v1269_v30 = vrot.slane %v2803_v9, 1  ;;  %v21_v2 = vld [vmem:[%s3115_s0 + $0x20] sm:$0xff]  ;;  %v30_v4 = vld [vmem:[%s3114_s1 + $0x28] sm:$0xff] }
   0x6   :  { %v66_v19 = vsub.f32 %v43_v5, %v2805_v11  ;;  %v2819_v22 = vsub.f32 %v195_v13, %v2811_v15  ;;  %1285 = vperm.xlu0 %2721, %v1276_v17   ;;  %v394_v28 = vsub.f32 %v350_v16, %v2816_v21  ;;  %v2824_v29 = vand.u32 4294901760, %v502_v23 }
   0x7   :  { %117 = vmatpush.xpose.msra.mxu2 %v90_v18  ;;  %v91_v25 = vand.u32 4294901760, %v90_v18  ;;  %v243_v26 = vand.u32 4294901760, %v242_v20  ;;  %v1277_v40 = vperm.slane %v1269_v30, 0  ;;  %v347_v43 = vsel %vm41_vm0, %v19_v39, 0  ;;  %v31_v30 = vld [vmem:[%s3114_s1 + $0x30] sm:$0xff] }
   0x8   :  { %v67_v24 = vand.u32 4294901760, %v66_v19  ;;  %v219_v27 = vand.u32 4294901760, %v2819_v22  ;;  %v2831_v35 = vsub.f32 %v502_v23, %v2824_v29  ;;  %v395_v41 = vand.u32 4294901760, %v394_v28 }
   0x9   :  { %v92_v32 = vsub.f32 %v90_v18, %v91_v25  ;;  %166 = vmatpush.xpose.msrb.mxu0 %v91_v25  ;;  %v244_v33 = vsub.f32 %v242_v20, %v243_v26  ;;  %v2843_v46 = vand.u32 4294901760, %v347_v43  ;;  %v499_v49 = vsel %vm41_vm0, %v20_v45, 0 }
   0xa   :  { %144 = vmatmul.f32.vlgmr.msra.gmra.mxu3 %v67_v24  ;;  %v68_v31 = vsub.f32 %v66_v19, %v67_v24  ;;  %120 = vmatmul.f32.vlgmr.msra.gmra.mxu2 %v66_v19  ;;  %v220_v34 = vsub.f32 %v2819_v22, %v219_v27  ;;  %v547_v44 = vand.u32 4294901760, %v2831_v35  ;;  %v396_v47 = vsub.f32 %v394_v28, %v395_v41 }
   0xb   :  { %216 = vmatpush.xpose.msrb.mxu2 %v215_v12  ;;  %v93_v37 = vand.u32 4294901760, %v92_v32  ;;  %v245_v38 = vand.u32 4294901760, %v244_v33  ;;  %v370_v50 = vsub.f32 %v347_v43, %v2843_v46  ;;  %v521_v53 = vand.u32 4294901760, %v499_v49 }
   0xc   :  { %v69_v36 = vand.u32 4294901760, %v68_v31  ;;  %v221_v42 = vand.u32 4294901760, %v220_v34  ;;  %v548_v48 = vsub.f32 %v2831_v35, %v547_v44  ;;  %v397_v51 = vand.u32 4294901760, %v396_v47 }
   0xd   :  { %94 = vmatpush.xpose.msra.mxu1 %v93_v37  ;;  %246 = vmatpush.xpose.msrb.mxu3 %v245_v38  ;;  %v371_v55 = vand.u32 4294901760, %v370_v50  ;;  %v2857_v56 = vsub.f32 %v499_v49, %v521_v53  ;;  %v654_v57 = vsel %vm41_vm0, %v29_v54, 0  ;;  %v1270_v58 = vrot.slane %v2803_v9, 2  ;;  %v23_v38 = vld [vmem:[%s3115_s0 + $0x30] sm:$0xff] }
   0xe   :  { %70 = vmatmul.f32.vlgmr.msra.gmra.mxu0 %v69_v36  ;;  %1288 = vperm.xlu0 %2721, %v1277_v40   ;;  %v549_v52 = vand.u32 4294901760, %v548_v48  ;;  %v2863_v61 = vand.u32 4294901760, %v654_v57  ;;  %v651_v6 = vsel %vm41_vm0, %v21_v2, 0  ;;  %v806_v7 = vsel %vm41_vm0, %v30_v4, 0  ;;  %v32_v48 = vld [vmem:[%s3114_s1 + $0x38] sm:$0xff] }
   0xf   :  { %318 = vmatpush.xpose.msra.mxu2 %v243_v26  ;;  %269 = vmatpush.xpose.msra.mxu0 %v242_v20  ;;  %v1278_v59 = vperm.slane %v1270_v58, 0  ;;  %v372_v60 = vsub.f32 %v370_v50, %v371_v55  ;;  %v523_v62 = vand.u32 4294901760, %v2857_v56  ;;  %v823_v8 = vand.u32 4294901760, %v806_v7 }
  0x10   :  { %96 = vmatmul.f32.vlgmr.msra.gmra.mxu1 %v2805_v11  ;;  %v698_v0 = vsub.f32 %v654_v57, %v2863_v61  ;;  %v958_v34 = vsel %vm41_vm0, %v31_v30, 0  ;;  %v955_v39 = vsel %vm41_vm0, %v23_v38, 0  ;;  %v1110_v49 = vsel %vm41_vm0, %v32_v48, 0 }
  0x11   :  { %188 = vmatpush.xpose.msrb.mxu1 %v63_v10  ;;  %340 = vmatpush.xpose.msra.mxu3 %v215_v12  ;;  %v373_v63 = vand.u32 4294901760, %v372_v60  ;;  %v524_v1 = vsub.f32 %v2857_v56, %v523_v62  ;;  %v22_v10 = vld [vmem:[%s3115_s0 + $0x28] sm:$0xff]  ;;  %v850_v13 = vsub.f32 %v806_v7, %v823_v8  ;;  %v977_v40 = vand.u32 4294901760, %v955_v39 }
  0x12   :  { %248 = vmatmul.f32.vlgmr.msrb.gmra.mxu3 %v2811_v15  ;;  %222 = vmatmul.f32.vlgmr.msrb.gmra.mxu2 %v221_v42  ;;  %v699_v3 = vand.u32 4294901760, %v698_v0 }
  0x13   :  { %421 = vmatpush.xpose.msrb.mxu2 %v394_v28  ;;  %1291 = vperm.xlu1 %2722, %v1278_v59   ;;  %v525_v5 = vand.u32 4294901760, %v524_v1  ;;  %v851_v14 = vand.u32 4294901760, %v850_v13 }
  0x15   :  { %292 = vmatpush.xpose.msra.mxu1 %v215_v12  ;;  %444 = vmatpush.xpose.msrb.mxu3 %v2816_v21  ;;  %v700_v12 = vsub.f32 %v698_v0, %v699_v3  ;;  %v852_v18 = vsub.f32 %v850_v13, %v851_v14 }
  0x16   :  { %168 = vmatmul.f32.vlgmr.msrb.gmra.mxu0 %v2805_v11 }
  0x17   :  { %368 = vmatpush.xpose.msrb.mxu0 %v2816_v21  ;;  %v701_v17 = vand.u32 4294901760, %v700_v12  ;;  %v853_v20 = vand.u32 4294901760, %v852_v18 }
  0x18   :  { %190 = vmatmul.f32.vlgmr.msrb.gmra.mxu1 %v2805_v11  ;;  %v673_v11 = vand.u32 4294901760, %v651_v6 }
  0x19   :  { %398 = vmatpush.xpose.msrb.mxu1 %v397_v51  ;;  %v1127_v51 = vand.u32 4294901760, %v1110_v49 }
  0x1a   :  { %342 = vmatmul.f32.vlgmr.msra.gmra.mxu3 %v2811_v15  ;;  %320 = vmatmul.f32.vlgmr.msra.gmra.mxu2 %v2811_v15  ;;  %v803_v15 = vsel %vm41_vm0, %v22_v10, 0  ;;  %v674_v16 = vsub.f32 %v651_v6, %v673_v11 }
  0x1b   :  { %550 = vmatpush.xpose.msra.mxu3 %v549_v52  ;;  %520 = vmatpush.xpose.msra.mxu2 %v2824_v29  ;;  %v825_v19 = vand.u32 4294901760, %v803_v15  ;;  %v1154_v54 = vsub.f32 %v1110_v49, %v1127_v51 }
  0x1c   :  { %v675_v23 = vand.u32 4294901760, %v674_v16 }
  0x1d   :  { %v826_v24 = vsub.f32 %v803_v15, %v825_v19 }
  0x1e   :  { %272 = vmatmul.f32.vlgmr.msra.gmra.mxu0 %v2819_v22  ;;  %v1272_v22 = vrot.slane %v2803_v9, 4  ;;  %v676_v28 = vsub.f32 %v674_v16, %v675_v23 }
  0x1f   :  { %470 = vmatpush.xpose.msra.mxu0 %v395_v41  ;;  %v978_v41 = vsub.f32 %v955_v39, %v977_v40 }
  0x20   :  { %296 = vmatmul.f32.vlgmr.msra.gmra.mxu1 %v219_v27  ;;  %v1280_v26 = vperm.slane %v1272_v22, 0  ;;  %v1273_v27 = vrot.slane %v2803_v9, 5  ;;  %v677_v32 = vand.u32 4294901760, %v676_v28 }
  0x21   :  { %492 = vmatpush.xpose.msra.mxu1 %v2816_v21  ;;  %v1271_v21 = vrot.slane %v2803_v9, 3  ;;  %v979_v43 = vand.u32 4294901760, %v978_v41 }
  0x22   :  { %448 = vmatmul.f32.vlgmr.msrb.gmra.mxu3 %v371_v55  ;;  %424 = vmatmul.f32.vlgmr.msrb.gmra.mxu2 %v370_v50  ;;  %v1281_v31 = vperm.slane %v1273_v27, 0  ;;  %v24_v50 = vld [vmem:[%s3115_s0 + $0x38] sm:$0xff] }
  0x23   :  { %644 = vmatpush.xpose.msrb.mxu3 %v2824_v29  ;;  %622 = vmatpush.xpose.msrb.mxu2 %v547_v44  ;;  %v1279_v25 = vperm.slane %v1271_v21, 0  ;;  %v980_v45 = vsub.f32 %v978_v41, %v979_v43  ;;  %v1107_v52 = vsel %vm41_vm0, %v24_v50, 0 }
  0x24   :  { %1297 = vperm.xlu2 %2723, %v1280_v26  }
  0x25   :  { %1294 = vperm.xlu1 %2722, %v1279_v25   ;;  %v981_v47 = vand.u32 4294901760, %v980_v45 }
  0x26   :  { %374 = vmatmul.f32.vlgmr.msrb.gmra.mxu0 %v373_v63 }
  0x27   :  { %573 = vmatpush.xpose.msrb.mxu0 %v2831_v35  ;;  %v975_v35 = vand.u32 4294901760, %v958_v34 }
  0x28   :  { %400 = vmatmul.f32.vlgmr.msrb.gmra.mxu1 %v2843_v46 }
  0x29   :  { %596 = vmatpush.xpose.msrb.mxu1 %v2824_v29  ;;  %v827_v29 = vand.u32 4294901760, %v826_v24  ;;  %v1002_v37 = vsub.f32 %v958_v34, %v975_v35 }
  0x2a   :  { %552 = vmatmul.f32.vlgmr.msra.gmra.mxu3 %v521_v53  ;;  %526 = vmatmul.f32.vlgmr.msra.gmra.mxu2 %v525_v5 }
  0x2b   :  { %748 = vmatpush.xpose.msra.mxu3 %v2863_v61  ;;  %725 = vmatpush.xpose.msra.mxu2 %v698_v0  ;;  %v828_v33 = vsub.f32 %v826_v24, %v827_v29  ;;  %v1003_v42 = vand.u32 4294901760, %v1002_v37 }
  0x2d   :  { %1300 = vperm.xlu1 %2722, %v1281_v31   ;;  %v829_v36 = vand.u32 4294901760, %v828_v33  ;;  %v1004_v44 = vsub.f32 %v1002_v37, %v1003_v42 }
  0x2e   :  { %472 = vmatmul.f32.vlgmr.msra.gmra.mxu0 %v2843_v46 }
  0x2f   :  { %672 = vmatpush.xpose.msra.mxu0 %v2863_v61 }
  0x30   :  { %494 = vmatmul.f32.vlgmr.msra.gmra.mxu1 %v2843_v46  ;;  %v1005_v46 = vand.u32 4294901760, %v1004_v44 }
  0x31   :  { %702 = vmatpush.xpose.msra.mxu1 %v701_v17 }
  0x32   :  { %646 = vmatmul.f32.vlgmr.msrb.gmra.mxu3 %v521_v53  ;;  %624 = vmatmul.f32.vlgmr.msrb.gmra.mxu2 %v521_v53  ;;  %v1129_v53 = vand.u32 4294901760, %v1107_v52 }
  0x33   :  { %854 = vmatpush.xpose.msrb.mxu3 %v853_v20  ;;  %824 = vmatpush.xpose.msrb.mxu2 %v823_v8 }
  0x34   :  { %v1130_v55 = vsub.f32 %v1107_v52, %v1129_v53  ;;  %v1275_v52 = vrot.slane %v2803_v9, 7 }
  0x36   :  { %576 = vmatmul.f32.vlgmr.msrb.gmra.mxu0 %v2857_v56  ;;  %v1155_v56 = vand.u32 4294901760, %v1154_v54  ;;  %v1131_v57 = vand.u32 4294901760, %v1130_v55 }
  0x37   :  { %774 = vmatpush.xpose.msrb.mxu0 %v699_v3  ;;  %v1266_v3 = vlaneseq }
  0x38   :  { %600 = vmatmul.f32.vlgmr.msrb.gmra.mxu1 %v523_v62  ;;  %v1156_v58 = vsub.f32 %v1154_v54, %v1155_v56  ;;  %v1132_v59 = vsub.f32 %v1130_v55, %v1131_v57 }
  0x39   :  { %796 = vmatpush.xpose.msrb.mxu1 %v2863_v61  ;;  %v2912_v7 = vand.u32 127, %v1266_v3 }
  0x3a   :  { %752 = vmatmul.f32.vlgmr.msra.gmra.mxu3 %v675_v23  ;;  %728 = vmatmul.f32.vlgmr.msra.gmra.mxu2 %v674_v16  ;;  %v1157_v60 = vand.u32 4294901760, %v1156_v58  ;;  %v1133_v61 = vand.u32 4294901760, %v1132_v59 }
  0x3b   :  { %948 = vmatpush.xpose.msra.mxu3 %v823_v8  ;;  %926 = vmatpush.xpose.msra.mxu2 %v851_v14 }
  0x3e   :  { %678 = vmatmul.f32.vlgmr.msra.gmra.mxu0 %v677_v32 }
  0x3f   :  { %877 = vmatpush.xpose.msra.mxu0 %v850_v13 }
  0x40   :  { %704 = vmatmul.f32.vlgmr.msra.gmra.mxu1 %v673_v11 }
  0x41   :  { %900 = vmatpush.xpose.msra.mxu1 %v823_v8 }
  0x42   :  { %856 = vmatmul.f32.vlgmr.msrb.gmra.mxu3 %v825_v19  ;;  %830 = vmatmul.f32.vlgmr.msrb.gmra.mxu2 %v829_v36 }
  0x43   :  { %1052 = vmatpush.xpose.msrb.mxu3 %v975_v35  ;;  %1029 = vmatpush.xpose.msrb.mxu2 %v1002_v37 }
  0x46   :  { %776 = vmatmul.f32.vlgmr.msrb.gmra.mxu0 %v673_v11 }
  0x47   :  { %976 = vmatpush.xpose.msrb.mxu0 %v975_v35 }
  0x48   :  { %798 = vmatmul.f32.vlgmr.msrb.gmra.mxu1 %v673_v11 }
  0x49   :  { %1006 = vmatpush.xpose.msrb.mxu1 %v1005_v46 }
  0x4a   :  { %950 = vmatmul.f32.vlgmr.msra.gmra.mxu3 %v825_v19  ;;  %928 = vmatmul.f32.vlgmr.msra.gmra.mxu2 %v825_v19 }
  0x4b   :  { %1128 = vmatpush.xpose.msra.mxu2 %v1127_v51  ;;  %1158 = vmatpush.xpose.msra.mxu3 %v1157_v60 }
  0x4e   :  { %880 = vmatmul.f32.vlgmr.msra.gmra.mxu0 %v826_v24 }
  0x4f   :  { %1078 = vmatpush.xpose.msra.mxu0 %v1003_v42  ;;  %v1274_v42 = vrot.slane %v2803_v9, 6 }
  0x50   :  { %904 = vmatmul.f32.vlgmr.msra.gmra.mxu1 %v827_v29 }
  0x51   :  { %1100 = vmatpush.xpose.msra.mxu1 %v975_v35 }
  0x52   :  { %1032 = vmatmul.f32.vlgmr.msrb.gmra.mxu2 %v978_v41  ;;  %1056 = vmatmul.f32.vlgmr.msrb.gmra.mxu3 %v979_v43 }
  0x53   :  { %1230 = vmatpush.xpose.msrb.mxu2 %v1155_v56  ;;  %1252 = vmatpush.xpose.msrb.mxu3 %v1127_v51 }
  0x56   :  { %982 = vmatmul.f32.vlgmr.msrb.gmra.mxu0 %v981_v47  ;;  %v1282_v47 = vperm.slane %v1274_v42, 0 }
  0x57   :  { %1181 = vmatpush.xpose.msrb.mxu0 %v1154_v54 }
  0x58   :  { %1008 = vmatmul.f32.vlgmr.msrb.gmra.mxu1 %v977_v40 }
  0x59   :  { %1204 = vmatpush.xpose.msrb.mxu1 %v1127_v51 }
  0x5a   :  { %1134 = vmatmul.f32.vlgmr.msra.gmra.mxu2 %v1133_v61  ;;  %1160 = vmatmul.f32.vlgmr.msra.gmra.mxu3 %v1129_v53 }
  0x5e   :  { %1080 = vmatmul.f32.vlgmr.msra.gmra.mxu0 %v977_v40 }
  0x60   :  { %1102 = vmatmul.f32.vlgmr.msra.gmra.mxu1 %v977_v40 }
  0x62   :  { %1232 = vmatmul.f32.vlgmr.msrb.gmra.mxu2 %v1129_v53  ;;  %1254 = vmatmul.f32.vlgmr.msrb.gmra.mxu3 %v1129_v53 }
  0x66   :  { %1184 = vmatmul.f32.vlgmr.msrb.gmra.mxu0 %v1130_v55  ;;  %v1283_v55 = vperm.slane %v1275_v52, 0 }
  0x68   :  { %1208 = vmatmul.f32.vlgmr.msrb.gmra.mxu1 %v1131_v57 }
  0x78   :  { %v1286_v13 = vpop.permute.xlu0 %1285 }
  0x79   :  { %vm1308_vm1 = vcmp.ge.s32.totalorder %v2912_v7, %v1286_v13 }
  0x7e   :  { %v1298_v3 = vpop.permute.xlu2 %1297 }
  0x7f   :  { %vm1312_vm4 = vcmp.ge.s32.totalorder %v2912_v7, %v1298_v3 }
  0x80   :  { %v1289_v26 = vpop.permute.xlu0 %1288 }
  0x81   :  { %vm1309_vm2 = vcmp.ge.s32.totalorder %v2912_v7, %v1289_v26 }
  0x85   :  { %v1292_v40 = vpop.permute.xlu1 %1291 }
  0x86   :  { %vm1310_vm3 = vcmp.ge.s32.totalorder %v2912_v7, %v1292_v40 }
  0x8b   :  { %v71_v62 = vpop.f32.mrf.mxu0 }
  0x8d   :  { %v145_v63 = vpop.f32.mrf.mxu3  ;;  %v97_v0 = vpop.f32.mrf.mxu1 }
  0x8e   :  { %v121_v1 = vpop.f32.mrf.mxu2  ;;  %v98_v2 = vadd.f32 %v97_v0, %v71_v62 }
  0x90   :  { %v122_v4 = vadd.f32 %v121_v1, %v98_v2 }
  0x92   :  { %v146_v5 = vadd.f32 %v145_v63, %v122_v4 }
  0x93   :  { %v169_v6 = vpop.f32.mrf.mxu0 }
  0x94   :  { %v170_v8 = vadd.f32 %v169_v6, %v146_v5 }
  0x95   :  { %v249_v10 = vpop.f32.mrf.mxu3  ;;  %v191_v11 = vpop.f32.mrf.mxu1 }
  0x96   :  { %v223_v12 = vpop.f32.mrf.mxu2  ;;  %v192_v14 = vadd.f32 %v191_v11, %v170_v8 }
  0x97   :  { %v250_v15 = vadd.f32 %v249_v10, %v223_v12 }
  0x98   :  { %v1258_v16 = vmul.f32 0.35355338, %v192_v14 }
  0x9a   :  { %v2915_v18 = vsel %vm1308_vm1, -1000000.0, %v1258_v16 }
  0x9b   :  { %v273_v17 = vpop.f32.mrf.mxu0  ;;  %v1324_v20 = vsel %vm41_vm0, %v2915_v18, -inf }
  0x9c   :  { %v274_v19 = vadd.f32 %v273_v17, %v250_v15  ;;  %1325 = vmax.xlane.f32.xlu2 %v1324_v20  ;;  %v1295_v20 = vpop.permute.xlu1 %1294 }
  0x9d   :  { %v343_v21 = vpop.f32.mrf.mxu3  ;;  %v297_v22 = vpop.f32.mrf.mxu1  ;;  %vm1311_vm5 = vcmp.ge.s32.totalorder %v2912_v7, %v1295_v20 }
  0x9e   :  { %v321_v23 = vpop.f32.mrf.mxu2  ;;  %v298_v24 = vadd.f32 %v297_v22, %v274_v19 }
  0xa0   :  { %v322_v25 = vadd.f32 %v321_v23, %v298_v24 }
  0xa2   :  { %v344_v27 = vadd.f32 %v343_v21, %v322_v25 }
  0xa3   :  { %v375_v28 = vpop.f32.mrf.mxu0 }
  0xa4   :  { %v1259_v29 = vmul.f32 0.35355338, %v344_v27 }
  0xa5   :  { %v449_v30 = vpop.f32.mrf.mxu3  ;;  %v401_v31 = vpop.f32.mrf.mxu1 }
  0xa6   :  { %v425_v32 = vpop.f32.mrf.mxu2  ;;  %v402_v33 = vadd.f32 %v401_v31, %v375_v28  ;;  %v2920_v34 = vsel %vm1309_vm2, -1000000.0, %v1259_v29  ;;  %v1301_v29 = vpop.permute.xlu1 %1300 }
  0xa7   :  { %v1327_v35 = vsel %vm41_vm0, %v2920_v34, -inf  ;;  %vm1313_vm6 = vcmp.ge.s32.totalorder %v2912_v7, %v1301_v29 }
  0xa8   :  { %v426_v36 = vadd.f32 %v425_v32, %v402_v33  ;;  %1328 = vmax.xlane.f32.xlu0 %v1327_v35 }
  0xaa   :  { %v450_v37 = vadd.f32 %v449_v30, %v426_v36 }
  0xab   :  { %v473_v38 = vpop.f32.mrf.mxu0 }
  0xac   :  { %v474_v39 = vadd.f32 %v473_v38, %v450_v37 }
  0xad   :  { %v553_v41 = vpop.f32.mrf.mxu3  ;;  %v495_v43 = vpop.f32.mrf.mxu1 }
  0xae   :  { %v527_v44 = vpop.f32.mrf.mxu2  ;;  %v496_v45 = vadd.f32 %v495_v43, %v474_v39 }
  0xaf   :  { %v554_v61 = vadd.f32 %v553_v41, %v527_v44 }
  0xb0   :  { %v1260_v46 = vmul.f32 0.35355338, %v496_v45 }
  0xb2   :  { %v2926_v49 = vsel %vm1310_vm3, -1000000.0, %v1260_v46 }
  0xb3   :  { %v577_v48 = vpop.f32.mrf.mxu0  ;;  %v1330_v50 = vsel %vm41_vm0, %v2926_v49, -inf }
  0xb4   :  { %1331 = vmax.xlane.f32.xlu1 %v1330_v50  ;;  %1303 = vperm.xlu2 %2723, %v1282_v47   ;;  %v578_v1 = vadd.f32 %v577_v48, %v554_v61 }
  0xb5   :  { %v647_v51 = vpop.f32.mrf.mxu3  ;;  %v601_v53 = vpop.f32.mrf.mxu1 }
  0xb6   :  { %v625_v54 = vpop.f32.mrf.mxu2  ;;  %v602_v9 = vadd.f32 %v601_v53, %v578_v1 }
  0xb8   :  { %v626_v14 = vadd.f32 %v625_v54, %v602_v9 }
  0xba   :  { %v648_v19 = vadd.f32 %v647_v51, %v626_v14 }
  0xbb   :  { %v679_v56 = vpop.f32.mrf.mxu0 }
  0xbc   :  { %1306 = vperm.xlu0 %2721, %v1283_v55   ;;  %v1261_v23 = vmul.f32 0.35355338, %v648_v19 }
  0xbd   :  { %v753_v57 = vpop.f32.mrf.mxu3  ;;  %v705_v58 = vpop.f32.mrf.mxu1 }
  0xbe   :  { %v729_v59 = vpop.f32.mrf.mxu2  ;;  %v706_v60 = vadd.f32 %v705_v58, %v679_v56  ;;  %v2937_v26 = vsel %vm1311_vm5, -1000000.0, %v1261_v23 }
  0xbf   :  { %v1333_v28 = vsel %vm41_vm0, %v2937_v26, -inf }
  0xc0   :  { %v730_v62 = vadd.f32 %v729_v59, %v706_v60 }
  0xc2   :  { %v754_v63 = vadd.f32 %v753_v57, %v730_v62 }
  0xc3   :  { %v777_v0 = vpop.f32.mrf.mxu0 }
  0xc4   :  { %v778_v2 = vadd.f32 %v777_v0, %v754_v63 }
  0xc5   :  { %v799_v4 = vpop.f32.mrf.mxu1  ;;  %v857_v5 = vpop.f32.mrf.mxu3 }
  0xc6   :  { %v800_v6 = vadd.f32 %v799_v4, %v778_v2  ;;  %v831_v8 = vpop.f32.mrf.mxu2 }
  0xc7   :  { %v858_v11 = vadd.f32 %v857_v5, %v831_v8 }
  0xc8   :  { %v1262_v10 = vmul.f32 0.35355338, %v800_v6 }
  0xca   :  { %v2932_v12 = vsel %vm1312_vm4, -1000000.0, %v1262_v10 }
  0xcb   :  { %v881_v13 = vpop.f32.mrf.mxu0  ;;  %v1336_v15 = vsel %vm41_vm0, %v2932_v12, -inf }
  0xcc   :  { %1337 = vmax.xlane.f32.xlu1 %v1336_v15  ;;  %v882_v16 = vadd.f32 %v881_v13, %v858_v11 }
  0xcd   :  { %v905_v17 = vpop.f32.mrf.mxu1  ;;  %v951_v25 = vpop.f32.mrf.mxu3 }
  0xce   :  { %v906_v21 = vadd.f32 %v905_v17, %v882_v16  ;;  %v929_v22 = vpop.f32.mrf.mxu2 }
  0xd0   :  { %v930_v24 = vadd.f32 %v929_v22, %v906_v21 }
  0xd2   :  { %v952_v27 = vadd.f32 %v951_v25, %v930_v24 }
  0xd3   :  { %v983_v35 = vpop.f32.mrf.mxu0 }
  0xd4   :  { %v1263_v30 = vmul.f32 0.35355338, %v952_v27 }
  0xd5   :  { %v1009_v33 = vpop.f32.mrf.mxu1  ;;  %v1057_v39 = vpop.f32.mrf.mxu3 }
  0xd6   :  { %v2942_v31 = vsel %vm1313_vm6, -1000000.0, %v1263_v30  ;;  %v1010_v36 = vadd.f32 %v1009_v33, %v983_v35  ;;  %v1033_v37 = vpop.f32.mrf.mxu2 }
  0xd7   :  { %v1339_v32 = vsel %vm41_vm0, %v2942_v31, -inf }
  0xd8   :  { %v1034_v38 = vadd.f32 %v1033_v37, %v1010_v36  ;;  %v34_v36 = vld [vmem:[%s3117_s2 + $0x8] sm:$0xff] }
  0xd9   :  { %v2992_v37 = vand.u32 4294901760, %v34_v36 }
  0xda   :  { %v1058_v42 = vadd.f32 %v1057_v39, %v1034_v38 }
  0xdb   :  { %v1081_v43 = vpop.f32.mrf.mxu0  ;;  %v2995_v38 = vsub.f32 %v34_v36, %v2992_v37 }
  0xdc   :  { %v1082_v45 = vadd.f32 %v1081_v43, %v1058_v42 }
  0xdd   :  { %1334 = vmax.xlane.f32.xlu2 %v1333_v28  ;;  %v1103_v46 = vpop.f32.mrf.mxu1  ;;  %v1161_v47 = vpop.f32.mrf.mxu3  ;;  %v1711_v39 = vand.u32 4294901760, %v2995_v38 }
  0xde   :  { %v1104_v48 = vadd.f32 %v1103_v46, %v1082_v45  ;;  %v1135_v50 = vpop.f32.mrf.mxu2 }
  0xdf   :  { %v1162_v53 = vadd.f32 %v1161_v47, %v1135_v50  ;;  %v35_v47 = vld [vmem:[%s3117_s2 + $0x10] sm:$0xff] }
  0xe0   :  { %v1264_v57 = vmul.f32 0.35355338, %v1104_v48 }
  0xe3   :  { %v1185_v56 = vpop.f32.mrf.mxu0 }
  0xe4   :  { %v1186_v59 = vadd.f32 %v1185_v56, %v1162_v53  ;;  %v3004_v56 = vand.u32 4294901760, %v35_v47 }
  0xe5   :  { %v1209_v60 = vpop.f32.mrf.mxu1  ;;  %v1255_v4 = vpop.f32.mrf.mxu3 }
  0xe6   :  { %1340 = vmax.xlane.f32.xlu0 %v1339_v32  ;;  %v1210_v62 = vadd.f32 %v1209_v60, %v1186_v59  ;;  %v1233_v0 = vpop.f32.mrf.mxu2  ;;  %v3007_v59 = vsub.f32 %v35_v47, %v3004_v56 }
  0xe8   :  { %v1234_v2 = vadd.f32 %v1233_v0, %v1210_v62 }
  0xea   :  { %v1256_v9 = vadd.f32 %v1255_v4, %v1234_v2 }
  0xec   :  { %v1265_v8 = vmul.f32 0.35355338, %v1256_v9 }
 0x10f   :  { %v1326_v40 = vpop.xlane.xlu2 %1325 }
 0x110   :  { %v1348_v41 = vsub.f32 %v2915_v18, %v1326_v40  ;;  %v1712_v40 = vsub.f32 %v2995_v38, %v1711_v39 }
 0x112   :  { %v1356_v44 = vmul.f32 1.442695, %v1348_v41  ;;  %v1713_v42 = vand.u32 4294901760, %v1712_v40 }
 0x114   :  { %2724 = vpow2.f32 %v1356_v44 }
 0x117   :  { %v1304_v52 = vpop.permute.xlu2 %1303 }
 0x118   :  { %vm1314_vm7 = vcmp.ge.s32.totalorder %v2912_v7, %v1304_v52 }
 0x119   :  { %v2953_v61 = vsel %vm1314_vm7, -1000000.0, %v1264_v57 }
 0x11a   :  { %v2947_v51 = vpop.eup %2724  ;;  %v1342_v63 = vsel %vm41_vm0, %v2953_v61, -inf }
 0x11b   :  { %v1329_v54 = vpop.xlane.xlu0 %1328  ;;  %v1372_v55 = vsel %vm41_vm0, %v2947_v51, 0.0 }
 0x11c   :  { %v1349_v18 = vsub.f32 %v2920_v34, %v1329_v54  ;;  %1373 = vadd.xlane.f32.xlu1 %v1372_v55 }
 0x11e   :  { %v1358_v58 = vmul.f32 1.442695, %v1349_v18 }
 0x120   :  { %2726 = vpow2.f32 %v1358_v58 }
 0x124   :  { %1343 = vmax.xlane.f32.xlu1 %v1342_v63 }
 0x126   :  { %v2957_v1 = vpop.eup %2726 }
 0x127   :  { %v1332_v3 = vpop.xlane.xlu1 %1331  ;;  %v1375_v34 = vsel %vm41_vm0, %v2957_v1, 0.0 }
 0x128   :  { %v1350_v5 = vsub.f32 %v2926_v49, %v1332_v3  ;;  %1376 = vadd.xlane.f32.xlu2 %v1375_v34  ;;  %v1860_v3 = vand.u32 4294901760, %v3007_v59 }
 0x12a   :  { %v1360_v6 = vmul.f32 1.442695, %v1350_v5 }
 0x12c   :  { %2728 = vpow2.f32 %v1360_v6 }
 0x12e   :  { %v1307_v10 = vpop.permute.xlu0 %1306 }
 0x12f   :  { %vm1315_vm8 = vcmp.ge.s32.totalorder %v2912_v7, %v1307_v10 }
 0x130   :  { %v2963_v11 = vsel %vm1315_vm8, -1000000.0, %v1265_v8 }
 0x131   :  { %v1345_v13 = vsel %vm41_vm0, %v2963_v11, -inf }
 0x132   :  { %v2967_v14 = vpop.eup %2728  ;;  %1346 = vmax.xlane.f32.xlu1 %v1345_v13 }
 0x133   :  { %v1378_v15 = vsel %vm41_vm0, %v2967_v14, 0.0 }
 0x134   :  { %1379 = vadd.xlane.f32.xlu2 %v1378_v15  ;;  %v1861_v15 = vsub.f32 %v3007_v59, %v1860_v3 }
 0x13f   :  { %v1338_v49 = vpop.xlane.xlu1 %1337 }
 0x140   :  { %v1352_v16 = vsub.f32 %v2932_v12, %v1338_v49 }
 0x142   :  { %v1364_v17 = vmul.f32 1.442695, %v1352_v16 }
 0x144   :  { %2730 = vpow2.f32 %v1364_v17 }
 0x14a   :  { %v2972_v19 = vpop.eup %2730 }
 0x14b   :  { %v1384_v7 = vsel %vm41_vm0, %v2972_v19, 0.0 }
 0x14c   :  { %1385 = vadd.xlane.f32.xlu1 %v1384_v7 }
 0x150   :  { %v1335_v20 = vpop.xlane.xlu2 %1334 }
 0x151   :  { %v1351_v21 = vsub.f32 %v2937_v26, %v1335_v20  ;;  %v33_v26 = vld [vmem:[%s3117_s2] sm:$0xff] }
 0x152   :  { %v1534_v30 = vand.u32 4294901760, %v33_v26 }
 0x153   :  { %v1362_v22 = vmul.f32 1.442695, %v1351_v21  ;;  %v1862_v21 = vand.u32 4294901760, %v1861_v15 }
 0x154   :  { %1611 = vmatpush.msra.mxu3 %v1534_v30  ;;  %1535 = vmatpush.msra.mxu0 %v1534_v30 }
 0x155   :  { %2732 = vpow2.f32 %v1362_v22 }
 0x156   :  { %1714 = vmatpush.msrb.mxu3 %v1713_v42 }
 0x159   :  { %v1341_v23 = vpop.xlane.xlu0 %1340 }
 0x15a   :  { %v1353_v24 = vsub.f32 %v2942_v31, %v1341_v23  ;;  %v1561_v31 = vsub.f32 %v33_v26, %v1534_v30 }
 0x15b   :  { %v2978_v25 = vpop.eup %2732 }
 0x15c   :  { %v1366_v27 = vmul.f32 1.442695, %v1353_v24  ;;  %v1381_v12 = vsel %vm41_vm0, %v2978_v25, 0.0  ;;  %v1562_v32 = vand.u32 4294901760, %v1561_v31  ;;  %1588 = vmatpush.msra.mxu2 %v1561_v31 }
 0x15d   :  { %1382 = vadd.xlane.f32.xlu2 %v1381_v12 }
 0x15e   :  { %2734 = vpow2.f32 %v1366_v27  ;;  %v1563_v33 = vsub.f32 %v1561_v31, %v1562_v32  ;;  %1637 = vmatpush.msrb.mxu0 %v1562_v32  ;;  %1684 = vmatpush.msrb.mxu2 %v2992_v37 }
 0x160   :  { %v1564_v35 = vand.u32 4294901760, %v1563_v33 }
 0x162   :  { %1565 = vmatpush.msra.mxu1 %v1564_v35 }
 0x164   :  { %v2982_v28 = vpop.eup %2734  ;;  %1659 = vmatpush.msrb.mxu1 %v1534_v30 }
 0x165   :  { %v1387_v29 = vsel %vm41_vm0, %v2982_v28, 0.0 }
 0x166   :  { %1388 = vadd.xlane.f32.xlu2 %v1387_v29 }
 0x18f   :  { %v1374_v41 = vpop.xlane.xlu1 %1373 }
 0x190   :  { %2736 = vrcp.f32 %v1374_v41  ;;  %v1407_v50 = vand.u32 2147483648, %v1374_v41  ;;  %v1405_v54 = vand.u32 2147483647, %v1374_v41  ;;  %vm1401_vm10 = vweird.f32 %v1374_v41 }
 0x192   :  { %v1408_v18 = vor.u32 1.1754944e-38, %v1407_v50  ;;  %vm1406_vm12 = vcmp.eq.f32.partialorder %v1405_v54, 8.507059e+37 }
 0x196   :  { %v2737_v43 = vpop.eup %2736 }
 0x197   :  { %v1397_v44 = vmul.f32 %v2737_v43, %v1374_v41  ;;  %v1344_v45 = vpop.xlane.xlu1 %1343  ;;  %vm1402_vm9 = vweird.f32 %v2737_v43 }
 0x198   :  { %v1354_v46 = vsub.f32 %v2953_v61, %v1344_v45  ;;  %vm1403_vm11 = vmor %vm1401_vm10, %vm1402_vm9 }
 0x199   :  { %v1398_v48 = vsub.f32 1.0, %v1397_v44 }
 0x19a   :  { %v1368_v52 = vmul.f32 1.442695, %v1354_v46 }
 0x19b   :  { %v1399_v53 = vmul.f32 %v2737_v43, %v1398_v48  ;;  %v1377_v55 = vpop.xlane.xlu2 %1376  ;;  %v36_v48 = vld [vmem:[%s3117_s2 + $0x18] sm:$0xff] }
 0x19c   :  { %2738 = vpow2.f32 %v1368_v52  ;;  %v1422_v10 = vand.u32 2147483648, %v1377_v55  ;;  %vm1416_vm14 = vweird.f32 %v1377_v55  ;;  %v1981_v50 = vand.u32 4294901760, %v36_v48 }
 0x19d   :  { %v1400_v57 = vadd.f32 %v2737_v43, %v1399_v53  ;;  %2740 = vrcp.f32 %v1377_v55 }
 0x19e   :  { %v2008_v54 = vsub.f32 %v36_v48, %v1981_v50 }
 0x19f   :  { %v1404_v58 = vsel %vm1403_vm11, %v2737_v43, %v1400_v57 }
 0x1a0   :  { %v1409_v60 = vsel %vm1406_vm12, %v1408_v18, %v1404_v58 }
 0x1a1   :  { %v1410_v61 = vmul.f32 %v2947_v51, %v1409_v60  ;;  %v1420_v51 = vand.u32 2147483647, %v1377_v55 }
 0x1a2   :  { %v3010_v62 = vpop.eup %2738 }
 0x1a3   :  { %v2741_v63 = vpop.eup %2740  ;;  %v1390_v0 = vsel %vm41_vm0, %v3010_v62, 0.0  ;;  %v1517_v2 = vsel %vm41_vm0, %v1410_v61, 0  ;;  %vm1421_vm1 = vcmp.eq.f32.partialorder %v1420_v51, 8.507059e+37 }
 0x1a4   :  { %v1412_v34 = vmul.f32 %v2741_v63, %v1377_v55  ;;  %1391 = vadd.xlane.f32.xlu1 %v1390_v0  ;;  %v1536_v4 = vand.u32 4294901760, %v1517_v2  ;;  %vm1417_vm13 = vweird.f32 %v2741_v63  ;;  %v2009_v55 = vand.u32 4294901760, %v2008_v54 }
 0x1a5   :  { %v1347_v5 = vpop.xlane.xlu1 %1346  ;;  %vm1418_vm15 = vmor %vm1416_vm14, %vm1417_vm13 }
 0x1a6   :  { %v1413_v6 = vsub.f32 1.0, %v1412_v34  ;;  %v1355_v9 = vsub.f32 %v2963_v11, %v1347_v5  ;;  %1567 = vmatmul.f32.vlgmr.msra.gmra.mxu1 %v1536_v4  ;;  %v1537_v8 = vsub.f32 %v1517_v2, %v1536_v4  ;;  %v1423_v11 = vor.u32 1.1754944e-38, %v1422_v10 }
 0x1a7   :  { %v1380_v13 = vpop.xlane.xlu2 %1379  ;;  %1760 = vmatpush.msra.mxu1 %v2992_v37  ;;  %v2010_v57 = vsub.f32 %v2008_v54, %v2009_v55 }
 0x1a8   :  { %v1414_v49 = vmul.f32 %v2741_v63, %v1413_v6  ;;  %v1370_v16 = vmul.f32 1.442695, %v1355_v9  ;;  %2742 = vrcp.f32 %v1380_v13  ;;  %1591 = vmatmul.f32.vlgmr.msra.gmra.mxu2 %v1537_v8  ;;  %v1538_v17 = vand.u32 4294901760, %v1537_v8 }
 0x1a9   :  { %1786 = vmatpush.msra.mxu2 %v1711_v39  ;;  %v1437_v35 = vand.u32 2147483648, %v1380_v13  ;;  %vm1431_vm3 = vweird.f32 %v1380_v13  ;;  %v2011_v58 = vand.u32 4294901760, %v2010_v57 }
 0x1aa   :  { %v1415_v7 = vadd.f32 %v2741_v63, %v1414_v49  ;;  %2744 = vpow2.f32 %v1370_v16  ;;  %1615 = vmatmul.f32.vlgmr.msra.gmra.mxu3 %v1538_v17  ;;  %v1539_v20 = vsub.f32 %v1537_v8, %v1538_v17 }
 0x1ab   :  { %1808 = vmatpush.msra.mxu3 %v2992_v37  ;;  %v1435_v37 = vand.u32 2147483647, %v1380_v13  ;;  %v1438_v41 = vor.u32 1.1754944e-38, %v1437_v35 }
 0x1ac   :  { %v1419_v22 = vsel %vm1418_vm15, %v2741_v63, %v1415_v7  ;;  %v1540_v24 = vand.u32 4294901760, %v1539_v20 }
 0x1ad   :  { %v1424_v23 = vsel %vm1421_vm1, %v1423_v11, %v1419_v22  ;;  %vm1436_vm5 = vcmp.eq.f32.partialorder %v1435_v37, 8.507059e+37  ;;  %v38_v11 = vld [vmem:[%s3117_s2 + $0x28] sm:$0xff] }
 0x1ae   :  { %v2743_v27 = vpop.eup %2742  ;;  %1661 = vmatmul.f32.vlgmr.msrb.gmra.mxu1 %v1536_v4  ;;  %v1425_v12 = vmul.f32 %v2957_v1, %v1424_v23  ;;  %1541 = vmatmul.f32.vlgmr.msra.gmra.mxu0 %v1540_v24 }
 0x1af   :  { %v1427_v29 = vmul.f32 %v2743_v27, %v1380_v13  ;;  %1863 = vmatpush.msrb.mxu1 %v1862_v21  ;;  %1737 = vmatpush.msra.mxu0 %v2995_v38  ;;  %vm1432_vm2 = vweird.f32 %v2743_v27 }
 0x1b0   :  { %v3023_v26 = vpop.eup %2744  ;;  %v1666_v30 = vsel %vm41_vm0, %v1425_v12, 0  ;;  %vm1433_vm4 = vmor %vm1431_vm3, %vm1432_vm2 }
 0x1b1   :  { %v1428_v31 = vsub.f32 1.0, %v1427_v29  ;;  %v1393_v32 = vsel %vm41_vm0, %v3023_v26, 0.0  ;;  %v1685_v33 = vand.u32 4294901760, %v1666_v30 }
 0x1b2   :  { %1394 = vadd.xlane.f32.xlu2 %v1393_v32 }
 0x1b3   :  { %v1429_v36 = vmul.f32 %v2743_v27, %v1428_v31  ;;  %v1686_v1 = vsub.f32 %v1666_v30, %v1685_v33  ;;  %1716 = vmatmul.f32.vlgmr.msrb.gmra.mxu3 %v1685_v33 }
 0x1b4   :  { %1909 = vmatpush.msrb.mxu3 %v3004_v56 }
 0x1b5   :  { %v1430_v39 = vadd.f32 %v2743_v27, %v1429_v36  ;;  %v1687_v40 = vand.u32 4294901760, %v1686_v1 }
 0x1b6   :  { %1639 = vmatmul.f32.vlgmr.msrb.gmra.mxu0 %v1536_v4 }
 0x1b7   :  { %v1434_v38 = vsel %vm1433_vm4, %v2743_v27, %v1430_v39  ;;  %1764 = vmatmul.f32.vlgmr.msra.gmra.mxu1 %v1687_v40  ;;  %v1688_v42 = vsub.f32 %v1686_v1, %v1687_v40  ;;  %1833 = vmatpush.msrb.mxu0 %v3004_v56  ;;  %v2279_v27 = vand.u32 4294901760, %v38_v11 }
 0x1b8   :  { %v1439_v43 = vsel %vm1436_vm5, %v1438_v41, %v1434_v38  ;;  %1957 = vmatpush.msra.mxu1 %v3004_v56 }
 0x1b9   :  { %v1689_v44 = vand.u32 4294901760, %v1688_v42  ;;  %v1440_v45 = vmul.f32 %v2967_v14, %v1439_v43  ;;  %v2306_v32 = vsub.f32 %v38_v11, %v2279_v27 }
 0x1bb   :  { %1690 = vmatmul.f32.vlgmr.msrb.gmra.mxu2 %v1689_v44  ;;  %1810 = vmatmul.f32.vlgmr.msra.gmra.mxu3 %v1685_v33  ;;  %v1815_v46 = vsel %vm41_vm0, %v1440_v45, 0  ;;  %v2307_v40 = vand.u32 4294901760, %v2306_v32 }
 0x1bc   :  { %v1834_v47 = vand.u32 4294901760, %v1815_v46  ;;  %1886 = vmatpush.msrb.mxu2 %v3007_v59  ;;  %2012 = vmatpush.msra.mxu3 %v2011_v58  ;;  %v37_v59 = vld [vmem:[%s3117_s2 + $0x20] sm:$0xff] }
 0x1bd   :  { %v3043_v0 = vand.u32 4294901760, %v37_v59 }
 0x1be   :  { %v1835_v52 = vsub.f32 %v1815_v46, %v1834_v47  ;;  %1740 = vmatmul.f32.vlgmr.msra.gmra.mxu0 %v1686_v1 }
 0x1bf   :  { %1865 = vmatmul.f32.vlgmr.msrb.gmra.mxu1 %v1834_v47  ;;  %v1386_v53 = vpop.xlane.xlu1 %1385  ;;  %1935 = vmatpush.msra.mxu0 %v1860_v3  ;;  %v3046_v3 = vsub.f32 %v37_v59, %v3043_v0  ;;  %v39_v59 = vld [vmem:[%s3117_s2 + $0x30] sm:$0xff] }
 0x1c0   :  { %2746 = vrcp.f32 %v1386_v53  ;;  %2058 = vmatpush.msrb.mxu1 %v1981_v50  ;;  %v1836_v14 = vand.u32 4294901760, %v1835_v52  ;;  %v1467_v5 = vand.u32 2147483648, %v1386_v53  ;;  %vm1461_vm7 = vweird.f32 %v1386_v53 }
 0x1c1   :  { %v2158_v34 = vand.u32 4294901760, %v3046_v3  ;;  %v1465_v9 = vand.u32 2147483647, %v1386_v53 }
 0x1c2   :  { %v1837_v56 = vsub.f32 %v1835_v52, %v1836_v14  ;;  %v1468_v13 = vor.u32 1.1754944e-38, %v1467_v5  ;;  %v40_v5 = vld [vmem:[%s3117_s2 + $0x38] sm:$0xff] }
 0x1c3   :  { %1788 = vmatmul.f32.vlgmr.msra.gmra.mxu2 %v1685_v33  ;;  %1913 = vmatmul.f32.vlgmr.msrb.gmra.mxu3 %v1836_v14  ;;  %v2159_v6 = vsub.f32 %v3046_v3, %v2158_v34  ;;  %vm1466_vm9 = vcmp.eq.f32.partialorder %v1465_v9, 8.507059e+37 }
 0x1c4   :  { %1982 = vmatpush.msra.mxu2 %v1981_v50  ;;  %v1838_v18 = vand.u32 4294901760, %v1837_v56  ;;  %2106 = vmatpush.msrb.mxu3 %v1981_v50 }
 0x1c5   :  { %v2160_v10 = vand.u32 4294901760, %v2159_v6  ;;  %v2577_v6 = vand.u32 4294901760, %v40_v5 }
 0x1c6   :  { %v2747_v60 = vpop.eup %2746  ;;  %1839 = vmatmul.f32.vlgmr.msrb.gmra.mxu0 %v1838_v18 }
 0x1c7   :  { %v1457_v61 = vmul.f32 %v2747_v60, %v1386_v53  ;;  %1959 = vmatmul.f32.vlgmr.msra.gmra.mxu1 %v1834_v47  ;;  %2035 = vmatpush.msrb.mxu0 %v2008_v54  ;;  %vm1462_vm6 = vweird.f32 %v2747_v60  ;;  %v3073_v9 = vsub.f32 %v40_v5, %v2577_v6 }
 0x1c8   :  { %vm1463_vm8 = vmor %vm1461_vm7, %vm1462_vm6  ;;  %2161 = vmatpush.msra.mxu1 %v2160_v10 }
 0x1c9   :  { %v1458_v63 = vsub.f32 1.0, %v1457_v61 }
 0x1cb   :  { %v1459_v2 = vmul.f32 %v2747_v60, %v1458_v63  ;;  %1889 = vmatmul.f32.vlgmr.msrb.gmra.mxu2 %v1835_v52  ;;  %v2428_v63 = vand.u32 4294901760, %v39_v59 }
 0x1cc   :  { %2084 = vmatpush.msrb.mxu2 %v2009_v55 }
 0x1cd   :  { %v1460_v4 = vadd.f32 %v2747_v60, %v1459_v2  ;;  %v2455_v2 = vsub.f32 %v39_v59, %v2428_v63 }
 0x1ce   :  { %1937 = vmatmul.f32.vlgmr.msra.gmra.mxu0 %v1834_v47  ;;  %v2308_v47 = vsub.f32 %v2306_v32, %v2307_v40 }
 0x1cf   :  { %2131 = vmatpush.msra.mxu0 %v3043_v0  ;;  %v1464_v51 = vsel %vm1463_vm8, %v2747_v60, %v1460_v4 }
 0x1d0   :  { %v1383_v8 = vpop.xlane.xlu2 %1382  ;;  %v1469_v15 = vsel %vm1466_vm9, %v1468_v13, %v1464_v51  ;;  %v2309_v14 = vand.u32 4294901760, %v2308_v47 }
 0x1d1   :  { %2748 = vrcp.f32 %v1383_v8  ;;  %v1470_v16 = vmul.f32 %v2972_v19, %v1469_v15  ;;  %v1450_v21 = vand.u32 2147483647, %v1383_v8  ;;  %v1452_v22 = vand.u32 2147483648, %v1383_v8 }
 0x1d2   :  { %vm1446_vm11 = vweird.f32 %v1383_v8 }
 0x1d3   :  { %v2113_v24 = vsel %vm41_vm0, %v1470_v16, 0  ;;  %v1453_v29 = vor.u32 1.1754944e-38, %v1452_v22  ;;  %vm1451_vm13 = vcmp.eq.f32.partialorder %v1450_v21, 8.507059e+37 }
 0x1d4   :  { %v2132_v19 = vand.u32 4294901760, %v2113_v24 }
 0x1d6   :  { %v2133_v1 = vsub.f32 %v2113_v24, %v2132_v19 }
 0x1d7   :  { %v2749_v49 = vpop.eup %2748 }
 0x1d8   :  { %v1442_v17 = vmul.f32 %v2749_v49, %v1383_v8  ;;  %vm1447_vm10 = vweird.f32 %v2749_v49  ;;  %v2134_v46 = vand.u32 4294901760, %v2133_v1  ;;  %v2605_v8 = vand.u32 4294901760, %v3073_v9 }
 0x1d9   :  { %v1389_v7 = vpop.xlane.xlu2 %1388  ;;  %vm1448_vm12 = vmor %vm1446_vm11, %vm1447_vm10 }
 0x1da   :  { %v1443_v20 = vsub.f32 1.0, %v1442_v17  ;;  %2750 = vrcp.f32 %v1389_v7  ;;  %v1482_v38 = vand.u32 2147483648, %v1389_v7  ;;  %v1480_v43 = vand.u32 2147483647, %v1389_v7 }
 0x1db   :  { %vm1476_vm15 = vweird.f32 %v1389_v7  ;;  %v2135_v54 = vsub.f32 %v2133_v1, %v2134_v46  ;;  %v2606_v10 = vsub.f32 %v3073_v9, %v2605_v8 }
 0x1dc   :  { %v1444_v23 = vmul.f32 %v2749_v49, %v1443_v20  ;;  %v1483_v48 = vor.u32 1.1754944e-38, %v1482_v38  ;;  %vm1481_vm2 = vcmp.eq.f32.partialorder %v1480_v43, 8.507059e+37 }
 0x1dd   :  { %v2136_v57 = vand.u32 4294901760, %v2135_v54  ;;  %v2607_v13 = vand.u32 4294901760, %v2606_v10 }
 0x1de   :  { %v1445_v12 = vadd.f32 %v2749_v49, %v1444_v23 }
 0x1e0   :  { %v2751_v30 = vpop.eup %2750  ;;  %v1449_v31 = vsel %vm1448_vm12, %v2749_v49, %v1445_v12 }
 0x1e1   :  { %v1454_v33 = vsel %vm1451_vm13, %v1453_v29, %v1449_v31  ;;  %v1472_v35 = vmul.f32 %v2751_v30, %v1389_v7  ;;  %vm1477_vm14 = vweird.f32 %v2751_v30 }
 0x1e2   :  { %v1455_v36 = vmul.f32 %v2978_v25, %v1454_v33  ;;  %vm1478_vm1 = vmor %vm1476_vm15, %vm1477_vm14 }
 0x1e3   :  { %v1473_v37 = vsub.f32 1.0, %v1472_v35 }
 0x1e4   :  { %v1964_v39 = vsel %vm41_vm0, %v1455_v36, 0 }
 0x1e5   :  { %v1474_v41 = vmul.f32 %v2751_v30, %v1473_v37  ;;  %v1983_v42 = vand.u32 4294901760, %v1964_v39 }
 0x1e7   :  { %v1475_v44 = vadd.f32 %v2751_v30, %v1474_v41  ;;  %2014 = vmatmul.f32.vlgmr.msra.gmra.mxu3 %v1983_v42  ;;  %v1984_v45 = vsub.f32 %v1964_v39, %v1983_v42 }
 0x1e8   :  { %2207 = vmatpush.msra.mxu3 %v3043_v0 }
 0x1e9   :  { %v1479_v25 = vsel %vm1478_vm1, %v2751_v30, %v1475_v44  ;;  %2038 = vmatmul.f32.vlgmr.msrb.gmra.mxu0 %v1984_v45  ;;  %v1985_v50 = vand.u32 4294901760, %v1984_v45 }
 0x1ea   :  { %2233 = vmatpush.msrb.mxu0 %v2158_v34  ;;  %v1484_v52 = vsel %vm1481_vm2, %v1483_v48, %v1479_v25 }
 0x1eb   :  { %2062 = vmatmul.f32.vlgmr.msrb.gmra.mxu1 %v1985_v50  ;;  %v1986_v53 = vsub.f32 %v1984_v45, %v1985_v50  ;;  %v1485_v56 = vmul.f32 %v2982_v28, %v1484_v52 }
 0x1ec   :  { %2255 = vmatpush.msrb.mxu1 %v3043_v0 }
 0x1ed   :  { %v1987_v55 = vand.u32 4294901760, %v1986_v53  ;;  %v2262_v18 = vsel %vm41_vm0, %v1485_v56, 0 }
 0x1ee   :  { %v2281_v58 = vand.u32 4294901760, %v2262_v18 }
 0x1ef   :  { %1988 = vmatmul.f32.vlgmr.msra.gmra.mxu2 %v1987_v55  ;;  %2108 = vmatmul.f32.vlgmr.msrb.gmra.mxu3 %v1983_v42 }
 0x1f0   :  { %2184 = vmatpush.msra.mxu2 %v3046_v3  ;;  %2310 = vmatpush.msrb.mxu3 %v2309_v14  ;;  %v2282_v60 = vsub.f32 %v2262_v18, %v2281_v58  ;;  %v2456_v3 = vand.u32 4294901760, %v2455_v2 }
 0x1f1   :  { %2137 = vmatmul.f32.vlgmr.msra.gmra.mxu0 %v2136_v57 }
 0x1f2   :  { %2333 = vmatpush.msra.mxu0 %v2306_v32  ;;  %v2283_v28 = vand.u32 4294901760, %v2282_v60  ;;  %v2457_v34 = vsub.f32 %v2455_v2, %v2456_v3 }
 0x1f3   :  { %2163 = vmatmul.f32.vlgmr.msra.gmra.mxu1 %v2132_v19 }
 0x1f4   :  { %2356 = vmatpush.msra.mxu1 %v2279_v27  ;;  %v2284_v61 = vsub.f32 %v2282_v60, %v2283_v28  ;;  %v2458_v4 = vand.u32 4294901760, %v2457_v34 }
 0x1f6   :  { %v2285_v0 = vand.u32 4294901760, %v2284_v61 }
 0x1f7   :  { %2086 = vmatmul.f32.vlgmr.msrb.gmra.mxu2 %v1983_v42  ;;  %2211 = vmatmul.f32.vlgmr.msra.gmra.mxu3 %v2134_v46 }
 0x1f8   :  { %2280 = vmatpush.msrb.mxu2 %v2279_v27  ;;  %2404 = vmatpush.msra.mxu3 %v2279_v27 }
 0x1f9   :  { %2235 = vmatmul.f32.vlgmr.msrb.gmra.mxu0 %v2132_v19 }
 0x1fa   :  { %2429 = vmatpush.msrb.mxu0 %v2428_v63 }
 0x1fb   :  { %2257 = vmatmul.f32.vlgmr.msrb.gmra.mxu1 %v2132_v19 }
 0x1fc   :  { %2459 = vmatpush.msrb.mxu1 %v2458_v4 }
 0x1ff   :  { %2187 = vmatmul.f32.vlgmr.msra.gmra.mxu2 %v2133_v1  ;;  %2312 = vmatmul.f32.vlgmr.msrb.gmra.mxu3 %v2281_v58 }
 0x200   :  { %2382 = vmatpush.msra.mxu2 %v2307_v40  ;;  %2505 = vmatpush.msrb.mxu3 %v2428_v63 }
 0x201   :  { %2336 = vmatmul.f32.vlgmr.msra.gmra.mxu0 %v2282_v60 }
 0x202   :  { %2531 = vmatpush.msra.mxu0 %v2456_v3 }
 0x203   :  { %2360 = vmatmul.f32.vlgmr.msra.gmra.mxu1 %v2283_v28 }
 0x204   :  { %2553 = vmatpush.msra.mxu1 %v2428_v63 }
 0x207   :  { %2286 = vmatmul.f32.vlgmr.msrb.gmra.mxu2 %v2285_v0  ;;  %2406 = vmatmul.f32.vlgmr.msra.gmra.mxu3 %v2281_v58 }
 0x208   :  { %2482 = vmatpush.msrb.mxu2 %v2455_v2  ;;  %2608 = vmatpush.msra.mxu3 %v2607_v13 }
 0x20f   :  { %2384 = vmatmul.f32.vlgmr.msra.gmra.mxu2 %v2281_v58 }
 0x210   :  { %2578 = vmatpush.msra.mxu2 %v2577_v6 }
 0x217   :  { %v1392_v51 = vpop.xlane.xlu1 %1391 }
 0x218   :  { %2752 = vrcp.f32 %v1392_v51  ;;  %v1497_v17 = vand.u32 2147483648, %v1392_v51  ;;  %v1495_v11 = vand.u32 2147483647, %v1392_v51  ;;  %vm1491_vm4 = vweird.f32 %v1392_v51 }
 0x21a   :  { %v1498_v22 = vor.u32 1.1754944e-38, %v1497_v17  ;;  %vm1496_vm6 = vcmp.eq.f32.partialorder %v1495_v11, 8.507059e+37 }
 0x21e   :  { %v2753_v15 = vpop.eup %2752 }
 0x21f   :  { %v1487_v49 = vmul.f32 %v2753_v15, %v1392_v51  ;;  %vm1492_vm3 = vweird.f32 %v2753_v15 }
 0x220   :  { %vm1493_vm5 = vmor %vm1491_vm4, %vm1492_vm3 }
 0x221   :  { %v1488_v16 = vsub.f32 1.0, %v1487_v49 }
 0x223   :  { %v1489_v7 = vmul.f32 %v2753_v15, %v1488_v16  ;;  %v1568_v19 = vpop.f32.mrf.mxu1 }
 0x225   :  { %v1490_v20 = vadd.f32 %v2753_v15, %v1489_v7  ;;  %v1395_v21 = vpop.xlane.xlu2 %1394 }
 0x226   :  { %2754 = vrcp.f32 %v1395_v21  ;;  %v1512_v39 = vand.u32 2147483648, %v1395_v21  ;;  %vm1506_vm8 = vweird.f32 %v1395_v21 }
 0x227   :  { %v1494_v23 = vsel %vm1493_vm5, %v2753_v15, %v1490_v20 }
 0x228   :  { %v1499_v24 = vsel %vm1496_vm6, %v1498_v22, %v1494_v23  ;;  %v1513_v45 = vor.u32 1.1754944e-38, %v1512_v39 }
 0x229   :  { %v1500_v27 = vmul.f32 %v3010_v62, %v1499_v24  ;;  %v1510_v62 = vand.u32 2147483647, %v1395_v21 }
 0x22b   :  { %v2411_v12 = vsel %vm41_vm0, %v1500_v27, 0  ;;  %v1542_v30 = vpop.f32.mrf.mxu0  ;;  %v1592_v35 = vpop.f32.mrf.mxu2  ;;  %vm1511_vm10 = vcmp.eq.f32.partialorder %v1510_v62, 8.507059e+37 }
 0x22c   :  { %v2755_v29 = vpop.eup %2754  ;;  %v2430_v31 = vand.u32 4294901760, %v2411_v12  ;;  %v1569_v33 = vadd.f32 %v1568_v19, %v1542_v30  ;;  %v1662_v52 = vpop.f32.mrf.mxu1 }
 0x22d   :  { %v1502_v32 = vmul.f32 %v2755_v29, %v1395_v21  ;;  %vm1507_vm7 = vweird.f32 %v2755_v29  ;;  %v1616_v38 = vpop.f32.mrf.mxu3 }
 0x22e   :  { %2461 = vmatmul.f32.vlgmr.msrb.gmra.mxu1 %v2430_v31  ;;  %v2431_v36 = vsub.f32 %v2411_v12, %v2430_v31  ;;  %v1593_v1 = vadd.f32 %v1592_v35, %v1569_v33  ;;  %vm1508_vm9 = vmor %vm1506_vm8, %vm1507_vm7 }
 0x22f   :  { %v1503_v37 = vsub.f32 1.0, %v1502_v32  ;;  %2654 = vmatpush.msrb.mxu1 %v2577_v6 }
 0x230   :  { %2485 = vmatmul.f32.vlgmr.msrb.gmra.mxu2 %v2431_v36  ;;  %v2432_v40 = vand.u32 4294901760, %v2431_v36  ;;  %v1617_v44 = vadd.f32 %v1616_v38, %v1593_v1 }
 0x231   :  { %v1504_v41 = vmul.f32 %v2755_v29, %v1503_v37  ;;  %2680 = vmatpush.msrb.mxu2 %v2605_v8 }
 0x232   :  { %2509 = vmatmul.f32.vlgmr.msrb.gmra.mxu3 %v2432_v40  ;;  %v2433_v42 = vsub.f32 %v2431_v36, %v2432_v40 }
 0x233   :  { %v1505_v43 = vadd.f32 %v2755_v29, %v1504_v41  ;;  %2702 = vmatpush.msrb.mxu3 %v2577_v6  ;;  %v1640_v46 = vpop.f32.mrf.mxu0 }
 0x234   :  { %v2434_v47 = vand.u32 4294901760, %v2433_v42  ;;  %v1641_v48 = vadd.f32 %v1640_v46, %v1617_v44 }
 0x235   :  { %v1509_v25 = vsel %vm1508_vm9, %v2755_v29, %v1505_v43 }
 0x236   :  { %v1514_v50 = vsel %vm1511_vm10, %v1513_v45, %v1509_v25  ;;  %2435 = vmatmul.f32.vlgmr.msrb.gmra.mxu0 %v2434_v47  ;;  %2555 = vmatmul.f32.vlgmr.msra.gmra.mxu1 %v2430_v31  ;;  %v1663_v54 = vadd.f32 %v1662_v52, %v1641_v48  ;;  %v1717_v56 = vpop.f32.mrf.mxu3 }
 0x237   :  { %v1515_v53 = vmul.f32 %v3023_v26, %v1514_v50  ;;  %2631 = vmatpush.msrb.mxu0 %v3073_v9  ;;  %v1765_v26 = vpop.f32.mrf.mxu1 }
 0x238   :  { %2708 = vst.msk [vmem:[%s3118_s4] sm:$0xff] %vm41_vm0, %v1663_v54 }
 0x239   :  { %v2560_v14 = vsel %vm41_vm0, %v1515_v53, 0 }
 0x23a   :  { %v2579_v55 = vand.u32 4294901760, %v2560_v14 }
 0x23b   :  { %v1741_v18 = vpop.f32.mrf.mxu0 }
 0x23c   :  { %v2580_v57 = vsub.f32 %v2560_v14, %v2579_v55  ;;  %2610 = vmatmul.f32.vlgmr.msra.gmra.mxu3 %v2579_v55 }
 0x23e   :  { %v1691_v58 = vpop.f32.mrf.mxu2  ;;  %2533 = vmatmul.f32.vlgmr.msra.gmra.mxu0 %v2430_v31  ;;  %v2581_v60 = vand.u32 4294901760, %v2580_v57  ;;  %v1811_v2 = vpop.f32.mrf.mxu3 }
 0x23f   :  { %v1718_v28 = vadd.f32 %v1717_v56, %v1691_v58  ;;  %v1866_v6 = vpop.f32.mrf.mxu1 }
 0x240   :  { %2658 = vmatmul.f32.vlgmr.msrb.gmra.mxu1 %v2581_v60  ;;  %v2582_v61 = vsub.f32 %v2580_v57, %v2581_v60 }
 0x241   :  { %v1742_v59 = vadd.f32 %v1741_v18, %v1718_v28 }
 0x242   :  { %v2583_v63 = vand.u32 4294901760, %v2582_v61 }
 0x243   :  { %v1766_v0 = vadd.f32 %v1765_v26, %v1742_v59  ;;  %v1840_v4 = vpop.f32.mrf.mxu0 }
 0x244   :  { %2584 = vmatmul.f32.vlgmr.msra.gmra.mxu2 %v2583_v63  ;;  %2704 = vmatmul.f32.vlgmr.msrb.gmra.mxu3 %v2579_v55  ;;  %v1867_v9 = vadd.f32 %v1866_v6, %v1840_v4 }
 0x246   :  { %v1789_v3 = vpop.f32.mrf.mxu2  ;;  %2634 = vmatmul.f32.vlgmr.msrb.gmra.mxu0 %v2580_v57  ;;  %v1914_v10 = vpop.f32.mrf.mxu3 }
 0x247   :  { %v1790_v34 = vadd.f32 %v1789_v3, %v1766_v0  ;;  %v1960_v16 = vpop.f32.mrf.mxu1 }
 0x249   :  { %v1812_v5 = vadd.f32 %v1811_v2, %v1790_v34 }
 0x24b   :  { %2709 = vst.msk [vmem:[%s3118_s4 + $0x8] sm:$0xff] %vm41_vm0, %v1812_v5  ;;  %v1938_v15 = vpop.f32.mrf.mxu0 }
 0x24c   :  { %2682 = vmatmul.f32.vlgmr.msrb.gmra.mxu2 %v2579_v55 }
 0x24e   :  { %v1890_v8 = vpop.f32.mrf.mxu2 }
 0x24f   :  { %v1891_v51 = vadd.f32 %v1890_v8, %v1867_v9 }
 0x251   :  { %v1915_v13 = vadd.f32 %v1914_v10, %v1891_v51 }
 0x253   :  { %v1939_v49 = vadd.f32 %v1938_v15, %v1915_v13 }
 0x255   :  { %v1961_v17 = vadd.f32 %v1960_v16, %v1939_v49 }
 0x257   :  { %2710 = vst.msk [vmem:[%s3118_s4 + $0x10] sm:$0xff] %vm41_vm0, %v1961_v17 }
 0x266   :  { %v2039_v11 = vpop.f32.mrf.mxu0 }
 0x268   :  { %v2063_v20 = vpop.f32.mrf.mxu1 }
 0x26a   :  { %v2015_v7 = vpop.f32.mrf.mxu3 }
 0x26e   :  { %v2138_v27 = vpop.f32.mrf.mxu0 }
 0x270   :  { %v2164_v30 = vpop.f32.mrf.mxu1 }
 0x271   :  { %v2165_v33 = vadd.f32 %v2164_v30, %v2138_v27 }
 0x272   :  { %v1989_v21 = vpop.f32.mrf.mxu2  ;;  %v2109_v24 = vpop.f32.mrf.mxu3 }
 0x273   :  { %v2016_v22 = vadd.f32 %v2015_v7, %v1989_v21 }
 0x275   :  { %v2040_v23 = vadd.f32 %v2039_v11, %v2016_v22 }
 0x276   :  { %v2236_v35 = vpop.f32.mrf.mxu0 }
 0x277   :  { %v2064_v12 = vadd.f32 %v2063_v20, %v2040_v23 }
 0x278   :  { %v2258_v39 = vpop.f32.mrf.mxu1 }
 0x27a   :  { %v2087_v29 = vpop.f32.mrf.mxu2  ;;  %v2212_v32 = vpop.f32.mrf.mxu3 }
 0x27b   :  { %v2088_v19 = vadd.f32 %v2087_v29, %v2064_v12 }
 0x27d   :  { %v2110_v31 = vadd.f32 %v2109_v24, %v2088_v19 }
 0x27e   :  { %v2337_v43 = vpop.f32.mrf.mxu0 }
 0x27f   :  { %2711 = vst.msk [vmem:[%s3118_s4 + $0x18] sm:$0xff] %vm41_vm0, %v2110_v31 }
 0x280   :  { %v2361_v45 = vpop.f32.mrf.mxu1 }
 0x282   :  { %v2188_v36 = vpop.f32.mrf.mxu2  ;;  %v2313_v62 = vpop.f32.mrf.mxu3 }
 0x283   :  { %v2189_v37 = vadd.f32 %v2188_v36, %v2165_v33 }
 0x285   :  { %v2213_v1 = vadd.f32 %v2212_v32, %v2189_v37 }
 0x287   :  { %v2237_v40 = vadd.f32 %v2236_v35, %v2213_v1 }
 0x289   :  { %v2259_v41 = vadd.f32 %v2258_v39, %v2237_v40 }
 0x28a   :  { %v2287_v38 = vpop.f32.mrf.mxu2  ;;  %v2407_v48 = vpop.f32.mrf.mxu3 }
 0x28b   :  { %2712 = vst.msk [vmem:[%s3118_s4 + $0x20] sm:$0xff] %vm41_vm0, %v2259_v41  ;;  %v2314_v42 = vadd.f32 %v2313_v62, %v2287_v38 }
 0x28d   :  { %v2338_v44 = vadd.f32 %v2337_v43, %v2314_v42 }
 0x28f   :  { %v2362_v46 = vadd.f32 %v2361_v45, %v2338_v44 }
 0x292   :  { %v2385_v47 = vpop.f32.mrf.mxu2 }
 0x293   :  { %v2386_v25 = vadd.f32 %v2385_v47, %v2362_v46 }
 0x295   :  { %v2408_v50 = vadd.f32 %v2407_v48, %v2386_v25 }
 0x297   :  { %2713 = vst.msk [vmem:[%s3118_s4 + $0x28] sm:$0xff] %vm41_vm0, %v2408_v50 }
 0x2ab   :  { %v2462_v52 = vpop.f32.mrf.mxu1 }
 0x2b3   :  { %v2436_v53 = vpop.f32.mrf.mxu0  ;;  %v2486_v14 = vpop.f32.mrf.mxu2 }
 0x2b4   :  { %v2463_v54 = vadd.f32 %v2462_v52, %v2436_v53  ;;  %v2556_v60 = vpop.f32.mrf.mxu1 }
 0x2b5   :  { %v2510_v56 = vpop.f32.mrf.mxu3 }
 0x2b6   :  { %v2487_v55 = vadd.f32 %v2486_v14, %v2463_v54 }
 0x2b8   :  { %v2511_v57 = vadd.f32 %v2510_v56, %v2487_v55 }
 0x2bb   :  { %v2534_v18 = vpop.f32.mrf.mxu0 }
 0x2bc   :  { %v2535_v58 = vadd.f32 %v2534_v18, %v2511_v57 }
 0x2bd   :  { %v2659_v2 = vpop.f32.mrf.mxu1 }
 0x2be   :  { %v2557_v28 = vadd.f32 %v2556_v60, %v2535_v58 }
 0x2bf   :  { %v2611_v26 = vpop.f32.mrf.mxu3 }
 0x2c0   :  { %2714 = vst.msk [vmem:[%s3118_s4 + $0x30] sm:$0xff] %vm41_vm0, %v2557_v28 }
 0x2c3   :  { %v2635_v63 = vpop.f32.mrf.mxu0 }
 0x2c7   :  { %v2585_v61 = vpop.f32.mrf.mxu2  ;;  %v2705_v5 = vpop.f32.mrf.mxu3 }
 0x2c8   :  { %v2612_v59 = vadd.f32 %v2611_v26, %v2585_v61 }
 0x2ca   :  { %v2636_v0 = vadd.f32 %v2635_v63, %v2612_v59 }
 0x2cc   :  { %v2660_v3 = vadd.f32 %v2659_v2, %v2636_v0 }
 0x2cf   :  { %v2683_v34 = vpop.f32.mrf.mxu2 }
 0x2d0   :  { %v2684_v4 = vadd.f32 %v2683_v34, %v2660_v3 }
 0x2d2   :  { %v2706_v6 = vadd.f32 %v2705_v5, %v2684_v4 }
 0x2d4   :  { %2715 = vst.msk [vmem:[%s3118_s4 + $0x38] sm:$0xff] %vm41_vm0, %v2706_v6 }

</bundles_post_ra>
